<compile_context>
chip_gen: v7x
topology: tpu7x:2x2x1
jax: 0.10.0
libtpu: 0.0.40
codegen_flags: <defaults>
</compile_context>

<pallas_src>
import numpy as np
import jax
import jax.numpy as jnp
from jax.experimental import pallas as pl
from jax.experimental.pallas import tpu as pltpu

# ----- model hyper-parameters (small, consistent with the module) -----
B = 2            # batch size
T_IN = 8         # in_seq_len
H = 32           # hidden_size
L = 2            # num_hidden_layers
T_OUT = 4        # out_seq_len
K = 3            # mixture_components
OUT = K + T_OUT * K * 5   # mdn output width = 63
# _val_ranges = cumsum([0, K, 2*T_OUT*K, 2*T_OUT*K, T_OUT*K])
VR = np.cumsum([0, K, T_OUT * K * 2, T_OUT * K * 2, T_OUT * K]).tolist()

HP = 128          # lane-padded hidden width
G4 = 4 * HP       # padded gate width = 512
OUT_PAD = 128     # lane-dense MDN output width (>= OUT)


# ---------------------------------------------------------------------
# Pallas kernel: multi-layer LSTM over the sequence + final Linear (MDN)
# ---------------------------------------------------------------------
def red_lstm_mdn_kernel(x_ref, w_ih_ref, w_hh_ref, b_ref, w_mdn_ref, b_mdn_ref,
                        out_ref, seq_buf):
    TB, hp = x_ref.shape           # static: (T_IN*B, HP)
    n_layers = w_ih_ref.shape[0]   # static
    bk = out_ref.shape[0]          # static batch
    n_steps = TB // bk

    # layer-0 input sequence lives in seq_buf; each layer overwrites it in place
    seq_buf[...] = x_ref[...]

    h = jnp.zeros((bk, hp), jnp.float32)
    for l in range(n_layers):
        # Hoisted input projection for the WHOLE sequence (one MXU pass) with the
        # (b_ih + b_hh) bias folded in once — nothing of this sits on the recurrence.
        gx = jnp.dot(seq_buf[...], w_ih_ref[l],
                     preferred_element_type=jnp.float32) + b_ref[l]   # [T*B, 4*HP]
        w_hh = w_hh_ref[l]                                            # [HP, 4*HP]

        # recurrent state stays in vregs (no VMEM round-trips per step)
        h = jnp.zeros((bk, hp), jnp.float32)
        c = jnp.zeros((bk, hp), jnp.float32)
        for t in range(n_steps):
            gates = gx[t * bk:(t + 1) * bk, :] + jnp.dot(
                h, w_hh, preferred_element_type=jnp.float32)          # [B, 4*HP]
            # lane-aligned 128-wide gate slices (i, f, g, o)
            i_g = jax.nn.sigmoid(gates[:, 0 * hp:1 * hp])
            f_g = jax.nn.sigmoid(gates[:, 1 * hp:2 * hp])
            g_g = jnp.tanh(gates[:, 2 * hp:3 * hp])
            o_g = jax.nn.sigmoid(gates[:, 3 * hp:4 * hp])
            c = f_g * c + i_g * g_g
            h = o_g * jnp.tanh(c)
            if l + 1 < n_layers:               # only needed as next layer's input
                seq_buf[t * bk:(t + 1) * bk, :] = h

    # MDN linear head on the encoding (last hidden state of the top layer)
    out_ref[...] = (jnp.dot(h, w_mdn_ref[...],
                            preferred_element_type=jnp.float32)
                    + b_mdn_ref[...])


def run_mdn_kernel(x_pad, w_ih_stack, w_hh_stack, b_stack, w_mdn_pad, b_mdn_pad):
    return pl.pallas_call(
        red_lstm_mdn_kernel,
        out_shape=jax.ShapeDtypeStruct((B, OUT_PAD), jnp.float32),
        grid=(1,),
        in_specs=[
            pl.BlockSpec((T_IN * B, HP), lambda i: (0, 0)),
            pl.BlockSpec((L, HP, G4), lambda i: (0, 0, 0)),
            pl.BlockSpec((L, HP, G4), lambda i: (0, 0, 0)),
            pl.BlockSpec((L, 1, G4), lambda i: (0, 0, 0)),
            pl.BlockSpec((HP, OUT_PAD), lambda i: (0, 0)),
            pl.BlockSpec((1, OUT_PAD), lambda i: (0, 0)),
        ],
        out_specs=pl.BlockSpec((B, OUT_PAD), lambda i: (0, 0)),
        scratch_shapes=[
            pltpu.VMEM((T_IN * B, HP), jnp.float32),   # layer-wise sequence buffer
        ],
        compiler_params=pltpu.CompilerParams(
            dimension_semantics=("arbitrary",)),
    )(x_pad, w_ih_stack, w_hh_stack, b_stack, w_mdn_pad, b_mdn_pad)


# ---------------------------------------------------------------------
# Parameter setup (deterministic, PyTorch-style uniform init)
# ---------------------------------------------------------------------
def init_params(key):
    bound = 1.0 / np.sqrt(H)
    keys = jax.random.split(key, 4 * L + 2)
    idx = 0
    lstm = []
    for l in range(L):
        in_sz = 2 if l == 0 else H
        w_ih = jax.random.uniform(keys[idx], (4 * H, in_sz), jnp.float32, -bound, bound); idx += 1
        w_hh = jax.random.uniform(keys[idx], (4 * H, H), jnp.float32, -bound, bound); idx += 1
        b_ih = jax.random.uniform(keys[idx], (4 * H,), jnp.float32, -bound, bound); idx += 1
        b_hh = jax.random.uniform(keys[idx], (4 * H,), jnp.float32, -bound, bound); idx += 1
        lstm.append((w_ih, w_hh, b_ih, b_hh))
    w_mdn = jax.random.uniform(keys[idx], (OUT, H), jnp.float32, -bound, bound); idx += 1
    b_mdn = jax.random.uniform(keys[idx], (OUT,), jnp.float32, -bound, bound)
    return lstm, w_mdn, b_mdn


def pack_params(lstm, w_mdn, b_mdn):
    """Pack PyTorch-layout LSTM/MDN params into the lane-padded kernel layout."""
    w_ih_stack = np.zeros((L, HP, G4), np.float32)
    w_hh_stack = np.zeros((L, HP, G4), np.float32)
    b_stack = np.zeros((L, 1, G4), np.float32)
    for l, (w_ih, w_hh, b_ih, b_hh) in enumerate(lstm):
        w_ih_np = np.asarray(w_ih)
        w_hh_np = np.asarray(w_hh)
        b_np = np.asarray(b_ih) + np.asarray(b_hh)
        in_sz = w_ih_np.shape[1]
        for g in range(4):   # torch gate order: i, f, g, o
            w_ih_stack[l, :in_sz, g * HP:g * HP + H] = w_ih_np[g * H:(g + 1) * H, :].T
            w_hh_stack[l, :H, g * HP:g * HP + H] = w_hh_np[g * H:(g + 1) * H, :].T
            b_stack[l, 0, g * HP:g * HP + H] = b_np[g * H:(g + 1) * H]
    w_mdn_pad = np.zeros((HP, OUT_PAD), np.float32)
    w_mdn_pad[:H, :OUT] = np.asarray(w_mdn).T
    b_mdn_pad = np.zeros((1, OUT_PAD), np.float32)
    b_mdn_pad[0, :OUT] = np.asarray(b_mdn)
    return (jnp.asarray(w_ih_stack), jnp.asarray(w_hh_stack), jnp.asarray(b_stack),
            jnp.asarray(w_mdn_pad), jnp.asarray(b_mdn_pad))


# ---------------------------------------------------------------------
# Glue: MDN logits -> (pi, mu, cov), identical to the torch forward()
# ---------------------------------------------------------------------
def gmm_from_mdn(mdn_out, x):
    bsz = mdn_out.shape[0]
    pi = jax.nn.softmax(mdn_out[:, :VR[1]], axis=1).reshape(bsz, K)
    mu_vals = mdn_out[:, VR[1]:VR[2]].reshape(bsz, K, T_OUT, 2)
    std_vals = jax.nn.softplus(mdn_out[:, VR[2]:VR[3]].reshape(bsz, K, T_OUT, 2))
    corr_vals = jnp.clip(jax.nn.soft_sign(mdn_out[:, VR[3]:VR[4]].reshape(bsz, K, T_OUT)),
                         -0.99, 0.99)

    rep_ref = jnp.tile(x[:, -1].reshape(bsz, 1, 1, 2), (1, K, 1, 1))
    mu = jnp.cumsum(jnp.concatenate([rep_ref, mu_vals], axis=2), axis=2)[:, :, 1:]

    mask_std1 = jnp.array([[1.0, 0.0], [0.0, 0.0]], jnp.float32)
    mask_std2 = jnp.array([[0.0, 0.0], [0.0, 1.0]], jnp.float32)
    mask_corr = jnp.array([[0.0, 1.0], [1.0, 0.0]], jnp.float32)
    s1 = std_vals[..., 0][..., None, None]
    s2 = std_vals[..., 1][..., None, None]
    cr = corr_vals[..., None, None]
    cov = mask_std1 * s1 * s1 + mask_std2 * s2 * s2 + mask_corr * s1 * s2 * cr
    return pi, mu, cov


def red_forward(x, lstm, w_mdn, b_mdn):
    """Full REDPredictor2D.forward: returns (pi [B,K], mu [B,K,T_OUT,2], cov [B,K,T_OUT,2,2])."""
    packed = pack_params(lstm, w_mdn, b_mdn)
    # time-major rows (row = t*B + b), features zero-padded to HP lanes
    x_tm = jnp.transpose(x, (1, 0, 2)).reshape(T_IN * B, 2)
    x_pad = jnp.zeros((T_IN * B, HP), jnp.float32).at[:, :2].set(x_tm)
    mdn_out = run_mdn_kernel(x_pad, *packed)[:, :OUT]   # drop lane padding
    return gmm_from_mdn(mdn_out, x)


# ---------------------------------------------------------------------
# Pure-JAX reference (same math, no Pallas) for a sanity check
# ---------------------------------------------------------------------
def ref_mdn_out(x, lstm, w_mdn, b_mdn):
    seq = x
    h = jnp.zeros((B, H), jnp.float32)
    for (w_ih, w_hh, b_ih, b_hh) in lstm:
        h = jnp.zeros((B, H), jnp.float32)
        c = jnp.zeros((B, H), jnp.float32)
        outs = []
        for t in range(T_IN):
            gates = seq[:, t] @ w_ih.T + b_ih + h @ w_hh.T + b_hh
            i_g = jax.nn.sigmoid(gates[:, :H])
            f_g = jax.nn.sigmoid(gates[:, H:2 * H])
            g_g = jnp.tanh(gates[:, 2 * H:3 * H])
            o_g = jax.nn.sigmoid(gates[:, 3 * H:])
            c = f_g * c + i_g * g_g
            h = o_g * jnp.tanh(c)
            outs.append(h)
        seq = jnp.stack(outs, axis=1)
    return h @ w_mdn.T + b_mdn


if __name__ == "__main__":
    key = jax.random.PRNGKey(0)
    kx, kp = jax.random.split(key)
    x = jax.random.normal(kx, (B, T_IN, 2), dtype=jnp.float32)
    lstm, w_mdn, b_mdn = init_params(kp)

    pi, mu, cov = red_forward(x, lstm, w_mdn, b_mdn)
    jax.block_until_ready((pi, mu, cov))

    # sanity check against pure-JAX reference
    pi_r, mu_r, cov_r = gmm_from_mdn(ref_mdn_out(x, lstm, w_mdn, b_mdn), x)
    assert pi.shape == (B, K) and mu.shape == (B, K, T_OUT, 2) and cov.shape == (B, K, T_OUT, 2, 2)
    np.testing.assert_allclose(np.asarray(pi), np.asarray(pi_r), atol=5e-3, rtol=5e-3)
    np.testing.assert_allclose(np.asarray(mu), np.asarray(mu_r), atol=5e-3, rtol=5e-3)
    np.testing.assert_allclose(np.asarray(cov), np.asarray(cov_r), atol=5e-3, rtol=5e-3)

    print("KERNEL_OK")
</pallas_src>

<mosaic_0001>
module attributes {stable_mosaic.version = 11 : i64} {
  func.func @red_lstm_mdn_kernel(%arg0: i32, %arg1: memref<16x128xf32, #tpu.memory_space<vmem>>, %arg2: memref<2x128x512xf32, #tpu.memory_space<vmem>>, %arg3: memref<2x128x512xf32, #tpu.memory_space<vmem>>, %arg4: memref<2x1x512xf32, #tpu.memory_space<vmem>>, %arg5: memref<128x128xf32, #tpu.memory_space<vmem>>, %arg6: memref<1x128xf32, #tpu.memory_space<vmem>>, %arg7: memref<2x128xf32, #tpu.memory_space<vmem>>, %arg8: memref<16x128xf32, #tpu.memory_space<vmem>>) attributes {dimension_semantics = [#tpu.dimension_semantics<arbitrary>], iteration_bounds = array<i64: 1>, scalar_prefetch = 0 : i64, scratch_operands = 1 : i64, tpu.core_type = #tpu.core_type<tc>, window_params = [{pipeline_mode = #tpu.pipeline_mode<synchronous>, transform_indices = @transform_0, window_bounds = array<i64: 16, 128>}, {pipeline_mode = #tpu.pipeline_mode<synchronous>, transform_indices = @transform_1, window_bounds = array<i64: 2, 128, 512>}, {pipeline_mode = #tpu.pipeline_mode<synchronous>, transform_indices = @transform_2, window_bounds = array<i64: 2, 128, 512>}, {pipeline_mode = #tpu.pipeline_mode<synchronous>, transform_indices = @transform_3, window_bounds = array<i64: 2, 1, 512>}, {pipeline_mode = #tpu.pipeline_mode<synchronous>, transform_indices = @transform_4, window_bounds = array<i64: 128, 128>}, {pipeline_mode = #tpu.pipeline_mode<synchronous>, transform_indices = @transform_5, window_bounds = array<i64: 1, 128>}, {pipeline_mode = #tpu.pipeline_mode<synchronous>, transform_indices = @transform_6, window_bounds = array<i64: 2, 128>}]} {
    %c0 = arith.constant 0 : index
    %c0_0 = arith.constant 0 : index
    %0 = vector.load %arg1[%c0, %c0_0] : memref<16x128xf32, #tpu.memory_space<vmem>>, vector<16x128xf32>
    %c0_1 = arith.constant 0 : index
    %c0_2 = arith.constant 0 : index
    %1 = vector.load %arg8[%c0_1, %c0_2] : memref<16x128xf32, #tpu.memory_space<vmem>>, vector<16x128xf32>
    tpu.vector_store %arg8[%c0_1, %c0_2], %0 {strides = array<i32>} : memref<16x128xf32, #tpu.memory_space<vmem>>, vector<16x128xf32>,
    %c0_3 = arith.constant 0 : index
    %c0_4 = arith.constant 0 : index
    %2 = vector.load %arg8[%c0_3, %c0_4] : memref<16x128xf32, #tpu.memory_space<vmem>>, vector<16x128xf32>
    %c0_5 = arith.constant 0 : index
    %c0_6 = arith.constant 0 : index
    %c0_7 = arith.constant 0 : index
    %3 = vector.load %arg2[%c0_5, %c0_6, %c0_7] : memref<2x128x512xf32, #tpu.memory_space<vmem>>, vector<1x128x512xf32>
    %4 = vector.shape_cast %3 : vector<1x128x512xf32> to vector<128x512xf32>
    %cst = arith.constant dense<0.000000e+00> : vector<16x512xf32>
    %5 = tpu.matmul %2, %4, %cst {dimension_numbers = #tpu.dot_dimension_numbers<[1], [0], [0], [1], [0, 0, 1, 1], [], []>} : vector<16x128xf32>, vector<128x512xf32>, vector<16x512xf32> -> vector<16x512xf32>
    %c0_8 = arith.constant 0 : index
    %c0_9 = arith.constant 0 : index
    %c0_10 = arith.constant 0 : index
    %6 = vector.load %arg4[%c0_8, %c0_9, %c0_10] : memref<2x1x512xf32, #tpu.memory_space<vmem>>, vector<1x1x512xf32>
    %7 = vector.shape_cast %6 : vector<1x1x512xf32> to vector<1x512xf32>
    %8 = vector.broadcast %7 : vector<1x512xf32> to vector<16x512xf32>
    %9 = arith.addf %5, %8 : vector<16x512xf32>
    %c0_11 = arith.constant 0 : index
    %c0_12 = arith.constant 0 : index
    %c0_13 = arith.constant 0 : index
    %10 = vector.load %arg3[%c0_11, %c0_12, %c0_13] : memref<2x128x512xf32, #tpu.memory_space<vmem>>, vector<1x128x512xf32>
    %11 = vector.shape_cast %10 : vector<1x128x512xf32> to vector<128x512xf32>
    %cst_14 = arith.constant 0.000000e+00 : f32
    %12 = vector.broadcast %cst_14 : f32 to vector<2x128xf32>
    %cst_15 = arith.constant 0.000000e+00 : f32
    %13 = vector.broadcast %cst_15 : f32 to vector<2x128xf32>
    %14 = vector.extract_strided_slice %9 {offsets = [0, 0], sizes = [2, 512], strides = [1, 1]} : vector<16x512xf32> to vector<2x512xf32>
    %cst_16 = arith.constant dense<0.000000e+00> : vector<2x512xf32>
    %15 = tpu.matmul %12, %11, %cst_16 {dimension_numbers = #tpu.dot_dimension_numbers<[1], [0], [0], [1], [0, 0, 1, 1], [], []>} : vector<2x128xf32>, vector<128x512xf32>, vector<2x512xf32> -> vector<2x512xf32>
    %16 = arith.addf %14, %15 : vector<2x512xf32>
    %17 = vector.extract_strided_slice %16 {offsets = [0, 0], sizes = [2, 128], strides = [1, 1]} : vector<2x512xf32> to vector<2x128xf32>
    %18 = arith.negf %17 : vector<2x128xf32>
    %19 = math.exp %18 : vector<2x128xf32>
    %cst_17 = arith.constant 1.000000e+00 : f32
    %20 = vector.broadcast %cst_17 : f32 to vector<2x128xf32>
    %21 = arith.addf %20, %19 : vector<2x128xf32>
    %22 = arith.divf %20, %21 : vector<2x128xf32>
    %23 = vector.extract_strided_slice %16 {offsets = [0, 128], sizes = [2, 128], strides = [1, 1]} : vector<2x512xf32> to vector<2x128xf32>
    %24 = arith.negf %23 : vector<2x128xf32>
    %25 = math.exp %24 : vector<2x128xf32>
    %cst_18 = arith.constant 1.000000e+00 : f32
    %26 = vector.broadcast %cst_18 : f32 to vector<2x128xf32>
    %27 = arith.addf %26, %25 : vector<2x128xf32>
    %28 = arith.divf %26, %27 : vector<2x128xf32>
    %29 = vector.extract_strided_slice %16 {offsets = [0, 256], sizes = [2, 128], strides = [1, 1]} : vector<2x512xf32> to vector<2x128xf32>
    %30 = math.tanh %29 : vector<2x128xf32>
    %31 = vector.extract_strided_slice %16 {offsets = [0, 384], sizes = [2, 128], strides = [1, 1]} : vector<2x512xf32> to vector<2x128xf32>
    %32 = arith.negf %31 : vector<2x128xf32>
    %33 = math.exp %32 : vector<2x128xf32>
    %cst_19 = arith.constant 1.000000e+00 : f32
    %34 = vector.broadcast %cst_19 : f32 to vector<2x128xf32>
    %35 = arith.addf %34, %33 : vector<2x128xf32>
    %36 = arith.divf %34, %35 : vector<2x128xf32>
    %37 = arith.mulf %28, %13 : vector<2x128xf32>
    %38 = arith.mulf %22, %30 : vector<2x128xf32>
    %39 = arith.addf %37, %38 : vector<2x128xf32>
    %40 = math.tanh %39 : vector<2x128xf32>
    %41 = arith.mulf %36, %40 : vector<2x128xf32>
    %c0_20 = arith.constant 0 : index
    %c0_21 = arith.constant 0 : index
    %42 = vector.load %arg8[%c0_20, %c0_21] : memref<16x128xf32, #tpu.memory_space<vmem>>, vector<2x128xf32>
    tpu.vector_store %arg8[%c0_20, %c0_21], %41 {strides = array<i32>} : memref<16x128xf32, #tpu.memory_space<vmem>>, vector<2x128xf32>,
    %43 = vector.extract_strided_slice %9 {offsets = [2, 0], sizes = [2, 512], strides = [1, 1]} : vector<16x512xf32> to vector<2x512xf32>
    %cst_22 = arith.constant dense<0.000000e+00> : vector<2x512xf32>
    %44 = tpu.matmul %41, %11, %cst_22 {dimension_numbers = #tpu.dot_dimension_numbers<[1], [0], [0], [1], [0, 0, 1, 1], [], []>} : vector<2x128xf32>, vector<128x512xf32>, vector<2x512xf32> -> vector<2x512xf32>
    %45 = arith.addf %43, %44 : vector<2x512xf32>
    %46 = vector.extract_strided_slice %45 {offsets = [0, 0], sizes = [2, 128], strides = [1, 1]} : vector<2x512xf32> to vector<2x128xf32>
    %47 = arith.negf %46 : vector<2x128xf32>
    %48 = math.exp %47 : vector<2x128xf32>
    %cst_23 = arith.constant 1.000000e+00 : f32
    %49 = vector.broadcast %cst_23 : f32 to vector<2x128xf32>
    %50 = arith.addf %49, %48 : vector<2x128xf32>
    %51 = arith.divf %49, %50 : vector<2x128xf32>
    %52 = vector.extract_strided_slice %45 {offsets = [0, 128], sizes = [2, 128], strides = [1, 1]} : vector<2x512xf32> to vector<2x128xf32>
    %53 = arith.negf %52 : vector<2x128xf32>
    %54 = math.exp %53 : vector<2x128xf32>
    %cst_24 = arith.constant 1.000000e+00 : f32
    %55 = vector.broadcast %cst_24 : f32 to vector<2x128xf32>
    %56 = arith.addf %55, %54 : vector<2x128xf32>
    %57 = arith.divf %55, %56 : vector<2x128xf32>
    %58 = vector.extract_strided_slice %45 {offsets = [0, 256], sizes = [2, 128], strides = [1, 1]} : vector<2x512xf32> to vector<2x128xf32>
    %59 = math.tanh %58 : vector<2x128xf32>
    %60 = vector.extract_strided_slice %45 {offsets = [0, 384], sizes = [2, 128], strides = [1, 1]} : vector<2x512xf32> to vector<2x128xf32>
    %61 = arith.negf %60 : vector<2x128xf32>
    %62 = math.exp %61 : vector<2x128xf32>
    %cst_25 = arith.constant 1.000000e+00 : f32
    %63 = vector.broadcast %cst_25 : f32 to vector<2x128xf32>
    %64 = arith.addf %63, %62 : vector<2x128xf32>
    %65 = arith.divf %63, %64 : vector<2x128xf32>
    %66 = arith.mulf %57, %39 : vector<2x128xf32>
    %67 = arith.mulf %51, %59 : vector<2x128xf32>
    %68 = arith.addf %66, %67 : vector<2x128xf32>
    %69 = math.tanh %68 : vector<2x128xf32>
    %70 = arith.mulf %65, %69 : vector<2x128xf32>
    %c2 = arith.constant 2 : index
    %c0_26 = arith.constant 0 : index
    %71 = vector.load %arg8[%c2, %c0_26] : memref<16x128xf32, #tpu.memory_space<vmem>>, vector<2x128xf32>
    tpu.vector_store %arg8[%c2, %c0_26], %70 {strides = array<i32>} : memref<16x128xf32, #tpu.memory_space<vmem>>, vector<2x128xf32>,
    %72 = vector.extract_strided_slice %9 {offsets = [4, 0], sizes = [2, 512], strides = [1, 1]} : vector<16x512xf32> to vector<2x512xf32>
    %cst_27 = arith.constant dense<0.000000e+00> : vector<2x512xf32>
    %73 = tpu.matmul %70, %11, %cst_27 {dimension_numbers = #tpu.dot_dimension_numbers<[1], [0], [0], [1], [0, 0, 1, 1], [], []>} : vector<2x128xf32>, vector<128x512xf32>, vector<2x512xf32> -> vector<2x512xf32>
    %74 = arith.addf %72, %73 : vector<2x512xf32>
    %75 = vector.extract_strided_slice %74 {offsets = [0, 0], sizes = [2, 128], strides = [1, 1]} : vector<2x512xf32> to vector<2x128xf32>
    %76 = arith.negf %75 : vector<2x128xf32>
    %77 = math.exp %76 : vector<2x128xf32>
    %cst_28 = arith.constant 1.000000e+00 : f32
    %78 = vector.broadcast %cst_28 : f32 to vector<2x128xf32>
    %79 = arith.addf %78, %77 : vector<2x128xf32>
    %80 = arith.divf %78, %79 : vector<2x128xf32>
    %81 = vector.extract_strided_slice %74 {offsets = [0, 128], sizes = [2, 128], strides = [1, 1]} : vector<2x512xf32> to vector<2x128xf32>
    %82 = arith.negf %81 : vector<2x128xf32>
    %83 = math.exp %82 : vector<2x128xf32>
    %cst_29 = arith.constant 1.000000e+00 : f32
    %84 = vector.broadcast %cst_29 : f32 to vector<2x128xf32>
    %85 = arith.addf %84, %83 : vector<2x128xf32>
    %86 = arith.divf %84, %85 : vector<2x128xf32>
    %87 = vector.extract_strided_slice %74 {offsets = [0, 256], sizes = [2, 128], strides = [1, 1]} : vector<2x512xf32> to vector<2x128xf32>
    %88 = math.tanh %87 : vector<2x128xf32>
    %89 = vector.extract_strided_slice %74 {offsets = [0, 384], sizes = [2, 128], strides = [1, 1]} : vector<2x512xf32> to vector<2x128xf32>
    %90 = arith.negf %89 : vector<2x128xf32>
    %91 = math.exp %90 : vector<2x128xf32>
    %cst_30 = arith.constant 1.000000e+00 : f32
    %92 = vector.broadcast %cst_30 : f32 to vector<2x128xf32>
    %93 = arith.addf %92, %91 : vector<2x128xf32>
    %94 = arith.divf %92, %93 : vector<2x128xf32>
    %95 = arith.mulf %86, %68 : vector<2x128xf32>
    %96 = arith.mulf %80, %88 : vector<2x128xf32>
    %97 = arith.addf %95, %96 : vector<2x128xf32>
    %98 = math.tanh %97 : vector<2x128xf32>
    %99 = arith.mulf %94, %98 : vector<2x128xf32>
    %c4 = arith.constant 4 : index
    %c0_31 = arith.constant 0 : index
    %100 = vector.load %arg8[%c4, %c0_31] : memref<16x128xf32, #tpu.memory_space<vmem>>, vector<2x128xf32>
    tpu.vector_store %arg8[%c4, %c0_31], %99 {strides = array<i32>} : memref<16x128xf32, #tpu.memory_space<vmem>>, vector<2x128xf32>,
    %101 = vector.extract_strided_slice %9 {offsets = [6, 0], sizes = [2, 512], strides = [1, 1]} : vector<16x512xf32> to vector<2x512xf32>
    %cst_32 = arith.constant dense<0.000000e+00> : vector<2x512xf32>
    %102 = tpu.matmul %99, %11, %cst_32 {dimension_numbers = #tpu.dot_dimension_numbers<[1], [0], [0], [1], [0, 0, 1, 1], [], []>} : vector<2x128xf32>, vector<128x512xf32>, vector<2x512xf32> -> vector<2x512xf32>
    %103 = arith.addf %101, %102 : vector<2x512xf32>
    %104 = vector.extract_strided_slice %103 {offsets = [0, 0], sizes = [2, 128], strides = [1, 1]} : vector<2x512xf32> to vector<2x128xf32>
    %105 = arith.negf %104 : vector<2x128xf32>
    %106 = math.exp %105 : vector<2x128xf32>
    %cst_33 = arith.constant 1.000000e+00 : f32
    %107 = vector.broadcast %cst_33 : f32 to vector<2x128xf32>
    %108 = arith.addf %107, %106 : vector<2x128xf32>
    %109 = arith.divf %107, %108 : vector<2x128xf32>
    %110 = vector.extract_strided_slice %103 {offsets = [0, 128], sizes = [2, 128], strides = [1, 1]} : vector<2x512xf32> to vector<2x128xf32>
    %111 = arith.negf %110 : vector<2x128xf32>
    %112 = math.exp %111 : vector<2x128xf32>
    %cst_34 = arith.constant 1.000000e+00 : f32
    %113 = vector.broadcast %cst_34 : f32 to vector<2x128xf32>
    %114 = arith.addf %113, %112 : vector<2x128xf32>
    %115 = arith.divf %113, %114 : vector<2x128xf32>
    %116 = vector.extract_strided_slice %103 {offsets = [0, 256], sizes = [2, 128], strides = [1, 1]} : vector<2x512xf32> to vector<2x128xf32>
    %117 = math.tanh %116 : vector<2x128xf32>
    %118 = vector.extract_strided_slice %103 {offsets = [0, 384], sizes = [2, 128], strides = [1, 1]} : vector<2x512xf32> to vector<2x128xf32>
    %119 = arith.negf %118 : vector<2x128xf32>
    %120 = math.exp %119 : vector<2x128xf32>
    %cst_35 = arith.constant 1.000000e+00 : f32
    %121 = vector.broadcast %cst_35 : f32 to vector<2x128xf32>
    %122 = arith.addf %121, %120 : vector<2x128xf32>
    %123 = arith.divf %121, %122 : vector<2x128xf32>
    %124 = arith.mulf %115, %97 : vector<2x128xf32>
    %125 = arith.mulf %109, %117 : vector<2x128xf32>
    %126 = arith.addf %124, %125 : vector<2x128xf32>
    %127 = math.tanh %126 : vector<2x128xf32>
    %128 = arith.mulf %123, %127 : vector<2x128xf32>
    %c6 = arith.constant 6 : index
    %c0_36 = arith.constant 0 : index
    %129 = vector.load %arg8[%c6, %c0_36] : memref<16x128xf32, #tpu.memory_space<vmem>>, vector<2x128xf32>
    tpu.vector_store %arg8[%c6, %c0_36], %128 {strides = array<i32>} : memref<16x128xf32, #tpu.memory_space<vmem>>, vector<2x128xf32>,
    %130 = vector.extract_strided_slice %9 {offsets = [8, 0], sizes = [2, 512], strides = [1, 1]} : vector<16x512xf32> to vector<2x512xf32>
    %cst_37 = arith.constant dense<0.000000e+00> : vector<2x512xf32>
    %131 = tpu.matmul %128, %11, %cst_37 {dimension_numbers = #tpu.dot_dimension_numbers<[1], [0], [0], [1], [0, 0, 1, 1], [], []>} : vector<2x128xf32>, vector<128x512xf32>, vector<2x512xf32> -> vector<2x512xf32>
    %132 = arith.addf %130, %131 : vector<2x512xf32>
    %133 = vector.extract_strided_slice %132 {offsets = [0, 0], sizes = [2, 128], strides = [1, 1]} : vector<2x512xf32> to vector<2x128xf32>
    %134 = arith.negf %133 : vector<2x128xf32>
    %135 = math.exp %134 : vector<2x128xf32>
    %cst_38 = arith.constant 1.000000e+00 : f32
    %136 = vector.broadcast %cst_38 : f32 to vector<2x128xf32>
    %137 = arith.addf %136, %135 : vector<2x128xf32>
    %138 = arith.divf %136, %137 : vector<2x128xf32>
    %139 = vector.extract_strided_slice %132 {offsets = [0, 128], sizes = [2, 128], strides = [1, 1]} : vector<2x512xf32> to vector<2x128xf32>
    %140 = arith.negf %139 : vector<2x128xf32>
    %141 = math.exp %140 : vector<2x128xf32>
    %cst_39 = arith.constant 1.000000e+00 : f32
    %142 = vector.broadcast %cst_39 : f32 to vector<2x128xf32>
    %143 = arith.addf %142, %141 : vector<2x128xf32>
    %144 = arith.divf %142, %143 : vector<2x128xf32>
    %145 = vector.extract_strided_slice %132 {offsets = [0, 256], sizes = [2, 128], strides = [1, 1]} : vector<2x512xf32> to vector<2x128xf32>
    %146 = math.tanh %145 : vector<2x128xf32>
    %147 = vector.extract_strided_slice %132 {offsets = [0, 384], sizes = [2, 128], strides = [1, 1]} : vector<2x512xf32> to vector<2x128xf32>
    %148 = arith.negf %147 : vector<2x128xf32>
    %149 = math.exp %148 : vector<2x128xf32>
    %cst_40 = arith.constant 1.000000e+00 : f32
    %150 = vector.broadcast %cst_40 : f32 to vector<2x128xf32>
    %151 = arith.addf %150, %149 : vector<2x128xf32>
    %152 = arith.divf %150, %151 : vector<2x128xf32>
    %153 = arith.mulf %144, %126 : vector<2x128xf32>
    %154 = arith.mulf %138, %146 : vector<2x128xf32>
    %155 = arith.addf %153, %154 : vector<2x128xf32>
    %156 = math.tanh %155 : vector<2x128xf32>
    %157 = arith.mulf %152, %156 : vector<2x128xf32>
    %c8 = arith.constant 8 : index
    %c0_41 = arith.constant 0 : index
    %158 = vector.load %arg8[%c8, %c0_41] : memref<16x128xf32, #tpu.memory_space<vmem>>, vector<2x128xf32>
    tpu.vector_store %arg8[%c8, %c0_41], %157 {strides = array<i32>} : memref<16x128xf32, #tpu.memory_space<vmem>>, vector<2x128xf32>,
    %159 = vector.extract_strided_slice %9 {offsets = [10, 0], sizes = [2, 512], strides = [1, 1]} : vector<16x512xf32> to vector<2x512xf32>
    %cst_42 = arith.constant dense<0.000000e+00> : vector<2x512xf32>
    %160 = tpu.matmul %157, %11, %cst_42 {dimension_numbers = #tpu.dot_dimension_numbers<[1], [0], [0], [1], [0, 0, 1, 1], [], []>} : vector<2x128xf32>, vector<128x512xf32>, vector<2x512xf32> -> vector<2x512xf32>
    %161 = arith.addf %159, %160 : vector<2x512xf32>
    %162 = vector.extract_strided_slice %161 {offsets = [0, 0], sizes = [2, 128], strides = [1, 1]} : vector<2x512xf32> to vector<2x128xf32>
    %163 = arith.negf %162 : vector<2x128xf32>
    %164 = math.exp %163 : vector<2x128xf32>
    %cst_43 = arith.constant 1.000000e+00 : f32
    %165 = vector.broadcast %cst_43 : f32 to vector<2x128xf32>
    %166 = arith.addf %165, %164 : vector<2x128xf32>
    %167 = arith.divf %165, %166 : vector<2x128xf32>
    %168 = vector.extract_strided_slice %161 {offsets = [0, 128], sizes = [2, 128], strides = [1, 1]} : vector<2x512xf32> to vector<2x128xf32>
    %169 = arith.negf %168 : vector<2x128xf32>
    %170 = math.exp %169 : vector<2x128xf32>
    %cst_44 = arith.constant 1.000000e+00 : f32
    %171 = vector.broadcast %cst_44 : f32 to vector<2x128xf32>
    %172 = arith.addf %171, %170 : vector<2x128xf32>
    %173 = arith.divf %171, %172 : vector<2x128xf32>
    %174 = vector.extract_strided_slice %161 {offsets = [0, 256], sizes = [2, 128], strides = [1, 1]} : vector<2x512xf32> to vector<2x128xf32>
    %175 = math.tanh %174 : vector<2x128xf32>
    %176 = vector.extract_strided_slice %161 {offsets = [0, 384], sizes = [2, 128], strides = [1, 1]} : vector<2x512xf32> to vector<2x128xf32>
    %177 = arith.negf %176 : vector<2x128xf32>
    %178 = math.exp %177 : vector<2x128xf32>
    %cst_45 = arith.constant 1.000000e+00 : f32
    %179 = vector.broadcast %cst_45 : f32 to vector<2x128xf32>
    %180 = arith.addf %179, %178 : vector<2x128xf32>
    %181 = arith.divf %179, %180 : vector<2x128xf32>
    %182 = arith.mulf %173, %155 : vector<2x128xf32>
    %183 = arith.mulf %167, %175 : vector<2x128xf32>
    %184 = arith.addf %182, %183 : vector<2x128xf32>
    %185 = math.tanh %184 : vector<2x128xf32>
    %186 = arith.mulf %181, %185 : vector<2x128xf32>
    %c10 = arith.constant 10 : index
    %c0_46 = arith.constant 0 : index
    %187 = vector.load %arg8[%c10, %c0_46] : memref<16x128xf32, #tpu.memory_space<vmem>>, vector<2x128xf32>
    tpu.vector_store %arg8[%c10, %c0_46], %186 {strides = array<i32>} : memref<16x128xf32, #tpu.memory_space<vmem>>, vector<2x128xf32>,
    %188 = vector.extract_strided_slice %9 {offsets = [12, 0], sizes = [2, 512], strides = [1, 1]} : vector<16x512xf32> to vector<2x512xf32>
    %cst_47 = arith.constant dense<0.000000e+00> : vector<2x512xf32>
    %189 = tpu.matmul %186, %11, %cst_47 {dimension_numbers = #tpu.dot_dimension_numbers<[1], [0], [0], [1], [0, 0, 1, 1], [], []>} : vector<2x128xf32>, vector<128x512xf32>, vector<2x512xf32> -> vector<2x512xf32>
    %190 = arith.addf %188, %189 : vector<2x512xf32>
    %191 = vector.extract_strided_slice %190 {offsets = [0, 0], sizes = [2, 128], strides = [1, 1]} : vector<2x512xf32> to vector<2x128xf32>
    %192 = arith.negf %191 : vector<2x128xf32>
    %193 = math.exp %192 : vector<2x128xf32>
    %cst_48 = arith.constant 1.000000e+00 : f32
    %194 = vector.broadcast %cst_48 : f32 to vector<2x128xf32>
    %195 = arith.addf %194, %193 : vector<2x128xf32>
    %196 = arith.divf %194, %195 : vector<2x128xf32>
    %197 = vector.extract_strided_slice %190 {offsets = [0, 128], sizes = [2, 128], strides = [1, 1]} : vector<2x512xf32> to vector<2x128xf32>
    %198 = arith.negf %197 : vector<2x128xf32>
    %199 = math.exp %198 : vector<2x128xf32>
    %cst_49 = arith.constant 1.000000e+00 : f32
    %200 = vector.broadcast %cst_49 : f32 to vector<2x128xf32>
    %201 = arith.addf %200, %199 : vector<2x128xf32>
    %202 = arith.divf %200, %201 : vector<2x128xf32>
    %203 = vector.extract_strided_slice %190 {offsets = [0, 256], sizes = [2, 128], strides = [1, 1]} : vector<2x512xf32> to vector<2x128xf32>
    %204 = math.tanh %203 : vector<2x128xf32>
    %205 = vector.extract_strided_slice %190 {offsets = [0, 384], sizes = [2, 128], strides = [1, 1]} : vector<2x512xf32> to vector<2x128xf32>
    %206 = arith.negf %205 : vector<2x128xf32>
    %207 = math.exp %206 : vector<2x128xf32>
    %cst_50 = arith.constant 1.000000e+00 : f32
    %208 = vector.broadcast %cst_50 : f32 to vector<2x128xf32>
    %209 = arith.addf %208, %207 : vector<2x128xf32>
    %210 = arith.divf %208, %209 : vector<2x128xf32>
    %211 = arith.mulf %202, %184 : vector<2x128xf32>
    %212 = arith.mulf %196, %204 : vector<2x128xf32>
    %213 = arith.addf %211, %212 : vector<2x128xf32>
    %214 = math.tanh %213 : vector<2x128xf32>
    %215 = arith.mulf %210, %214 : vector<2x128xf32>
    %c12 = arith.constant 12 : index
    %c0_51 = arith.constant 0 : index
    %216 = vector.load %arg8[%c12, %c0_51] : memref<16x128xf32, #tpu.memory_space<vmem>>, vector<2x128xf32>
    tpu.vector_store %arg8[%c12, %c0_51], %215 {strides = array<i32>} : memref<16x128xf32, #tpu.memory_space<vmem>>, vector<2x128xf32>,
    %217 = vector.extract_strided_slice %9 {offsets = [14, 0], sizes = [2, 512], strides = [1, 1]} : vector<16x512xf32> to vector<2x512xf32>
    %cst_52 = arith.constant dense<0.000000e+00> : vector<2x512xf32>
    %218 = tpu.matmul %215, %11, %cst_52 {dimension_numbers = #tpu.dot_dimension_numbers<[1], [0], [0], [1], [0, 0, 1, 1], [], []>} : vector<2x128xf32>, vector<128x512xf32>, vector<2x512xf32> -> vector<2x512xf32>
    %219 = arith.addf %217, %218 : vector<2x512xf32>
    %220 = vector.extract_strided_slice %219 {offsets = [0, 0], sizes = [2, 128], strides = [1, 1]} : vector<2x512xf32> to vector<2x128xf32>
    %221 = arith.negf %220 : vector<2x128xf32>
    %222 = math.exp %221 : vector<2x128xf32>
    %cst_53 = arith.constant 1.000000e+00 : f32
    %223 = vector.broadcast %cst_53 : f32 to vector<2x128xf32>
    %224 = arith.addf %223, %222 : vector<2x128xf32>
    %225 = arith.divf %223, %224 : vector<2x128xf32>
    %226 = vector.extract_strided_slice %219 {offsets = [0, 128], sizes = [2, 128], strides = [1, 1]} : vector<2x512xf32> to vector<2x128xf32>
    %227 = arith.negf %226 : vector<2x128xf32>
    %228 = math.exp %227 : vector<2x128xf32>
    %cst_54 = arith.constant 1.000000e+00 : f32
    %229 = vector.broadcast %cst_54 : f32 to vector<2x128xf32>
    %230 = arith.addf %229, %228 : vector<2x128xf32>
    %231 = arith.divf %229, %230 : vector<2x128xf32>
    %232 = vector.extract_strided_slice %219 {offsets = [0, 256], sizes = [2, 128], strides = [1, 1]} : vector<2x512xf32> to vector<2x128xf32>
    %233 = math.tanh %232 : vector<2x128xf32>
    %234 = vector.extract_strided_slice %219 {offsets = [0, 384], sizes = [2, 128], strides = [1, 1]} : vector<2x512xf32> to vector<2x128xf32>
    %235 = arith.negf %234 : vector<2x128xf32>
    %236 = math.exp %235 : vector<2x128xf32>
    %cst_55 = arith.constant 1.000000e+00 : f32
    %237 = vector.broadcast %cst_55 : f32 to vector<2x128xf32>
    %238 = arith.addf %237, %236 : vector<2x128xf32>
    %239 = arith.divf %237, %238 : vector<2x128xf32>
    %240 = arith.mulf %231, %213 : vector<2x128xf32>
    %241 = arith.mulf %225, %233 : vector<2x128xf32>
    %242 = arith.addf %240, %241 : vector<2x128xf32>
    %243 = math.tanh %242 : vector<2x128xf32>
    %244 = arith.mulf %239, %243 : vector<2x128xf32>
    %c14 = arith.constant 14 : index
    %c0_56 = arith.constant 0 : index
    %245 = vector.load %arg8[%c14, %c0_56] : memref<16x128xf32, #tpu.memory_space<vmem>>, vector<2x128xf32>
    tpu.vector_store %arg8[%c14, %c0_56], %244 {strides = array<i32>} : memref<16x128xf32, #tpu.memory_space<vmem>>, vector<2x128xf32>,
    %c0_57 = arith.constant 0 : index
    %c0_58 = arith.constant 0 : index
    %246 = vector.load %arg8[%c0_57, %c0_58] : memref<16x128xf32, #tpu.memory_space<vmem>>, vector<16x128xf32>
    %c1 = arith.constant 1 : index
    %c0_59 = arith.constant 0 : index
    %c0_60 = arith.constant 0 : index
    %247 = vector.load %arg2[%c1, %c0_59, %c0_60] : memref<2x128x512xf32, #tpu.memory_space<vmem>>, vector<1x128x512xf32>
    %248 = vector.shape_cast %247 : vector<1x128x512xf32> to vector<128x512xf32>
    %cst_61 = arith.constant dense<0.000000e+00> : vector<16x512xf32>
    %249 = tpu.matmul %246, %248, %cst_61 {dimension_numbers = #tpu.dot_dimension_numbers<[1], [0], [0], [1], [0, 0, 1, 1], [], []>} : vector<16x128xf32>, vector<128x512xf32>, vector<16x512xf32> -> vector<16x512xf32>
    %c1_62 = arith.constant 1 : index
    %c0_63 = arith.constant 0 : index
    %c0_64 = arith.constant 0 : index
    %250 = vector.load %arg4[%c1_62, %c0_63, %c0_64] : memref<2x1x512xf32, #tpu.memory_space<vmem>>, vector<1x1x512xf32>
    %251 = vector.shape_cast %250 : vector<1x1x512xf32> to vector<1x512xf32>
    %252 = vector.broadcast %251 : vector<1x512xf32> to vector<16x512xf32>
    %253 = arith.addf %249, %252 : vector<16x512xf32>
    %c1_65 = arith.constant 1 : index
    %c0_66 = arith.constant 0 : index
    %c0_67 = arith.constant 0 : index
    %254 = vector.load %arg3[%c1_65, %c0_66, %c0_67] : memref<2x128x512xf32, #tpu.memory_space<vmem>>, vector<1x128x512xf32>
    %255 = vector.shape_cast %254 : vector<1x128x512xf32> to vector<128x512xf32>
    %cst_68 = arith.constant 0.000000e+00 : f32
    %256 = vector.broadcast %cst_68 : f32 to vector<2x128xf32>
    %cst_69 = arith.constant 0.000000e+00 : f32
    %257 = vector.broadcast %cst_69 : f32 to vector<2x128xf32>
    %258 = vector.extract_strided_slice %253 {offsets = [0, 0], sizes = [2, 512], strides = [1, 1]} : vector<16x512xf32> to vector<2x512xf32>
    %cst_70 = arith.constant dense<0.000000e+00> : vector<2x512xf32>
    %259 = tpu.matmul %256, %255, %cst_70 {dimension_numbers = #tpu.dot_dimension_numbers<[1], [0], [0], [1], [0, 0, 1, 1], [], []>} : vector<2x128xf32>, vector<128x512xf32>, vector<2x512xf32> -> vector<2x512xf32>
    %260 = arith.addf %258, %259 : vector<2x512xf32>
    %261 = vector.extract_strided_slice %260 {offsets = [0, 0], sizes = [2, 128], strides = [1, 1]} : vector<2x512xf32> to vector<2x128xf32>
    %262 = arith.negf %261 : vector<2x128xf32>
    %263 = math.exp %262 : vector<2x128xf32>
    %cst_71 = arith.constant 1.000000e+00 : f32
    %264 = vector.broadcast %cst_71 : f32 to vector<2x128xf32>
    %265 = arith.addf %264, %263 : vector<2x128xf32>
    %266 = arith.divf %264, %265 : vector<2x128xf32>
    %267 = vector.extract_strided_slice %260 {offsets = [0, 128], sizes = [2, 128], strides = [1, 1]} : vector<2x512xf32> to vector<2x128xf32>
    %268 = arith.negf %267 : vector<2x128xf32>
    %269 = math.exp %268 : vector<2x128xf32>
    %cst_72 = arith.constant 1.000000e+00 : f32
    %270 = vector.broadcast %cst_72 : f32 to vector<2x128xf32>
    %271 = arith.addf %270, %269 : vector<2x128xf32>
    %272 = arith.divf %270, %271 : vector<2x128xf32>
    %273 = vector.extract_strided_slice %260 {offsets = [0, 256], sizes = [2, 128], strides = [1, 1]} : vector<2x512xf32> to vector<2x128xf32>
    %274 = math.tanh %273 : vector<2x128xf32>
    %275 = vector.extract_strided_slice %260 {offsets = [0, 384], sizes = [2, 128], strides = [1, 1]} : vector<2x512xf32> to vector<2x128xf32>
    %276 = arith.negf %275 : vector<2x128xf32>
    %277 = math.exp %276 : vector<2x128xf32>
    %cst_73 = arith.constant 1.000000e+00 : f32
    %278 = vector.broadcast %cst_73 : f32 to vector<2x128xf32>
    %279 = arith.addf %278, %277 : vector<2x128xf32>
    %280 = arith.divf %278, %279 : vector<2x128xf32>
    %281 = arith.mulf %272, %257 : vector<2x128xf32>
    %282 = arith.mulf %266, %274 : vector<2x128xf32>
    %283 = arith.addf %281, %282 : vector<2x128xf32>
    %284 = math.tanh %283 : vector<2x128xf32>
    %285 = arith.mulf %280, %284 : vector<2x128xf32>
    %286 = vector.extract_strided_slice %253 {offsets = [2, 0], sizes = [2, 512], strides = [1, 1]} : vector<16x512xf32> to vector<2x512xf32>
    %cst_74 = arith.constant dense<0.000000e+00> : vector<2x512xf32>
    %287 = tpu.matmul %285, %255, %cst_74 {dimension_numbers = #tpu.dot_dimension_numbers<[1], [0], [0], [1], [0, 0, 1, 1], [], []>} : vector<2x128xf32>, vector<128x512xf32>, vector<2x512xf32> -> vector<2x512xf32>
    %288 = arith.addf %286, %287 : vector<2x512xf32>
    %289 = vector.extract_strided_slice %288 {offsets = [0, 0], sizes = [2, 128], strides = [1, 1]} : vector<2x512xf32> to vector<2x128xf32>
    %290 = arith.negf %289 : vector<2x128xf32>
    %291 = math.exp %290 : vector<2x128xf32>
    %cst_75 = arith.constant 1.000000e+00 : f32
    %292 = vector.broadcast %cst_75 : f32 to vector<2x128xf32>
    %293 = arith.addf %292, %291 : vector<2x128xf32>
    %294 = arith.divf %292, %293 : vector<2x128xf32>
    %295 = vector.extract_strided_slice %288 {offsets = [0, 128], sizes = [2, 128], strides = [1, 1]} : vector<2x512xf32> to vector<2x128xf32>
    %296 = arith.negf %295 : vector<2x128xf32>
    %297 = math.exp %296 : vector<2x128xf32>
    %cst_76 = arith.constant 1.000000e+00 : f32
    %298 = vector.broadcast %cst_76 : f32 to vector<2x128xf32>
    %299 = arith.addf %298, %297 : vector<2x128xf32>
    %300 = arith.divf %298, %299 : vector<2x128xf32>
    %301 = vector.extract_strided_slice %288 {offsets = [0, 256], sizes = [2, 128], strides = [1, 1]} : vector<2x512xf32> to vector<2x128xf32>
    %302 = math.tanh %301 : vector<2x128xf32>
    %303 = vector.extract_strided_slice %288 {offsets = [0, 384], sizes = [2, 128], strides = [1, 1]} : vector<2x512xf32> to vector<2x128xf32>
    %304 = arith.negf %303 : vector<2x128xf32>
    %305 = math.exp %304 : vector<2x128xf32>
    %cst_77 = arith.constant 1.000000e+00 : f32
    %306 = vector.broadcast %cst_77 : f32 to vector<2x128xf32>
    %307 = arith.addf %306, %305 : vector<2x128xf32>
    %308 = arith.divf %306, %307 : vector<2x128xf32>
    %309 = arith.mulf %300, %283 : vector<2x128xf32>
    %310 = arith.mulf %294, %302 : vector<2x128xf32>
    %311 = arith.addf %309, %310 : vector<2x128xf32>
    %312 = math.tanh %311 : vector<2x128xf32>
    %313 = arith.mulf %308, %312 : vector<2x128xf32>
    %314 = vector.extract_strided_slice %253 {offsets = [4, 0], sizes = [2, 512], strides = [1, 1]} : vector<16x512xf32> to vector<2x512xf32>
    %cst_78 = arith.constant dense<0.000000e+00> : vector<2x512xf32>
    %315 = tpu.matmul %313, %255, %cst_78 {dimension_numbers = #tpu.dot_dimension_numbers<[1], [0], [0], [1], [0, 0, 1, 1], [], []>} : vector<2x128xf32>, vector<128x512xf32>, vector<2x512xf32> -> vector<2x512xf32>
    %316 = arith.addf %314, %315 : vector<2x512xf32>
    %317 = vector.extract_strided_slice %316 {offsets = [0, 0], sizes = [2, 128], strides = [1, 1]} : vector<2x512xf32> to vector<2x128xf32>
    %318 = arith.negf %317 : vector<2x128xf32>
    %319 = math.exp %318 : vector<2x128xf32>
    %cst_79 = arith.constant 1.000000e+00 : f32
    %320 = vector.broadcast %cst_79 : f32 to vector<2x128xf32>
    %321 = arith.addf %320, %319 : vector<2x128xf32>
    %322 = arith.divf %320, %321 : vector<2x128xf32>
    %323 = vector.extract_strided_slice %316 {offsets = [0, 128], sizes = [2, 128], strides = [1, 1]} : vector<2x512xf32> to vector<2x128xf32>
    %324 = arith.negf %323 : vector<2x128xf32>
    %325 = math.exp %324 : vector<2x128xf32>
    %cst_80 = arith.constant 1.000000e+00 : f32
    %326 = vector.broadcast %cst_80 : f32 to vector<2x128xf32>
    %327 = arith.addf %326, %325 : vector<2x128xf32>
    %328 = arith.divf %326, %327 : vector<2x128xf32>
    %329 = vector.extract_strided_slice %316 {offsets = [0, 256], sizes = [2, 128], strides = [1, 1]} : vector<2x512xf32> to vector<2x128xf32>
    %330 = math.tanh %329 : vector<2x128xf32>
    %331 = vector.extract_strided_slice %316 {offsets = [0, 384], sizes = [2, 128], strides = [1, 1]} : vector<2x512xf32> to vector<2x128xf32>
    %332 = arith.negf %331 : vector<2x128xf32>
    %333 = math.exp %332 : vector<2x128xf32>
    %cst_81 = arith.constant 1.000000e+00 : f32
    %334 = vector.broadcast %cst_81 : f32 to vector<2x128xf32>
    %335 = arith.addf %334, %333 : vector<2x128xf32>
    %336 = arith.divf %334, %335 : vector<2x128xf32>
    %337 = arith.mulf %328, %311 : vector<2x128xf32>
    %338 = arith.mulf %322, %330 : vector<2x128xf32>
    %339 = arith.addf %337, %338 : vector<2x128xf32>
    %340 = math.tanh %339 : vector<2x128xf32>
    %341 = arith.mulf %336, %340 : vector<2x128xf32>
    %342 = vector.extract_strided_slice %253 {offsets = [6, 0], sizes = [2, 512], strides = [1, 1]} : vector<16x512xf32> to vector<2x512xf32>
    %cst_82 = arith.constant dense<0.000000e+00> : vector<2x512xf32>
    %343 = tpu.matmul %341, %255, %cst_82 {dimension_numbers = #tpu.dot_dimension_numbers<[1], [0], [0], [1], [0, 0, 1, 1], [], []>} : vector<2x128xf32>, vector<128x512xf32>, vector<2x512xf32> -> vector<2x512xf32>
    %344 = arith.addf %342, %343 : vector<2x512xf32>
    %345 = vector.extract_strided_slice %344 {offsets = [0, 0], sizes = [2, 128], strides = [1, 1]} : vector<2x512xf32> to vector<2x128xf32>
    %346 = arith.negf %345 : vector<2x128xf32>
    %347 = math.exp %346 : vector<2x128xf32>
    %cst_83 = arith.constant 1.000000e+00 : f32
    %348 = vector.broadcast %cst_83 : f32 to vector<2x128xf32>
    %349 = arith.addf %348, %347 : vector<2x128xf32>
    %350 = arith.divf %348, %349 : vector<2x128xf32>
    %351 = vector.extract_strided_slice %344 {offsets = [0, 128], sizes = [2, 128], strides = [1, 1]} : vector<2x512xf32> to vector<2x128xf32>
    %352 = arith.negf %351 : vector<2x128xf32>
    %353 = math.exp %352 : vector<2x128xf32>
    %cst_84 = arith.constant 1.000000e+00 : f32
    %354 = vector.broadcast %cst_84 : f32 to vector<2x128xf32>
    %355 = arith.addf %354, %353 : vector<2x128xf32>
    %356 = arith.divf %354, %355 : vector<2x128xf32>
    %357 = vector.extract_strided_slice %344 {offsets = [0, 256], sizes = [2, 128], strides = [1, 1]} : vector<2x512xf32> to vector<2x128xf32>
    %358 = math.tanh %357 : vector<2x128xf32>
    %359 = vector.extract_strided_slice %344 {offsets = [0, 384], sizes = [2, 128], strides = [1, 1]} : vector<2x512xf32> to vector<2x128xf32>
    %360 = arith.negf %359 : vector<2x128xf32>
    %361 = math.exp %360 : vector<2x128xf32>
    %cst_85 = arith.constant 1.000000e+00 : f32
    %362 = vector.broadcast %cst_85 : f32 to vector<2x128xf32>
    %363 = arith.addf %362, %361 : vector<2x128xf32>
    %364 = arith.divf %362, %363 : vector<2x128xf32>
    %365 = arith.mulf %356, %339 : vector<2x128xf32>
    %366 = arith.mulf %350, %358 : vector<2x128xf32>
    %367 = arith.addf %365, %366 : vector<2x128xf32>
    %368 = math.tanh %367 : vector<2x128xf32>
    %369 = arith.mulf %364, %368 : vector<2x128xf32>
    %370 = vector.extract_strided_slice %253 {offsets = [8, 0], sizes = [2, 512], strides = [1, 1]} : vector<16x512xf32> to vector<2x512xf32>
    %cst_86 = arith.constant dense<0.000000e+00> : vector<2x512xf32>
    %371 = tpu.matmul %369, %255, %cst_86 {dimension_numbers = #tpu.dot_dimension_numbers<[1], [0], [0], [1], [0, 0, 1, 1], [], []>} : vector<2x128xf32>, vector<128x512xf32>, vector<2x512xf32> -> vector<2x512xf32>
    %372 = arith.addf %370, %371 : vector<2x512xf32>
    %373 = vector.extract_strided_slice %372 {offsets = [0, 0], sizes = [2, 128], strides = [1, 1]} : vector<2x512xf32> to vector<2x128xf32>
    %374 = arith.negf %373 : vector<2x128xf32>
    %375 = math.exp %374 : vector<2x128xf32>
    %cst_87 = arith.constant 1.000000e+00 : f32
    %376 = vector.broadcast %cst_87 : f32 to vector<2x128xf32>
    %377 = arith.addf %376, %375 : vector<2x128xf32>
    %378 = arith.divf %376, %377 : vector<2x128xf32>
    %379 = vector.extract_strided_slice %372 {offsets = [0, 128], sizes = [2, 128], strides = [1, 1]} : vector<2x512xf32> to vector<2x128xf32>
    %380 = arith.negf %379 : vector<2x128xf32>
    %381 = math.exp %380 : vector<2x128xf32>
    %cst_88 = arith.constant 1.000000e+00 : f32
    %382 = vector.broadcast %cst_88 : f32 to vector<2x128xf32>
    %383 = arith.addf %382, %381 : vector<2x128xf32>
    %384 = arith.divf %382, %383 : vector<2x128xf32>
    %385 = vector.extract_strided_slice %372 {offsets = [0, 256], sizes = [2, 128], strides = [1, 1]} : vector<2x512xf32> to vector<2x128xf32>
    %386 = math.tanh %385 : vector<2x128xf32>
    %387 = vector.extract_strided_slice %372 {offsets = [0, 384], sizes = [2, 128], strides = [1, 1]} : vector<2x512xf32> to vector<2x128xf32>
    %388 = arith.negf %387 : vector<2x128xf32>
    %389 = math.exp %388 : vector<2x128xf32>
    %cst_89 = arith.constant 1.000000e+00 : f32
    %390 = vector.broadcast %cst_89 : f32 to vector<2x128xf32>
    %391 = arith.addf %390, %389 : vector<2x128xf32>
    %392 = arith.divf %390, %391 : vector<2x128xf32>
    %393 = arith.mulf %384, %367 : vector<2x128xf32>
    %394 = arith.mulf %378, %386 : vector<2x128xf32>
    %395 = arith.addf %393, %394 : vector<2x128xf32>
    %396 = math.tanh %395 : vector<2x128xf32>
    %397 = arith.mulf %392, %396 : vector<2x128xf32>
    %398 = vector.extract_strided_slice %253 {offsets = [10, 0], sizes = [2, 512], strides = [1, 1]} : vector<16x512xf32> to vector<2x512xf32>
    %cst_90 = arith.constant dense<0.000000e+00> : vector<2x512xf32>
    %399 = tpu.matmul %397, %255, %cst_90 {dimension_numbers = #tpu.dot_dimension_numbers<[1], [0], [0], [1], [0, 0, 1, 1], [], []>} : vector<2x128xf32>, vector<128x512xf32>, vector<2x512xf32> -> vector<2x512xf32>
    %400 = arith.addf %398, %399 : vector<2x512xf32>
    %401 = vector.extract_strided_slice %400 {offsets = [0, 0], sizes = [2, 128], strides = [1, 1]} : vector<2x512xf32> to vector<2x128xf32>
    %402 = arith.negf %401 : vector<2x128xf32>
    %403 = math.exp %402 : vector<2x128xf32>
    %cst_91 = arith.constant 1.000000e+00 : f32
    %404 = vector.broadcast %cst_91 : f32 to vector<2x128xf32>
    %405 = arith.addf %404, %403 : vector<2x128xf32>
    %406 = arith.divf %404, %405 : vector<2x128xf32>
    %407 = vector.extract_strided_slice %400 {offsets = [0, 128], sizes = [2, 128], strides = [1, 1]} : vector<2x512xf32> to vector<2x128xf32>
    %408 = arith.negf %407 : vector<2x128xf32>
    %409 = math.exp %408 : vector<2x128xf32>
    %cst_92 = arith.constant 1.000000e+00 : f32
    %410 = vector.broadcast %cst_92 : f32 to vector<2x128xf32>
    %411 = arith.addf %410, %409 : vector<2x128xf32>
    %412 = arith.divf %410, %411 : vector<2x128xf32>
    %413 = vector.extract_strided_slice %400 {offsets = [0, 256], sizes = [2, 128], strides = [1, 1]} : vector<2x512xf32> to vector<2x128xf32>
    %414 = math.tanh %413 : vector<2x128xf32>
    %415 = vector.extract_strided_slice %400 {offsets = [0, 384], sizes = [2, 128], strides = [1, 1]} : vector<2x512xf32> to vector<2x128xf32>
    %416 = arith.negf %415 : vector<2x128xf32>
    %417 = math.exp %416 : vector<2x128xf32>
    %cst_93 = arith.constant 1.000000e+00 : f32
    %418 = vector.broadcast %cst_93 : f32 to vector<2x128xf32>
    %419 = arith.addf %418, %417 : vector<2x128xf32>
    %420 = arith.divf %418, %419 : vector<2x128xf32>
    %421 = arith.mulf %412, %395 : vector<2x128xf32>
    %422 = arith.mulf %406, %414 : vector<2x128xf32>
    %423 = arith.addf %421, %422 : vector<2x128xf32>
    %424 = math.tanh %423 : vector<2x128xf32>
    %425 = arith.mulf %420, %424 : vector<2x128xf32>
    %426 = vector.extract_strided_slice %253 {offsets = [12, 0], sizes = [2, 512], strides = [1, 1]} : vector<16x512xf32> to vector<2x512xf32>
    %cst_94 = arith.constant dense<0.000000e+00> : vector<2x512xf32>
    %427 = tpu.matmul %425, %255, %cst_94 {dimension_numbers = #tpu.dot_dimension_numbers<[1], [0], [0], [1], [0, 0, 1, 1], [], []>} : vector<2x128xf32>, vector<128x512xf32>, vector<2x512xf32> -> vector<2x512xf32>
    %428 = arith.addf %426, %427 : vector<2x512xf32>
    %429 = vector.extract_strided_slice %428 {offsets = [0, 0], sizes = [2, 128], strides = [1, 1]} : vector<2x512xf32> to vector<2x128xf32>
    %430 = arith.negf %429 : vector<2x128xf32>
    %431 = math.exp %430 : vector<2x128xf32>
    %cst_95 = arith.constant 1.000000e+00 : f32
    %432 = vector.broadcast %cst_95 : f32 to vector<2x128xf32>
    %433 = arith.addf %432, %431 : vector<2x128xf32>
    %434 = arith.divf %432, %433 : vector<2x128xf32>
    %435 = vector.extract_strided_slice %428 {offsets = [0, 128], sizes = [2, 128], strides = [1, 1]} : vector<2x512xf32> to vector<2x128xf32>
    %436 = arith.negf %435 : vector<2x128xf32>
    %437 = math.exp %436 : vector<2x128xf32>
    %cst_96 = arith.constant 1.000000e+00 : f32
    %438 = vector.broadcast %cst_96 : f32 to vector<2x128xf32>
    %439 = arith.addf %438, %437 : vector<2x128xf32>
    %440 = arith.divf %438, %439 : vector<2x128xf32>
    %441 = vector.extract_strided_slice %428 {offsets = [0, 256], sizes = [2, 128], strides = [1, 1]} : vector<2x512xf32> to vector<2x128xf32>
    %442 = math.tanh %441 : vector<2x128xf32>
    %443 = vector.extract_strided_slice %428 {offsets = [0, 384], sizes = [2, 128], strides = [1, 1]} : vector<2x512xf32> to vector<2x128xf32>
    %444 = arith.negf %443 : vector<2x128xf32>
    %445 = math.exp %444 : vector<2x128xf32>
    %cst_97 = arith.constant 1.000000e+00 : f32
    %446 = vector.broadcast %cst_97 : f32 to vector<2x128xf32>
    %447 = arith.addf %446, %445 : vector<2x128xf32>
    %448 = arith.divf %446, %447 : vector<2x128xf32>
    %449 = arith.mulf %440, %423 : vector<2x128xf32>
    %450 = arith.mulf %434, %442 : vector<2x128xf32>
    %451 = arith.addf %449, %450 : vector<2x128xf32>
    %452 = math.tanh %451 : vector<2x128xf32>
    %453 = arith.mulf %448, %452 : vector<2x128xf32>
    %454 = vector.extract_strided_slice %253 {offsets = [14, 0], sizes = [2, 512], strides = [1, 1]} : vector<16x512xf32> to vector<2x512xf32>
    %cst_98 = arith.constant dense<0.000000e+00> : vector<2x512xf32>
    %455 = tpu.matmul %453, %255, %cst_98 {dimension_numbers = #tpu.dot_dimension_numbers<[1], [0], [0], [1], [0, 0, 1, 1], [], []>} : vector<2x128xf32>, vector<128x512xf32>, vector<2x512xf32> -> vector<2x512xf32>
    %456 = arith.addf %454, %455 : vector<2x512xf32>
    %457 = vector.extract_strided_slice %456 {offsets = [0, 0], sizes = [2, 128], strides = [1, 1]} : vector<2x512xf32> to vector<2x128xf32>
    %458 = arith.negf %457 : vector<2x128xf32>
    %459 = math.exp %458 : vector<2x128xf32>
    %cst_99 = arith.constant 1.000000e+00 : f32
    %460 = vector.broadcast %cst_99 : f32 to vector<2x128xf32>
    %461 = arith.addf %460, %459 : vector<2x128xf32>
    %462 = arith.divf %460, %461 : vector<2x128xf32>
    %463 = vector.extract_strided_slice %456 {offsets = [0, 128], sizes = [2, 128], strides = [1, 1]} : vector<2x512xf32> to vector<2x128xf32>
    %464 = arith.negf %463 : vector<2x128xf32>
    %465 = math.exp %464 : vector<2x128xf32>
    %cst_100 = arith.constant 1.000000e+00 : f32
    %466 = vector.broadcast %cst_100 : f32 to vector<2x128xf32>
    %467 = arith.addf %466, %465 : vector<2x128xf32>
    %468 = arith.divf %466, %467 : vector<2x128xf32>
    %469 = vector.extract_strided_slice %456 {offsets = [0, 256], sizes = [2, 128], strides = [1, 1]} : vector<2x512xf32> to vector<2x128xf32>
    %470 = math.tanh %469 : vector<2x128xf32>
    %471 = vector.extract_strided_slice %456 {offsets = [0, 384], sizes = [2, 128], strides = [1, 1]} : vector<2x512xf32> to vector<2x128xf32>
    %472 = arith.negf %471 : vector<2x128xf32>
    %473 = math.exp %472 : vector<2x128xf32>
    %cst_101 = arith.constant 1.000000e+00 : f32
    %474 = vector.broadcast %cst_101 : f32 to vector<2x128xf32>
    %475 = arith.addf %474, %473 : vector<2x128xf32>
    %476 = arith.divf %474, %475 : vector<2x128xf32>
    %477 = arith.mulf %468, %451 : vector<2x128xf32>
    %478 = arith.mulf %462, %470 : vector<2x128xf32>
    %479 = arith.addf %477, %478 : vector<2x128xf32>
    %480 = math.tanh %479 : vector<2x128xf32>
    %481 = arith.mulf %476, %480 : vector<2x128xf32>
    %c0_102 = arith.constant 0 : index
    %c0_103 = arith.constant 0 : index
    %482 = vector.load %arg5[%c0_102, %c0_103] : memref<128x128xf32, #tpu.memory_space<vmem>>, vector<128x128xf32>
    %cst_104 = arith.constant dense<0.000000e+00> : vector<2x128xf32>
    %483 = tpu.matmul %481, %482, %cst_104 {dimension_numbers = #tpu.dot_dimension_numbers<[1], [0], [0], [1], [0, 0, 1, 1], [], []>} : vector<2x128xf32>, vector<128x128xf32>, vector<2x128xf32> -> vector<2x128xf32>
    %c0_105 = arith.constant 0 : index
    %c0_106 = arith.constant 0 : index
    %484 = vector.load %arg6[%c0_105, %c0_106] : memref<1x128xf32, #tpu.memory_space<vmem>>, vector<1x128xf32>
    %485 = vector.broadcast %484 : vector<1x128xf32> to vector<2x128xf32>
    %486 = arith.addf %483, %485 : vector<2x128xf32>
    %c0_107 = arith.constant 0 : index
    %c0_108 = arith.constant 0 : index
    %487 = vector.load %arg7[%c0_107, %c0_108] : memref<2x128xf32, #tpu.memory_space<vmem>>, vector<2x128xf32>
    tpu.vector_store %arg7[%c0_107, %c0_108], %486 {strides = array<i32>} : memref<2x128xf32, #tpu.memory_space<vmem>>, vector<2x128xf32>,
    return
  }
  func.func @transform_0(%arg0: i32) -> (i32, i32) {
    %c0_i32 = arith.constant 0 : i32
    %c0_i32_0 = arith.constant 0 : i32
    %c0_i32_1 = arith.constant 0 : i32
    return %c0_i32, %c0_i32_0 : i32, i32
  }
  func.func @transform_1(%arg0: i32) -> (i32, i32, i32) {
    %c0_i32 = arith.constant 0 : i32
    %c0_i32_0 = arith.constant 0 : i32
    %c0_i32_1 = arith.constant 0 : i32
    %c0_i32_2 = arith.constant 0 : i32
    return %c0_i32, %c0_i32_0, %c0_i32_1 : i32, i32, i32
  }
  func.func @transform_2(%arg0: i32) -> (i32, i32, i32) {
    %c0_i32 = arith.constant 0 : i32
    %c0_i32_0 = arith.constant 0 : i32
    %c0_i32_1 = arith.constant 0 : i32
    %c0_i32_2 = arith.constant 0 : i32
    return %c0_i32, %c0_i32_0, %c0_i32_1 : i32, i32, i32
  }
  func.func @transform_3(%arg0: i32) -> (i32, i32, i32) {
    %c0_i32 = arith.constant 0 : i32
    %c0_i32_0 = arith.constant 0 : i32
    %c0_i32_1 = arith.constant 0 : i32
    %c0_i32_2 = arith.constant 0 : i32
    return %c0_i32, %c0_i32_0, %c0_i32_1 : i32, i32, i32
  }
  func.func @transform_4(%arg0: i32) -> (i32, i32) {
    %c0_i32 = arith.constant 0 : i32
    %c0_i32_0 = arith.constant 0 : i32
    %c0_i32_1 = arith.constant 0 : i32
    return %c0_i32, %c0_i32_0 : i32, i32
  }
  func.func @transform_5(%arg0: i32) -> (i32, i32) {
    %c0_i32 = arith.constant 0 : i32
    %c0_i32_0 = arith.constant 0 : i32
    %c0_i32_1 = arith.constant 0 : i32
    return %c0_i32, %c0_i32_0 : i32, i32
  }
  func.func @transform_6(%arg0: i32) -> (i32, i32) {
    %c0_i32 = arith.constant 0 : i32
    %c0_i32_0 = arith.constant 0 : i32
    %c0_i32_1 = arith.constant 0 : i32
    return %c0_i32, %c0_i32_0 : i32, i32
  }
}

</mosaic_0001>

<bundles_post_ra>
// kernel: tpu_custom_call.1
= control target key start
LH: loop header
LB: loop body
LE: loop exit
PB: predicated region body
PF: predicated region fallthrough
CT: control target
= control target key end

     0   :  { %11 = vsyncpa [#allocation4], 0  ;;  %s6448_s0 = inlined_call_operand.hbm [shape: f32[16,128], index: 0, kind: input, shape index: {}]   ;;  %s6449_s1 = inlined_call_operand.hbm [shape: f32[2,128,512], index: 1, kind: input, shape index: {}]   ;;  %s6450_s2 = inlined_call_operand.hbm [shape: f32[2,128,512], index: 2, kind: input, shape index: {}]   ;;  %s6451_s3 = inlined_call_operand.vmem [shape: f32[2,1,512], index: 3, kind: input, shape index: {}]   ;;  %s6452_s4 = inlined_call_operand.hbm [shape: f32[128,128], index: 4, kind: input, shape index: {}]   ;;  %s6453_s5 = inlined_call_operand.vmem [shape: f32[1,128], index: 5, kind: input, shape index: {}]   ;;  %s6454_s6 = inlined_call_operand.hbm [shape: f32[2,128], index: 6, kind: output, shape index: {}]  }
   0x1   :  { %12 = vsyncpa [#allocation7], 0 }
   0x2   :  { %13 = vsyncpa [#allocation10], 0 }
   0x3   :  { %14 = vsyncpa [#allocation5], 0  ;;  %s5420_s21 = smov [#allocation6]   ;;  %s5302_s25 = scalar_lea.hbm %s6449_s1, 16384 }
   0x4   :  { %s32_s22 = sshll.u32 %s5420_s21, 4  ;;  %p5303_p0 = scmp.ne.s32.totalorder %s6449_s1, %s5302_s25  ;;  %s33_s22 = int_to_ptr.vmem [resolvable:$true] %s32_s22 }
   0x5   :  { %p5306_p1 = scmp.lt.u32.totalorder %s5302_s25, %s6449_s1 }
   0x7   :  { %p5308_p2 = pnand %p5306_p1, %p5303_p0 }
   0x9   :  { %5311 = shalt.err (!%p5308_p2)
}
   0xa   :  { %s5312_s30 = scalar_lea.vmem %s33_s22, 16384  ;;  %p5317_p4 = scmp.lt.s32.totalorder %s33_s22, %s33_s22 }
   0xb   :  { %p5313_p3 = scmp.ne.s32.totalorder %s33_s22, %s5312_s30  ;;  %p5318_p5 = scmp.lt.s32.totalorder %s5312_s30, %s5312_s30 }
   0xd   :  { %p5319_p6 = por %p5318_p5, %p5317_p4 }
   0xf   :  { %p5320_p7 = pnand %p5319_p6, %p5313_p3 }
  0x11   :  { %5323 = shalt.err (!%p5320_p7)
}
  0x12   :  { %s5421_s7 = smov 512   ;;  %s5422_s8 = smov 32  }
  0x13   :  { %38 = dma.hbm_to_vmem [thread:$0]  %s6449_s1, 16384, %s33_s22, [#allocation7], %s5421_s7, %s5421_s7, %s5422_s8  }
  0x14   :  { %s5423_s11 = smov [#allocation3]   ;;  %s5324_s15 = scalar_lea.hbm %s6448_s0, 256 }
  0x15   :  { %s20_s12 = sshll.u32 %s5423_s11, 4  ;;  %p5325_p8 = scmp.ne.s32.totalorder %s6448_s0, %s5324_s15  ;;  %s21_s12 = int_to_ptr.vmem [resolvable:$true] %s20_s12 }
  0x16   :  { %p5328_p9 = scmp.lt.u32.totalorder %s5324_s15, %s6448_s0 }
  0x18   :  { %p5330_p10 = pnand %p5328_p9, %p5325_p8 }
  0x1a   :  { %5333 = shalt.err (!%p5330_p10)
}
  0x1b   :  { %s5334_s20 = scalar_lea.vmem %s21_s12, 256  ;;  %p5339_p12 = scmp.lt.s32.totalorder %s21_s12, %s21_s12 }
  0x1c   :  { %p5335_p11 = scmp.ne.s32.totalorder %s21_s12, %s5334_s20  ;;  %p5340_p13 = scmp.lt.s32.totalorder %s5334_s20, %s5334_s20 }
  0x1e   :  { %p5341_p0 = por %p5340_p13, %p5339_p12 }
  0x20   :  { %p5342_p1 = pnand %p5341_p0, %p5335_p11 }
  0x22   :  { %5345 = shalt.err (!%p5342_p1)
}
  0x23   :  { %s5424_s1 = smov 128   ;;  %s5425_s21 = smov 8  }
  0x24   :  { %26 = dma.hbm_to_vmem [thread:$0]  %s6448_s0, 256, %s21_s12, [#allocation4], %s5424_s1, %s5424_s1, %s5425_s21  }
  0x25   :  { %s5426_s24 = smov [#allocation8]   ;;  %s5427_s26 = smov [#allocation9]  }
  0x26   :  { %s44_s25 = sshll.u32 %s5426_s24, 4  ;;  %s58_s27 = sshll.u32 %s5427_s26, 4  ;;  %s45_s25 = int_to_ptr.vmem [resolvable:$true] %s44_s25  ;;  %s5497_s27 = int_to_ptr.vmem [resolvable:$true] %s58_s27 }
  0x27   :  { %s5346_s30 = scalar_lea.hbm %s6450_s2, 16384 }
  0x28   :  { %p5347_p2 = scmp.ne.s32.totalorder %s6450_s2, %s5346_s30  ;;  %p5350_p3 = scmp.lt.u32.totalorder %s5346_s30, %s6450_s2 }
  0x2a   :  { %p5352_p4 = pnand %p5350_p3, %p5347_p2 }
  0x2c   :  { %5355 = shalt.err (!%p5352_p4)
}
  0x2d   :  { %s5356_s0 = scalar_lea.vmem %s45_s25, 16384  ;;  %p5361_p6 = scmp.lt.s32.totalorder %s45_s25, %s45_s25 }
  0x2e   :  { %p5357_p5 = scmp.ne.s32.totalorder %s45_s25, %s5356_s0  ;;  %p5362_p7 = scmp.lt.s32.totalorder %s5356_s0, %s5356_s0 }
  0x30   :  { %p5363_p8 = por %p5362_p7, %p5361_p6 }
  0x32   :  { %p5364_p9 = pnand %p5363_p8, %p5357_p5 }
  0x34   :  { %5367 = shalt.err (!%p5364_p9)
}
  0x35   :  { %50 = dma.hbm_to_vmem [thread:$0]  %s6450_s2, 16384, %s45_s25, [#allocation7], %s5421_s7, %s5421_s7, %s5422_s8  }
  0x36   :  { %s5368_s17 = scalar_lea.hbm %s6452_s4, 2048 }
  0x37   :  { %p5369_p10 = scmp.ne.s32.totalorder %s6452_s4, %s5368_s17  ;;  %p5372_p11 = scmp.lt.u32.totalorder %s5368_s17, %s6452_s4 }
  0x39   :  { %p5374_p12 = pnand %p5372_p11, %p5369_p10 }
  0x3b   :  { %5377 = shalt.err (!%p5374_p12)
}
  0x3c   :  { %s5378_s23 = scalar_lea.vmem %s5497_s27, 2048  ;;  %p5383_p0 = scmp.lt.s32.totalorder %s5497_s27, %s5497_s27 }
  0x3d   :  { %p5379_p13 = scmp.ne.s32.totalorder %s5497_s27, %s5378_s23  ;;  %p5384_p1 = scmp.lt.s32.totalorder %s5378_s23, %s5378_s23 }
  0x3f   :  { %p5385_p2 = por %p5384_p1, %p5383_p0 }
  0x41   :  { %p5386_p3 = pnand %p5385_p2, %p5379_p13 }
  0x43   :  { %5389 = shalt.err (!%p5386_p3)
}
  0x44   :  { %64 = dma.hbm_to_vmem [thread:$0]  %s6452_s4, 2048, %s5497_s27, [#allocation10], %s5424_s1, %s5424_s1, %s5425_s21  }
  0x45   :  { %5412 = dma.done.wait [#allocation4], 256  }
  0x46   :  { %5413 = vsyncadd [#allocation4], 4294967040 }
  0x47   :  { %5414 = dma.done.wait [#allocation7], 32768  }
  0x48   :  { %5415 = vsyncadd [#allocation7], 4294934528 }
  0x49   :  { %5416 = dma.done.wait [#allocation10], 2048  }
  0x4a   :  { %5417 = vsyncadd [#allocation10], 4294965248  ;;  %v5428_v0 = vmov 0.0   ;;  %v86_v1 = vld [vmem:[#allocation6 + $0x8] sm:$0xff]  ;;  %v88_v3 = vld [vmem:[#allocation6 + $0x18] sm:$0xff]  ;;  %vm5430_vm0 = vmmov 0  }
  0x4b   :  { %235 = vmatprep.mubr.f32.mxu0 %v5428_v0  ;;  %312 = vmatprep.mubr.f32.mxu1 %v5428_v0  ;;  %v90_v2 = vld [vmem:[#allocation6 + $0x28] sm:$0xff]  ;;  %v92_v5 = vld [vmem:[#allocation6 + $0x38] sm:$0xff]  ;;  %v85_v6 = vld [vmem:[#allocation6] sm:$0xff]  ;;  %s5431_s25 = smov [#allocation11]  }
  0x4c   :  { %v3858_v4 = vpack.c.bf16 %v90_v2, %v86_v1  ;;  %v89_v7 = vld [vmem:[#allocation6 + $0x20] sm:$0xff]  ;;  %v3890_v8 = vpack.c.bf16 %v92_v5, %v88_v3  ;;  %v87_v10 = vld [vmem:[#allocation6 + $0x10] sm:$0xff]  ;;  %v94_v12 = vld [vmem:[#allocation6 + $0x48] sm:$0xff]  ;;  %s3745_s26 = sshll.u32 %s5431_s25, 4  ;;  %s3746_s26 = int_to_ptr.vmem [resolvable:$true] %s3745_s26 }
  0x4d   :  { %v3860_v9 = vpack.c.bf16 %v89_v7, %v85_v6  ;;  %v91_v11 = vld [vmem:[#allocation6 + $0x30] sm:$0xff]  ;;  %v98_v14 = vld [vmem:[#allocation6 + $0x68] sm:$0xff]  ;;  %v96_v15 = vld [vmem:[#allocation6 + $0x58] sm:$0xff]  ;;  %s5390_s27 = scalar_lea.vmem %s3746_s26, 32  ;;  %p5395_p5 = scmp.lt.s32.totalorder %s3746_s26, %s3746_s26 }
  0x4e   :  { %3859 = vmatprep.subr.bf16.mxu0 %v3858_v4  ;;  %v3892_v13 = vpack.c.bf16 %v91_v11, %v87_v10  ;;  %v100_v16 = vld [vmem:[#allocation6 + $0x78] sm:$0xff]  ;;  %3891 = vmatprep.subr.bf16.mxu1 %v3890_v8  ;;  %v3862_v17 = vpack.c.bf16 %v98_v14, %v94_v12  ;;  %v93_v19 = vld [vmem:[#allocation6 + $0x40] sm:$0xff]  ;;  %v95_v21 = vld [vmem:[#allocation6 + $0x50] sm:$0xff]  ;;  %p5391_p4 = scmp.ne.s32.totalorder %s3746_s26, %s5390_s27  ;;  %p5396_p6 = scmp.lt.s32.totalorder %s5390_s27, %s5390_s27 }
  0x4f   :  { %3861 = vmatpush1.bf16.msra.mxu0 %v3860_v9  ;;  %v3894_v18 = vpack.c.bf16 %v100_v16, %v96_v15  ;;  %v97_v20 = vld [vmem:[#allocation6 + $0x60] sm:$0xff]  ;;  %v99_v23 = vld [vmem:[#allocation6 + $0x70] sm:$0xff]  ;;  %v102_v24 = vld [vmem:[#allocation6 + $0x88] sm:$0xff] }
  0x50   :  { %3893 = vmatpush1.bf16.msra.mxu1 %v3892_v13  ;;  %v3864_v22 = vpack.c.bf16 %v97_v20, %v93_v19  ;;  %v106_v25 = vld [vmem:[#allocation6 + $0xa8] sm:$0xff]  ;;  %3863 = vmatprep.subr.bf16.mxu0 %v3862_v17  ;;  %v3896_v26 = vpack.c.bf16 %v99_v23, %v95_v21  ;;  %v104_v28 = vld [vmem:[#allocation6 + $0x98] sm:$0xff]  ;;  %v101_v30 = vld [vmem:[#allocation6 + $0x80] sm:$0xff]  ;;  %p5397_p7 = por %p5396_p6, %p5395_p5 }
  0x51   :  { %3895 = vmatprep.subr.bf16.mxu1 %v3894_v18  ;;  %v3866_v27 = vpack.c.bf16 %v106_v25, %v102_v24  ;;  %v108_v29 = vld [vmem:[#allocation6 + $0xb8] sm:$0xff]  ;;  %v105_v32 = vld [vmem:[#allocation6 + $0xa0] sm:$0xff]  ;;  %v103_v33 = vld [vmem:[#allocation6 + $0x90] sm:$0xff] }
  0x52   :  { %v3898_v31 = vpack.c.bf16 %v108_v29, %v104_v28  ;;  %v107_v34 = vld [vmem:[#allocation6 + $0xb0] sm:$0xff]  ;;  %v3868_v35 = vpack.c.bf16 %v105_v32, %v101_v30  ;;  %v110_v36 = vld [vmem:[#allocation6 + $0xc8] sm:$0xff]  ;;  %v112_v38 = vld [vmem:[#allocation6 + $0xd8] sm:$0xff]  ;;  %p5398_p8 = pnand %p5397_p7, %p5391_p4 }
  0x53   :  { %3865 = vmatpush1.bf16.msra.mxu0 %v3864_v22  ;;  %v114_v37 = vld [vmem:[#allocation6 + $0xe8] sm:$0xff]  ;;  %v3900_v39 = vpack.c.bf16 %v107_v34, %v103_v33  ;;  %v116_v41 = vld [vmem:[#allocation6 + $0xf8] sm:$0xff]  ;;  %v109_v42 = vld [vmem:[#allocation6 + $0xc0] sm:$0xff] }
  0x54   :  { %3897 = vmatpush1.bf16.msra.mxu1 %v3896_v26  ;;  %3867 = vmatprep.subr.bf16.mxu0 %v3866_v27  ;;  %v3870_v40 = vpack.c.bf16 %v114_v37, %v110_v36  ;;  %v113_v43 = vld [vmem:[#allocation6 + $0xe0] sm:$0xff]  ;;  %v3902_v44 = vpack.c.bf16 %v116_v41, %v112_v38  ;;  %v111_v45 = vld [vmem:[#allocation6 + $0xd0] sm:$0xff]  ;;  %v118_v47 = vld [vmem:[#allocation6 + $0x108] sm:$0xff] }
  0x55   :  { %3899 = vmatprep.subr.bf16.mxu1 %v3898_v31  ;;  %v115_v46 = vld [vmem:[#allocation6 + $0xf0] sm:$0xff]  ;;  %v122_v48 = vld [vmem:[#allocation6 + $0x128] sm:$0xff]  ;;  %v120_v49 = vld [vmem:[#allocation6 + $0x118] sm:$0xff]  ;;  %v3872_v51 = vpack.c.bf16 %v113_v43, %v109_v42 }
  0x56   :  { %v124_v50 = vld [vmem:[#allocation6 + $0x138] sm:$0xff]  ;;  %v3904_v52 = vpack.c.bf16 %v115_v46, %v111_v45  ;;  %v3874_v53 = vpack.c.bf16 %v122_v48, %v118_v47  ;;  %v117_v54 = vld [vmem:[#allocation6 + $0x100] sm:$0xff]  ;;  %v119_v56 = vld [vmem:[#allocation6 + $0x110] sm:$0xff] }
  0x57   :  { %3869 = vmatpush1.bf16.msra.mxu0 %v3868_v35  ;;  %v121_v55 = vld [vmem:[#allocation6 + $0x120] sm:$0xff]  ;;  %v3906_v57 = vpack.c.bf16 %v124_v50, %v120_v49  ;;  %v123_v58 = vld [vmem:[#allocation6 + $0x130] sm:$0xff]  ;;  %v126_v59 = vld [vmem:[#allocation6 + $0x148] sm:$0xff] }
  0x58   :  { %3901 = vmatpush1.bf16.msra.mxu1 %v3900_v39  ;;  %3871 = vmatprep.subr.bf16.mxu0 %v3870_v40  ;;  %v130_v60 = vld [vmem:[#allocation6 + $0x168] sm:$0xff]  ;;  %v128_v61 = vld [vmem:[#allocation6 + $0x158] sm:$0xff]  ;;  %v3876_v63 = vpack.c.bf16 %v121_v55, %v117_v54  ;;  %v3908_v1 = vpack.c.bf16 %v123_v58, %v119_v56  ;;  %v125_v3 = vld [vmem:[#allocation6 + $0x140] sm:$0xff] }
  0x59   :  { %3903 = vmatprep.subr.bf16.mxu1 %v3902_v44  ;;  %v132_v62 = vld [vmem:[#allocation6 + $0x178] sm:$0xff]  ;;  %v3878_v2 = vpack.c.bf16 %v130_v60, %v126_v59  ;;  %v129_v4 = vld [vmem:[#allocation6 + $0x160] sm:$0xff]  ;;  %v127_v5 = vld [vmem:[#allocation6 + $0x150] sm:$0xff] }
  0x5a   :  { %v3910_v6 = vpack.c.bf16 %v132_v62, %v128_v61  ;;  %v131_v7 = vld [vmem:[#allocation6 + $0x170] sm:$0xff]  ;;  %v134_v8 = vld [vmem:[#allocation6 + $0x188] sm:$0xff]  ;;  %v136_v10 = vld [vmem:[#allocation6 + $0x198] sm:$0xff]  ;;  %v3880_v12 = vpack.c.bf16 %v129_v4, %v125_v3 }
  0x5b   :  { %3873 = vmatpush1.bf16.msra.mxu0 %v3872_v51  ;;  %v138_v9 = vld [vmem:[#allocation6 + $0x1a8] sm:$0xff]  ;;  %v140_v11 = vld [vmem:[#allocation6 + $0x1b8] sm:$0xff]  ;;  %v133_v13 = vld [vmem:[#allocation6 + $0x180] sm:$0xff]  ;;  %v3912_v14 = vpack.c.bf16 %v131_v7, %v127_v5 }
  0x5c   :  { %3905 = vmatpush1.bf16.msra.mxu1 %v3904_v52  ;;  %3875 = vmatprep.subr.bf16.mxu0 %v3874_v53  ;;  %v3882_v15 = vpack.c.bf16 %v138_v9, %v134_v8  ;;  %v137_v16 = vld [vmem:[#allocation6 + $0x1a0] sm:$0xff]  ;;  %v135_v17 = vld [vmem:[#allocation6 + $0x190] sm:$0xff]  ;;  %v3914_v19 = vpack.c.bf16 %v140_v11, %v136_v10  ;;  %v142_v21 = vld [vmem:[#allocation6 + $0x1c8] sm:$0xff] }
  0x5d   :  { %3907 = vmatprep.subr.bf16.mxu1 %v3906_v57  ;;  %v79_v18 = vld [vmem:[#allocation3] sm:$0xff]  ;;  %v146_v22 = vld [vmem:[#allocation6 + $0x1e8] sm:$0xff]  ;;  %v144_v23 = vld [vmem:[#allocation6 + $0x1d8] sm:$0xff]  ;;  %v3884_v25 = vpack.c.bf16 %v137_v16, %v133_v13 }
  0x5e   :  { %v139_v20 = vld [vmem:[#allocation6 + $0x1b0] sm:$0xff]  ;;  %81 = vst [vmem:[#allocation2] sm:$0xff] %v79_v18  ;;  %v148_v24 = vld [vmem:[#allocation6 + $0x1f8] sm:$0xff]  ;;  %v3886_v27 = vpack.c.bf16 %v146_v22, %v142_v21  ;;  %v141_v28 = vld [vmem:[#allocation6 + $0x1c0] sm:$0xff] }
  0x5f   :  { %3877 = vmatpush1.bf16.msra.mxu0 %v3876_v63  ;;  %v3916_v26 = vpack.c.bf16 %v139_v20, %v135_v17  ;;  %v145_v29 = vld [vmem:[#allocation6 + $0x1e0] sm:$0xff]  ;;  %v143_v30 = vld [vmem:[#allocation6 + $0x1d0] sm:$0xff]  ;;  %v3918_v31 = vpack.c.bf16 %v148_v24, %v144_v23  ;;  %v326_v33 = vld [vmem:[#allocation8 + $0x8] sm:$0xff] }
  0x60   :  { %3909 = vmatpush1.bf16.msra.mxu1 %v3908_v1  ;;  %3879 = vmatprep.subr.bf16.mxu0 %v3878_v2  ;;  %v147_v32 = vld [vmem:[#allocation6 + $0x1f0] sm:$0xff]  ;;  %v330_v34 = vld [vmem:[#allocation8 + $0x28] sm:$0xff]  ;;  %v328_v35 = vld [vmem:[#allocation8 + $0x18] sm:$0xff]  ;;  %v3888_v37 = vpack.c.bf16 %v145_v29, %v141_v28 }
  0x61   :  { %3911 = vmatprep.subr.bf16.mxu1 %v3910_v6  ;;  %v332_v36 = vld [vmem:[#allocation8 + $0x38] sm:$0xff]  ;;  %v3920_v38 = vpack.c.bf16 %v147_v32, %v143_v30  ;;  %v5536_v39 = vpack.c.bf16 %v330_v34, %v326_v33  ;;  %v325_v40 = vld [vmem:[#allocation8] sm:$0xff]  ;;  %v327_v42 = vld [vmem:[#allocation8 + $0x10] sm:$0xff] }
  0x62   :  { %v329_v41 = vld [vmem:[#allocation8 + $0x20] sm:$0xff]  ;;  %v5538_v43 = vpack.c.bf16 %v332_v36, %v328_v35  ;;  %v331_v44 = vld [vmem:[#allocation8 + $0x30] sm:$0xff]  ;;  %v334_v45 = vld [vmem:[#allocation8 + $0x48] sm:$0xff] }
  0x63   :  { %3881 = vmatpush1.bf16.msra.mxu0 %v3880_v12  ;;  %v338_v46 = vld [vmem:[#allocation8 + $0x68] sm:$0xff]  ;;  %v336_v47 = vld [vmem:[#allocation8 + $0x58] sm:$0xff]  ;;  %v5540_v49 = vpack.c.bf16 %v329_v41, %v325_v40  ;;  %v5543_v50 = vpack.c.bf16 %v331_v44, %v327_v42  ;;  %v333_v52 = vld [vmem:[#allocation8 + $0x40] sm:$0xff] }
  0x64   :  { %3913 = vmatpush1.bf16.msra.mxu1 %v3912_v14  ;;  %3883 = vmatprep.subr.bf16.mxu0 %v3882_v15  ;;  %v340_v48 = vld [vmem:[#allocation8 + $0x78] sm:$0xff]  ;;  %v5545_v51 = vpack.c.bf16 %v338_v46, %v334_v45  ;;  %v337_v53 = vld [vmem:[#allocation8 + $0x60] sm:$0xff]  ;;  %v335_v54 = vld [vmem:[#allocation8 + $0x50] sm:$0xff] }
  0x65   :  { %3915 = vmatprep.subr.bf16.mxu1 %v3914_v19  ;;  %v5548_v55 = vpack.c.bf16 %v340_v48, %v336_v47  ;;  %v339_v56 = vld [vmem:[#allocation8 + $0x70] sm:$0xff]  ;;  %v342_v57 = vld [vmem:[#allocation8 + $0x88] sm:$0xff]  ;;  %v344_v59 = vld [vmem:[#allocation8 + $0x98] sm:$0xff]  ;;  %v5551_v61 = vpack.c.bf16 %v337_v53, %v333_v52 }
  0x66   :  { %v346_v58 = vld [vmem:[#allocation8 + $0xa8] sm:$0xff]  ;;  %v348_v60 = vld [vmem:[#allocation8 + $0xb8] sm:$0xff]  ;;  %v5555_v62 = vpack.c.bf16 %v339_v56, %v335_v54  ;;  %v341_v1 = vld [vmem:[#allocation8 + $0x80] sm:$0xff] }
  0x67   :  { %3885 = vmatpush1.bf16.msra.mxu0 %v3884_v25  ;;  %v5557_v63 = vpack.c.bf16 %v346_v58, %v342_v57  ;;  %v345_v2 = vld [vmem:[#allocation8 + $0xa0] sm:$0xff]  ;;  %v343_v3 = vld [vmem:[#allocation8 + $0x90] sm:$0xff]  ;;  %v5560_v4 = vpack.c.bf16 %v348_v60, %v344_v59  ;;  %v350_v6 = vld [vmem:[#allocation8 + $0xc8] sm:$0xff] }
  0x68   :  { %3917 = vmatpush1.bf16.msra.mxu1 %v3916_v26  ;;  %3887 = vmatprep.subr.bf16.mxu0 %v3886_v27  ;;  %v347_v5 = vld [vmem:[#allocation8 + $0xb0] sm:$0xff]  ;;  %v354_v7 = vld [vmem:[#allocation8 + $0xe8] sm:$0xff]  ;;  %v352_v8 = vld [vmem:[#allocation8 + $0xd8] sm:$0xff]  ;;  %v5565_v10 = vpack.c.bf16 %v345_v2, %v341_v1 }
  0x69   :  { %3919 = vmatprep.subr.bf16.mxu1 %v3918_v31  ;;  %v356_v9 = vld [vmem:[#allocation8 + $0xf8] sm:$0xff]  ;;  %v5569_v12 = vpack.c.bf16 %v347_v5, %v343_v3  ;;  %v5571_v13 = vpack.c.bf16 %v354_v7, %v350_v6  ;;  %v349_v14 = vld [vmem:[#allocation8 + $0xc0] sm:$0xff]  ;;  %v351_v16 = vld [vmem:[#allocation8 + $0xd0] sm:$0xff] }
  0x6a   :  { %v80_v11 = vld [vmem:[#allocation3 + $0x8] sm:$0xff]  ;;  %v353_v15 = vld [vmem:[#allocation8 + $0xe0] sm:$0xff]  ;;  %v5574_v17 = vpack.c.bf16 %v356_v9, %v352_v8  ;;  %v358_v19 = vld [vmem:[#allocation8 + $0x108] sm:$0xff] }
  0x6b   :  { %3889 = vmatpush1.bf16.msra.mxu0 %v3888_v37  ;;  %82 = vst [vmem:[#allocation2 + $0x8] sm:$0xff] %v80_v11  ;;  %v362_v20 = vld [vmem:[#allocation8 + $0x128] sm:$0xff]  ;;  %v360_v21 = vld [vmem:[#allocation8 + $0x118] sm:$0xff]  ;;  %v5578_v23 = vpack.c.bf16 %v353_v15, %v349_v14  ;;  %v357_v26 = vld [vmem:[#allocation8 + $0x100] sm:$0xff] }
  0x6c   :  { %3921 = vmatpush1.bf16.msra.mxu1 %v3920_v38  ;;  %3923 = vmatprep.subr.bf16.mxu0 %v5536_v39  ;;  %v364_v22 = vld [vmem:[#allocation8 + $0x138] sm:$0xff]  ;;  %v5585_v25 = vpack.c.bf16 %v362_v20, %v358_v19  ;;  %v361_v27 = vld [vmem:[#allocation8 + $0x120] sm:$0xff]  ;;  %v359_v28 = vld [vmem:[#allocation8 + $0x110] sm:$0xff]  ;;  %v151_v20 = vlaneseq }
  0x6d   :  { %3955 = vmatprep.subr.bf16.mxu1 %v5538_v43  ;;  %v5588_v29 = vpack.c.bf16 %v364_v22, %v360_v21  ;;  %v363_v30 = vld [vmem:[#allocation8 + $0x130] sm:$0xff]  ;;  %v366_v31 = vld [vmem:[#allocation8 + $0x148] sm:$0xff]  ;;  %v368_v33 = vld [vmem:[#allocation8 + $0x158] sm:$0xff]  ;;  %v5591_v35 = vpack.c.bf16 %v361_v27, %v357_v26 }
  0x6e   :  { %236 = vmatmul.mubr.f32.vlgmr.msra.gmra.mrb[0].mxu0 %v79_v18  ;;  %v370_v32 = vld [vmem:[#allocation8 + $0x168] sm:$0xff]  ;;  %v372_v34 = vld [vmem:[#allocation8 + $0x178] sm:$0xff]  ;;  %v5595_v36 = vpack.c.bf16 %v363_v30, %v359_v28  ;;  %v365_v38 = vld [vmem:[#allocation8 + $0x140] sm:$0xff]  ;;  %v5674_v21 = vshrl.u32 %v151_v20, 7 }
  0x6f   :  { %313 = vmatmul.mubr.f32.vlgmr.msra.gmra.mrb[0].mxu1 %v79_v18  ;;  %3925 = vmatpush1.bf16.msra.mxu0 %v5540_v49  ;;  %v355_v18 = vld [vmem:[#allocation8 + $0xf0] sm:$0xff]  ;;  %v5597_v37 = vpack.c.bf16 %v370_v32, %v366_v31  ;;  %v369_v40 = vld [vmem:[#allocation8 + $0x160] sm:$0xff]  ;;  %v5600_v42 = vpack.c.bf16 %v372_v34, %v368_v33  ;;  %v374_v45 = vld [vmem:[#allocation8 + $0x188] sm:$0xff] }
  0x70   :  { %3957 = vmatpush1.bf16.msra.mxu1 %v5543_v50  ;;  %3927 = vmatprep.subr.bf16.mxu0 %v5545_v51  ;;  %v5583_v24 = vpack.c.bf16 %v355_v18, %v351_v16  ;;  %v367_v41 = vld [vmem:[#allocation8 + $0x150] sm:$0xff]  ;;  %v378_v46 = vld [vmem:[#allocation8 + $0x1a8] sm:$0xff]  ;;  %v376_v47 = vld [vmem:[#allocation8 + $0x198] sm:$0xff]  ;;  %v5603_v52 = vpack.c.bf16 %v369_v40, %v365_v38  ;;  %v153_v28 = vsub.s32 0, %v5674_v21  ;;  %v157_v32 = vsub.s32 1, %v5674_v21 }
  0x71   :  { %3959 = vmatprep.subr.bf16.mxu1 %v5548_v55  ;;  %241 = vmatprep.mubr.f32.mxu0 %v5428_v0  ;;  %v371_v44 = vld [vmem:[#allocation8 + $0x170] sm:$0xff]  ;;  %v380_v48 = vld [vmem:[#allocation8 + $0x1b8] sm:$0xff]  ;;  %v5609_v54 = vpack.c.bf16 %v378_v46, %v374_v45  ;;  %v373_v56 = vld [vmem:[#allocation8 + $0x180] sm:$0xff]  ;;  %v161_v33 = vsub.s32 2, %v5674_v21  ;;  %v165_v34 = vsub.s32 3, %v5674_v21 }
  0x72   :  { %318 = vmatprep.mubr.f32.mxu1 %v5428_v0  ;;  %242 = vmatmul.mubr.f32.gmra.mrb[2].mxu0 %v80_v11  ;;  %v5607_v53 = vpack.c.bf16 %v371_v44, %v367_v41  ;;  %v377_v57 = vld [vmem:[#allocation8 + $0x1a0] sm:$0xff]  ;;  %v375_v58 = vld [vmem:[#allocation8 + $0x190] sm:$0xff]  ;;  %v5612_v59 = vpack.c.bf16 %v380_v48, %v376_v47  ;;  %v382_v1 = vld [vmem:[#allocation8 + $0x1c8] sm:$0xff] }
  0x73   :  { %3929 = vmatpush1.bf16.msra.mxu0 %v5551_v61  ;;  %319 = vmatmul.mubr.f32.gmra.mrb[2].mxu1 %v80_v11  ;;  %v379_v60 = vld [vmem:[#allocation8 + $0x1b0] sm:$0xff]  ;;  %v386_v2 = vld [vmem:[#allocation8 + $0x1e8] sm:$0xff]  ;;  %v384_v3 = vld [vmem:[#allocation8 + $0x1d8] sm:$0xff]  ;;  %v5615_v6 = vpack.c.bf16 %v377_v57, %v373_v56 }
  0x74   :  { %3961 = vmatpush1.bf16.msra.mxu1 %v5555_v62  ;;  %3931 = vmatprep.subr.bf16.mxu0 %v5557_v63  ;;  %v388_v5 = vld [vmem:[#allocation8 + $0x1f8] sm:$0xff]  ;;  %v5619_v7 = vpack.c.bf16 %v379_v60, %v375_v58  ;;  %v5621_v8 = vpack.c.bf16 %v386_v2, %v382_v1  ;;  %v381_v9 = vld [vmem:[#allocation8 + $0x1c0] sm:$0xff]  ;;  %v383_v15 = vld [vmem:[#allocation8 + $0x1d0] sm:$0xff] }
  0x75   :  { %3963 = vmatprep.subr.bf16.mxu1 %v5560_v4  ;;  %453 = vmatprep.mubr.f32.mxu0 %v5428_v0  ;;  %v385_v11 = vld [vmem:[#allocation8 + $0x1e0] sm:$0xff]  ;;  %v5624_v14 = vpack.c.bf16 %v388_v5, %v384_v3  ;;  %v387_v16 = vld [vmem:[#allocation8 + $0x1f0] sm:$0xff] }
  0x76   :  { %524 = vmatprep.mubr.f32.mxu1 %v5428_v0  ;;  %v5627_v18 = vpack.c.bf16 %v385_v11, %v381_v9  ;;  %v5631_v19 = vpack.c.bf16 %v387_v16, %v383_v15  ;;  %v149_v31 = vld [vmem:[%s6451_s3] sm:$0xf] }
  0x77   :  { %3933 = vmatpush1.bf16.msra.mxu0 %v5565_v10  ;;  %v154_v38 = vrot.slane %v149_v31, %v153_v28  ;;  %v158_v40 = vrot.slane %v149_v31, %v157_v32  ;;  %v162_v41 = vrot.slane %v149_v31, %v161_v33  ;;  %v166_v45 = vrot.slane %v149_v31, %v165_v34 }
  0x78   :  { %3965 = vmatpush1.bf16.msra.mxu1 %v5569_v12  ;;  %3935 = vmatprep.subr.bf16.mxu0 %v5571_v13 }
  0x79   :  { %3967 = vmatprep.subr.bf16.mxu1 %v5574_v17 }
  0x7b   :  { %3937 = vmatpush1.bf16.msra.mxu0 %v5578_v23 }
  0x7c   :  { %3969 = vmatpush1.bf16.msra.mxu1 %v5583_v24  ;;  %3939 = vmatprep.subr.bf16.mxu0 %v5585_v25 }
  0x7d   :  { %3971 = vmatprep.subr.bf16.mxu1 %v5588_v29 }
  0x7f   :  { %3941 = vmatpush1.bf16.msra.mxu0 %v5591_v35 }
  0x80   :  { %3973 = vmatpush1.bf16.msra.mxu1 %v5595_v36  ;;  %3943 = vmatprep.subr.bf16.mxu0 %v5597_v37 }
  0x81   :  { %3975 = vmatprep.subr.bf16.mxu1 %v5600_v42 }
  0x83   :  { %3945 = vmatpush1.bf16.msra.mxu0 %v5603_v52 }
  0x84   :  { %3977 = vmatpush1.bf16.msra.mxu1 %v5607_v53  ;;  %3947 = vmatprep.subr.bf16.mxu0 %v5609_v54 }
  0x85   :  { %3979 = vmatprep.subr.bf16.mxu1 %v5612_v59 }
  0x87   :  { %3949 = vmatpush1.bf16.msra.mxu0 %v5615_v6 }
  0x88   :  { %3981 = vmatpush1.bf16.msra.mxu1 %v5619_v7  ;;  %3951 = vmatprep.subr.bf16.mxu0 %v5621_v8 }
  0x89   :  { %3983 = vmatprep.subr.bf16.mxu1 %v5624_v14 }
  0x8b   :  { %3953 = vmatpush1.bf16.msra.mxu0 %v5627_v18 }
  0x8c   :  { %3985 = vmatpush1.bf16.msra.mxu1 %v5631_v19  ;;  %3987 = vmatprep.subr.bf16.mxu0 %v5536_v39 }
  0x8d   :  { %4019 = vmatprep.subr.bf16.mxu1 %v5538_v43 }
  0x8e   :  { %454 = vmatmul.mubr.f32.vlgmr.msra.gmra.mrb[4].mxu0 %v5428_v0 }
  0x8f   :  { %525 = vmatmul.mubr.f32.vlgmr.msra.gmra.mrb[4].mxu1 %v5428_v0  ;;  %3989 = vmatpush1.bf16.msra.mxu0 %v5540_v49 }
  0x90   :  { %4021 = vmatpush1.bf16.msra.mxu1 %v5543_v50  ;;  %3991 = vmatprep.subr.bf16.mxu0 %v5545_v51 }
  0x91   :  { %4023 = vmatprep.subr.bf16.mxu1 %v5548_v55  ;;  %624 = vmatprep.mubr.f32.mxu0 %v5428_v0 }
  0x92   :  { %695 = vmatprep.mubr.f32.mxu1 %v5428_v0 }
  0x93   :  { %3993 = vmatpush1.bf16.msra.mxu0 %v5551_v61 }
  0x94   :  { %4025 = vmatpush1.bf16.msra.mxu1 %v5555_v62  ;;  %3995 = vmatprep.subr.bf16.mxu0 %v5557_v63 }
  0x95   :  { %4027 = vmatprep.subr.bf16.mxu1 %v5560_v4 }
  0x97   :  { %3997 = vmatpush1.bf16.msra.mxu0 %v5565_v10 }
  0x98   :  { %4029 = vmatpush1.bf16.msra.mxu1 %v5569_v12  ;;  %3999 = vmatprep.subr.bf16.mxu0 %v5571_v13 }
  0x99   :  { %4031 = vmatprep.subr.bf16.mxu1 %v5574_v17 }
  0x9b   :  { %4001 = vmatpush1.bf16.msra.mxu0 %v5578_v23 }
  0x9c   :  { %4033 = vmatpush1.bf16.msra.mxu1 %v5583_v24  ;;  %4003 = vmatprep.subr.bf16.mxu0 %v5585_v25 }
  0x9d   :  { %4035 = vmatprep.subr.bf16.mxu1 %v5588_v29 }
  0x9f   :  { %4005 = vmatpush1.bf16.msra.mxu0 %v5591_v35 }
  0xa0   :  { %4037 = vmatpush1.bf16.msra.mxu1 %v5595_v36  ;;  %4007 = vmatprep.subr.bf16.mxu0 %v5597_v37 }
  0xa1   :  { %4039 = vmatprep.subr.bf16.mxu1 %v5600_v42 }
  0xa3   :  { %4009 = vmatpush1.bf16.msra.mxu0 %v5603_v52 }
  0xa4   :  { %4041 = vmatpush1.bf16.msra.mxu1 %v5607_v53  ;;  %4011 = vmatprep.subr.bf16.mxu0 %v5609_v54 }
  0xa5   :  { %4043 = vmatprep.subr.bf16.mxu1 %v5612_v59 }
  0xa7   :  { %4013 = vmatpush1.bf16.msra.mxu0 %v5615_v6 }
  0xa8   :  { %4045 = vmatpush1.bf16.msra.mxu1 %v5619_v7  ;;  %4015 = vmatprep.subr.bf16.mxu0 %v5621_v8 }
  0xa9   :  { %4047 = vmatprep.subr.bf16.mxu1 %v5624_v14 }
  0xab   :  { %4017 = vmatpush1.bf16.msra.mxu0 %v5627_v18 }
  0xac   :  { %4049 = vmatpush1.bf16.msra.mxu1 %v5631_v19  ;;  %4051 = vmatprep.subr.bf16.mxu0 %v5536_v39 }
  0xad   :  { %4083 = vmatprep.subr.bf16.mxu1 %v5538_v43 }
 0x141   :  { %v237_v22 = vpop.f32.mrb[0].mxu0 }
 0x142   :  { %v239_v26 = vpop.f32.mrb[1].mxu0  ;;  %v314_v27 = vpop.f32.mrb[0].mxu1  ;;  %v5699_v1 = vadd.f32 %v237_v22, %v154_v38 }
 0x143   :  { %v316_v30 = vpop.f32.mrb[1].mxu1  ;;  %v5701_v2 = vadd.f32 %v239_v26, %v158_v40  ;;  %v5708_v22 = vadd.f32 %v314_v27, %v162_v41 }
 0x145   :  { %v243_v44 = vpop.f32.mrb[2].mxu0 }
 0x146   :  { %v5691_v46 = vadd.f32 %v243_v44, %v154_v38  ;;  %v245_v47 = vpop.f32.mrb[3].mxu0  ;;  %v320_v48 = vpop.f32.mrb[2].mxu1  ;;  %v5705_v44 = vadd.f32 %v316_v30, %v166_v45 }
 0x147   :  { %v5693_v56 = vadd.f32 %v245_v47, %v158_v40  ;;  %v5695_v57 = vadd.f32 %v320_v48, %v162_v41  ;;  %v322_v58 = vpop.f32.mrb[3].mxu1 }
 0x148   :  { %v5697_v60 = vadd.f32 %v322_v58, %v166_v45 }
 0x161   :  { %v455_v3 = vpop.f32.mrb[4].mxu0 }
 0x162   :  { %v531_v5 = vadd.f32 %v455_v3, %v5699_v1  ;;  %v526_v9 = vpop.f32.mrb[4].mxu1  ;;  %v457_v11 = vpop.f32.mrb[5].mxu0 }
 0x163   :  { %v532_v15 = vadd.f32 %v457_v11, %v5701_v2  ;;  %v528_v16 = vpop.f32.mrb[5].mxu1  ;;  %v533_v38 = vadd.f32 %v526_v9, %v5708_v22 }
 0x164   :  { %v3756_v20 = vmul.f32 -1.442695, %v531_v5  ;;  %v534_v47 = vadd.f32 %v528_v16, %v5705_v44 }
 0x165   :  { %v3757_v31 = vmul.f32 -1.442695, %v532_v15 }
 0x166   :  { %5046 = vpow2.f32 %v3756_v20  ;;  %v3758_v26 = vmul.f32 -1.442695, %v534_v47 }
 0x167   :  { %5048 = vpow2.f32 %v3757_v31 }
 0x168   :  { %5050 = vpow2.f32 %v3758_v26 }
 0x169   :  { %5052 = vtanh.f32 %v533_v38 }
 0x170   :  { %v5047_v40 = vpop.eup %5046 }
 0x171   :  { %v5049_v48 = vpop.eup %5048  ;;  %v538_v58 = vadd.f32 1.0, %v5047_v40 }
 0x172   :  { %v544_v3 = vadd.f32 1.0, %v5049_v48  ;;  %v5051_v5 = vpop.eup %5050 }
 0x173   :  { %5054 = vrcp.f32 %v538_v58  ;;  %v5053_v11 = vpop.eup %5052  ;;  %v551_v20 = vadd.f32 1.0, %v5051_v5 }
 0x174   :  { %5056 = vrcp.f32 %v544_v3 }
 0x175   :  { %5058 = vrcp.f32 %v551_v20 }
 0x17d   :  { %v5055_v30 = vpop.eup %5054 }
 0x17e   :  { %v5057_v45 = vpop.eup %5056  ;;  %v555_v15 = vmul.f32 %v5055_v30, %v5053_v11 }
 0x17f   :  { %v554_v16 = vmul.f32 0.0, %v5057_v45  ;;  %v5059_v41 = vpop.eup %5058 }
 0x181   :  { %v5711_v27 = vadd.f32 %v555_v15, %v554_v16 }
 0x183   :  { %5060 = vtanh.f32 %v5711_v27 }
 0x18d   :  { %v5061_v9 = vpop.eup %5060 }
 0x18e   :  { %v558_v31 = vmul.f32 %v5061_v9, %v5059_v41 }
 0x190   :  { %559 = vst [vmem:[#allocation2] sm:$0x3] %v558_v31  ;;  %625 = vmatmul.mubr.f32.vlgmr.msra.gmra.mrb[6].mxu0 %v558_v31  ;;  %696 = vmatmul.mubr.f32.vlgmr.msra.gmra.mrb[6].mxu1 %v558_v31 }
 0x191   :  { %4053 = vmatpush1.bf16.msra.mxu0 %v5540_v49  ;;  %4085 = vmatpush1.bf16.msra.mxu1 %v5543_v50 }
 0x192   :  { %4055 = vmatprep.subr.bf16.mxu0 %v5545_v51  ;;  %4087 = vmatprep.subr.bf16.mxu1 %v5548_v55 }
 0x193   :  { %813 = vmatprep.mubr.f32.mxu0 %v5428_v0  ;;  %884 = vmatprep.mubr.f32.mxu1 %v5428_v0 }
 0x195   :  { %4057 = vmatpush1.bf16.msra.mxu0 %v5551_v61  ;;  %4089 = vmatpush1.bf16.msra.mxu1 %v5555_v62 }
 0x196   :  { %4059 = vmatprep.subr.bf16.mxu0 %v5557_v63  ;;  %4091 = vmatprep.subr.bf16.mxu1 %v5560_v4 }
 0x199   :  { %4061 = vmatpush1.bf16.msra.mxu0 %v5565_v10  ;;  %4093 = vmatpush1.bf16.msra.mxu1 %v5569_v12 }
 0x19a   :  { %4063 = vmatprep.subr.bf16.mxu0 %v5571_v13  ;;  %4095 = vmatprep.subr.bf16.mxu1 %v5574_v17 }
 0x19d   :  { %4065 = vmatpush1.bf16.msra.mxu0 %v5578_v23  ;;  %4097 = vmatpush1.bf16.msra.mxu1 %v5583_v24 }
 0x19e   :  { %4067 = vmatprep.subr.bf16.mxu0 %v5585_v25  ;;  %4099 = vmatprep.subr.bf16.mxu1 %v5588_v29 }
 0x1a1   :  { %4069 = vmatpush1.bf16.msra.mxu0 %v5591_v35  ;;  %4101 = vmatpush1.bf16.msra.mxu1 %v5595_v36 }
 0x1a2   :  { %4071 = vmatprep.subr.bf16.mxu0 %v5597_v37  ;;  %4103 = vmatprep.subr.bf16.mxu1 %v5600_v42 }
 0x1a5   :  { %4073 = vmatpush1.bf16.msra.mxu0 %v5603_v52  ;;  %4105 = vmatpush1.bf16.msra.mxu1 %v5607_v53 }
 0x1a6   :  { %4075 = vmatprep.subr.bf16.mxu0 %v5609_v54  ;;  %4107 = vmatprep.subr.bf16.mxu1 %v5612_v59 }
 0x1a9   :  { %4077 = vmatpush1.bf16.msra.mxu0 %v5615_v6  ;;  %4109 = vmatpush1.bf16.msra.mxu1 %v5619_v7 }
 0x1aa   :  { %4079 = vmatprep.subr.bf16.mxu0 %v5621_v8  ;;  %4111 = vmatprep.subr.bf16.mxu1 %v5624_v14 }
 0x1ad   :  { %4081 = vmatpush1.bf16.msra.mxu0 %v5627_v18  ;;  %4113 = vmatpush1.bf16.msra.mxu1 %v5631_v19 }
 0x1ae   :  { %4115 = vmatprep.subr.bf16.mxu0 %v5536_v39  ;;  %4147 = vmatprep.subr.bf16.mxu1 %v5538_v43 }
 0x263   :  { %v626_v47 = vpop.f32.mrb[6].mxu0  ;;  %v697_v26 = vpop.f32.mrb[6].mxu1 }
 0x264   :  { %v706_v38 = vrot.slane %v626_v47, 6  ;;  %v628_v40 = vpop.f32.mrb[7].mxu0  ;;  %v699_v48 = vpop.f32.mrb[7].mxu1  ;;  %v708_v20 = vrot.slane %v697_v26, 6 }
 0x265   :  { %v707_v58 = vrot.slane %v628_v40, 6  ;;  %v709_v45 = vrot.slane %v699_v48, 6  ;;  %v738_v48 = vrot.slane %v5711_v27, 6 }
 0x266   :  { %v714_v3 = vadd.f32 %v706_v38, %v5699_v1  ;;  %v716_v41 = vadd.f32 %v708_v20, %v5708_v22 }
 0x267   :  { %v715_v5 = vadd.f32 %v707_v58, %v5701_v2  ;;  %v717_v15 = vadd.f32 %v709_v45, %v5705_v44 }
 0x268   :  { %v3759_v11 = vmul.f32 -1.442695, %v714_v3 }
 0x269   :  { %v3760_v30 = vmul.f32 -1.442695, %v715_v5  ;;  %v3761_v16 = vmul.f32 -1.442695, %v717_v15 }
 0x26a   :  { %5062 = vpow2.f32 %v3759_v11 }
 0x26b   :  { %5064 = vpow2.f32 %v3760_v30 }
 0x26c   :  { %5066 = vpow2.f32 %v3761_v16 }
 0x26d   :  { %5068 = vtanh.f32 %v716_v41 }
 0x274   :  { %v5063_v9 = vpop.eup %5062 }
 0x275   :  { %v5065_v31 = vpop.eup %5064  ;;  %v721_v47 = vadd.f32 1.0, %v5063_v9 }
 0x276   :  { %v727_v40 = vadd.f32 1.0, %v5065_v31  ;;  %v5067_v38 = vpop.eup %5066 }
 0x277   :  { %5070 = vrcp.f32 %v721_v47  ;;  %v5069_v58 = vpop.eup %5068  ;;  %v734_v30 = vadd.f32 1.0, %v5067_v38 }
 0x278   :  { %5072 = vrcp.f32 %v727_v40 }
 0x279   :  { %5074 = vrcp.f32 %v734_v30 }
 0x281   :  { %v5071_v3 = vpop.eup %5070 }
 0x282   :  { %v5073_v5 = vpop.eup %5072  ;;  %v741_v11 = vmul.f32 %v5071_v3, %v5069_v58 }
 0x283   :  { %v740_v26 = vmul.f32 %v5073_v5, %v738_v48  ;;  %v5075_v15 = vpop.eup %5074 }
 0x285   :  { %v5753_v45 = vadd.f32 %v741_v11, %v740_v26 }
 0x287   :  { %5076 = vtanh.f32 %v5753_v45 }
 0x291   :  { %v5077_v20 = vpop.eup %5076 }
 0x292   :  { %v744_v16 = vmul.f32 %v5077_v20, %v5075_v15 }
 0x294   :  { %745 = vst [vmem:[#allocation2] sm:$0xc] %v744_v16  ;;  %v747_v41 = vrot.slane %v744_v16, 2 }
 0x296   :  { %814 = vmatmul.mubr.f32.vlgmr.msra.gmra.mrb[8].mxu0 %v747_v41  ;;  %885 = vmatmul.mubr.f32.vlgmr.msra.gmra.mrb[8].mxu1 %v747_v41 }
 0x297   :  { %4117 = vmatpush1.bf16.msra.mxu0 %v5540_v49  ;;  %4149 = vmatpush1.bf16.msra.mxu1 %v5543_v50 }
 0x298   :  { %4119 = vmatprep.subr.bf16.mxu0 %v5545_v51  ;;  %4151 = vmatprep.subr.bf16.mxu1 %v5548_v55 }
 0x299   :  { %1002 = vmatprep.mubr.f32.mxu0 %v5428_v0  ;;  %1073 = vmatprep.mubr.f32.mxu1 %v5428_v0 }
 0x29b   :  { %4121 = vmatpush1.bf16.msra.mxu0 %v5551_v61  ;;  %4153 = vmatpush1.bf16.msra.mxu1 %v5555_v62 }
 0x29c   :  { %4123 = vmatprep.subr.bf16.mxu0 %v5557_v63  ;;  %4155 = vmatprep.subr.bf16.mxu1 %v5560_v4 }
 0x29f   :  { %4125 = vmatpush1.bf16.msra.mxu0 %v5565_v10  ;;  %4157 = vmatpush1.bf16.msra.mxu1 %v5569_v12 }
 0x2a0   :  { %4127 = vmatprep.subr.bf16.mxu0 %v5571_v13  ;;  %4159 = vmatprep.subr.bf16.mxu1 %v5574_v17 }
 0x2a3   :  { %4129 = vmatpush1.bf16.msra.mxu0 %v5578_v23  ;;  %4161 = vmatpush1.bf16.msra.mxu1 %v5583_v24 }
 0x2a4   :  { %4131 = vmatprep.subr.bf16.mxu0 %v5585_v25  ;;  %4163 = vmatprep.subr.bf16.mxu1 %v5588_v29 }
 0x2a7   :  { %4133 = vmatpush1.bf16.msra.mxu0 %v5591_v35  ;;  %4165 = vmatpush1.bf16.msra.mxu1 %v5595_v36 }
 0x2a8   :  { %4135 = vmatprep.subr.bf16.mxu0 %v5597_v37  ;;  %4167 = vmatprep.subr.bf16.mxu1 %v5600_v42 }
 0x2ab   :  { %4137 = vmatpush1.bf16.msra.mxu0 %v5603_v52  ;;  %4169 = vmatpush1.bf16.msra.mxu1 %v5607_v53 }
 0x2ac   :  { %4139 = vmatprep.subr.bf16.mxu0 %v5609_v54  ;;  %4171 = vmatprep.subr.bf16.mxu1 %v5612_v59 }
 0x2af   :  { %4141 = vmatpush1.bf16.msra.mxu0 %v5615_v6  ;;  %4173 = vmatpush1.bf16.msra.mxu1 %v5619_v7 }
 0x2b0   :  { %4143 = vmatprep.subr.bf16.mxu0 %v5621_v8  ;;  %4175 = vmatprep.subr.bf16.mxu1 %v5624_v14 }
 0x2b3   :  { %4145 = vmatpush1.bf16.msra.mxu0 %v5627_v18  ;;  %4177 = vmatpush1.bf16.msra.mxu1 %v5631_v19 }
 0x2b4   :  { %4179 = vmatprep.subr.bf16.mxu0 %v5536_v39  ;;  %4211 = vmatprep.subr.bf16.mxu1 %v5538_v43 }
 0x369   :  { %v815_v27 = vpop.f32.mrb[8].mxu0  ;;  %v886_v9 = vpop.f32.mrb[8].mxu1 }
 0x36a   :  { %v895_v31 = vrot.slane %v815_v27, 4  ;;  %v817_v47 = vpop.f32.mrb[9].mxu0  ;;  %v888_v40 = vpop.f32.mrb[9].mxu1  ;;  %v897_v26 = vrot.slane %v886_v9, 4 }
 0x36b   :  { %v896_v38 = vrot.slane %v817_v47, 4  ;;  %v898_v11 = vrot.slane %v888_v40, 4  ;;  %v927_v40 = vrot.slane %v5753_v45, 6 }
 0x36c   :  { %v903_v58 = vadd.f32 %v895_v31, %v5699_v1  ;;  %v905_v20 = vadd.f32 %v897_v26, %v5708_v22 }
 0x36d   :  { %v904_v3 = vadd.f32 %v896_v38, %v5701_v2  ;;  %v906_v30 = vadd.f32 %v898_v11, %v5705_v44 }
 0x36e   :  { %v3762_v48 = vmul.f32 -1.442695, %v903_v58 }
 0x36f   :  { %v3763_v5 = vmul.f32 -1.442695, %v904_v3  ;;  %v3764_v15 = vmul.f32 -1.442695, %v906_v30 }
 0x370   :  { %5078 = vpow2.f32 %v3762_v48 }
 0x371   :  { %5080 = vpow2.f32 %v3763_v5 }
 0x372   :  { %5082 = vpow2.f32 %v3764_v15 }
 0x373   :  { %5084 = vtanh.f32 %v905_v20 }
 0x37a   :  { %v5079_v16 = vpop.eup %5078 }
 0x37b   :  { %v5081_v41 = vpop.eup %5080  ;;  %v910_v27 = vadd.f32 1.0, %v5079_v16 }
 0x37c   :  { %v916_v47 = vadd.f32 1.0, %v5081_v41  ;;  %v5083_v31 = vpop.eup %5082 }
 0x37d   :  { %5086 = vrcp.f32 %v910_v27  ;;  %v5085_v38 = vpop.eup %5084  ;;  %v923_v5 = vadd.f32 1.0, %v5083_v31 }
 0x37e   :  { %5088 = vrcp.f32 %v916_v47 }
 0x37f   :  { %5090 = vrcp.f32 %v923_v5 }
 0x387   :  { %v5087_v58 = vpop.eup %5086 }
 0x388   :  { %v5089_v3 = vpop.eup %5088  ;;  %v930_v48 = vmul.f32 %v5087_v58, %v5085_v38 }
 0x389   :  { %v929_v9 = vmul.f32 %v5089_v3, %v927_v40  ;;  %v5091_v30 = vpop.eup %5090 }
 0x38b   :  { %v5795_v11 = vadd.f32 %v930_v48, %v929_v9 }
 0x38d   :  { %5092 = vtanh.f32 %v5795_v11 }
 0x397   :  { %v5093_v26 = vpop.eup %5092 }
 0x398   :  { %v933_v15 = vmul.f32 %v5093_v26, %v5091_v30 }
 0x39a   :  { %934 = vst [vmem:[#allocation2] sm:$0x30] %v933_v15  ;;  %v936_v20 = vrot.slane %v933_v15, 4 }
 0x39c   :  { %1003 = vmatmul.mubr.f32.vlgmr.msra.gmra.mrb[10].mxu0 %v936_v20  ;;  %1074 = vmatmul.mubr.f32.vlgmr.msra.gmra.mrb[10].mxu1 %v936_v20 }
 0x39d   :  { %4181 = vmatpush1.bf16.msra.mxu0 %v5540_v49  ;;  %4213 = vmatpush1.bf16.msra.mxu1 %v5543_v50 }
 0x39e   :  { %4183 = vmatprep.subr.bf16.mxu0 %v5545_v51  ;;  %4215 = vmatprep.subr.bf16.mxu1 %v5548_v55 }
 0x39f   :  { %1191 = vmatprep.mubr.f32.mxu0 %v5428_v0  ;;  %1262 = vmatprep.mubr.f32.mxu1 %v5428_v0 }
 0x3a1   :  { %4185 = vmatpush1.bf16.msra.mxu0 %v5551_v61  ;;  %4217 = vmatpush1.bf16.msra.mxu1 %v5555_v62 }
 0x3a2   :  { %4187 = vmatprep.subr.bf16.mxu0 %v5557_v63  ;;  %4219 = vmatprep.subr.bf16.mxu1 %v5560_v4 }
 0x3a5   :  { %4189 = vmatpush1.bf16.msra.mxu0 %v5565_v10  ;;  %4221 = vmatpush1.bf16.msra.mxu1 %v5569_v12 }
 0x3a6   :  { %4191 = vmatprep.subr.bf16.mxu0 %v5571_v13  ;;  %4223 = vmatprep.subr.bf16.mxu1 %v5574_v17 }
 0x3a9   :  { %4193 = vmatpush1.bf16.msra.mxu0 %v5578_v23  ;;  %4225 = vmatpush1.bf16.msra.mxu1 %v5583_v24 }
 0x3aa   :  { %4195 = vmatprep.subr.bf16.mxu0 %v5585_v25  ;;  %4227 = vmatprep.subr.bf16.mxu1 %v5588_v29 }
 0x3ad   :  { %4197 = vmatpush1.bf16.msra.mxu0 %v5591_v35  ;;  %4229 = vmatpush1.bf16.msra.mxu1 %v5595_v36 }
 0x3ae   :  { %4199 = vmatprep.subr.bf16.mxu0 %v5597_v37  ;;  %4231 = vmatprep.subr.bf16.mxu1 %v5600_v42 }
 0x3b1   :  { %4201 = vmatpush1.bf16.msra.mxu0 %v5603_v52  ;;  %4233 = vmatpush1.bf16.msra.mxu1 %v5607_v53 }
 0x3b2   :  { %4203 = vmatprep.subr.bf16.mxu0 %v5609_v54  ;;  %4235 = vmatprep.subr.bf16.mxu1 %v5612_v59 }
 0x3b5   :  { %4205 = vmatpush1.bf16.msra.mxu0 %v5615_v6  ;;  %4237 = vmatpush1.bf16.msra.mxu1 %v5619_v7 }
 0x3b6   :  { %4207 = vmatprep.subr.bf16.mxu0 %v5621_v8  ;;  %4239 = vmatprep.subr.bf16.mxu1 %v5624_v14 }
 0x3b9   :  { %4209 = vmatpush1.bf16.msra.mxu0 %v5627_v18  ;;  %4241 = vmatpush1.bf16.msra.mxu1 %v5631_v19 }
 0x3ba   :  { %4243 = vmatprep.subr.bf16.mxu0 %v5536_v39  ;;  %4275 = vmatprep.subr.bf16.mxu1 %v5538_v43 }
 0x46f   :  { %v1004_v45 = vpop.f32.mrb[10].mxu0  ;;  %v1075_v16 = vpop.f32.mrb[10].mxu1 }
 0x470   :  { %v1084_v41 = vrot.slane %v1004_v45, 2  ;;  %v1006_v27 = vpop.f32.mrb[11].mxu0  ;;  %v1077_v47 = vpop.f32.mrb[11].mxu1  ;;  %v1086_v9 = vrot.slane %v1075_v16, 2 }
 0x471   :  { %v1085_v31 = vrot.slane %v1006_v27, 2  ;;  %v1087_v48 = vrot.slane %v1077_v47, 2  ;;  %v1116_v47 = vrot.slane %v5795_v11, 6 }
 0x472   :  { %v1092_v38 = vadd.f32 %v1084_v41, %v5699_v1  ;;  %v1094_v26 = vadd.f32 %v1086_v9, %v5708_v22 }
 0x473   :  { %v1093_v58 = vadd.f32 %v1085_v31, %v5701_v2  ;;  %v1095_v5 = vadd.f32 %v1087_v48, %v5705_v44 }
 0x474   :  { %v3765_v40 = vmul.f32 -1.442695, %v1092_v38 }
 0x475   :  { %v3766_v3 = vmul.f32 -1.442695, %v1093_v58  ;;  %v3767_v30 = vmul.f32 -1.442695, %v1095_v5 }
 0x476   :  { %5094 = vpow2.f32 %v3765_v40 }
 0x477   :  { %5096 = vpow2.f32 %v3766_v3 }
 0x478   :  { %5098 = vpow2.f32 %v3767_v30 }
 0x479   :  { %5100 = vtanh.f32 %v1094_v26 }
 0x480   :  { %v5095_v15 = vpop.eup %5094 }
 0x481   :  { %v5097_v20 = vpop.eup %5096  ;;  %v1099_v45 = vadd.f32 1.0, %v5095_v15 }
 0x482   :  { %v1105_v27 = vadd.f32 1.0, %v5097_v20  ;;  %v5099_v1 = vpop.eup %5098 }
 0x483   :  { %5102 = vrcp.f32 %v1099_v45  ;;  %v5101_v2 = vpop.eup %5100  ;;  %v1112_v44 = vadd.f32 1.0, %v5099_v1 }
 0x484   :  { %5104 = vrcp.f32 %v1105_v27 }
 0x485   :  { %5106 = vrcp.f32 %v1112_v44 }
 0x48d   :  { %v5103_v41 = vpop.eup %5102 }
 0x48e   :  { %v5105_v31 = vpop.eup %5104  ;;  %v1119_v38 = vmul.f32 %v5103_v41, %v5101_v2 }
 0x48f   :  { %v1118_v16 = vmul.f32 %v5105_v31, %v1116_v47  ;;  %v5107_v22 = vpop.eup %5106 }
 0x491   :  { %v5837_v58 = vadd.f32 %v1119_v38, %v1118_v16 }
 0x493   :  { %5108 = vtanh.f32 %v5837_v58 }
 0x49d   :  { %v5109_v40 = vpop.eup %5108 }
 0x49e   :  { %v1122_v3 = vmul.f32 %v5109_v40, %v5107_v22  ;;  %v1293_v40 = vrot.slane %v5837_v58, 6 }
 0x4a0   :  { %1123 = vst [vmem:[#allocation2] sm:$0xc0] %v1122_v3  ;;  %v1125_v48 = vrot.slane %v1122_v3, 6 }
 0x4a2   :  { %1192 = vmatmul.mubr.f32.vlgmr.msra.gmra.mrb[12].mxu0 %v1125_v48  ;;  %1263 = vmatmul.mubr.f32.vlgmr.msra.gmra.mrb[12].mxu1 %v1125_v48 }
 0x4a3   :  { %4245 = vmatpush1.bf16.msra.mxu0 %v5540_v49  ;;  %4277 = vmatpush1.bf16.msra.mxu1 %v5543_v50 }
 0x4a4   :  { %4247 = vmatprep.subr.bf16.mxu0 %v5545_v51  ;;  %4279 = vmatprep.subr.bf16.mxu1 %v5548_v55 }
 0x4a5   :  { %1365 = vmatprep.mubr.f32.mxu0 %v5428_v0  ;;  %1436 = vmatprep.mubr.f32.mxu1 %v5428_v0 }
 0x4a7   :  { %4249 = vmatpush1.bf16.msra.mxu0 %v5551_v61  ;;  %4281 = vmatpush1.bf16.msra.mxu1 %v5555_v62 }
 0x4a8   :  { %4251 = vmatprep.subr.bf16.mxu0 %v5557_v63  ;;  %4283 = vmatprep.subr.bf16.mxu1 %v5560_v4 }
 0x4ab   :  { %4253 = vmatpush1.bf16.msra.mxu0 %v5565_v10  ;;  %4285 = vmatpush1.bf16.msra.mxu1 %v5569_v12 }
 0x4ac   :  { %4255 = vmatprep.subr.bf16.mxu0 %v5571_v13  ;;  %4287 = vmatprep.subr.bf16.mxu1 %v5574_v17 }
 0x4af   :  { %4257 = vmatpush1.bf16.msra.mxu0 %v5578_v23  ;;  %4289 = vmatpush1.bf16.msra.mxu1 %v5583_v24 }
 0x4b0   :  { %4259 = vmatprep.subr.bf16.mxu0 %v5585_v25  ;;  %4291 = vmatprep.subr.bf16.mxu1 %v5588_v29 }
 0x4b3   :  { %4261 = vmatpush1.bf16.msra.mxu0 %v5591_v35  ;;  %4293 = vmatpush1.bf16.msra.mxu1 %v5595_v36 }
 0x4b4   :  { %4263 = vmatprep.subr.bf16.mxu0 %v5597_v37  ;;  %4295 = vmatprep.subr.bf16.mxu1 %v5600_v42 }
 0x4b7   :  { %4265 = vmatpush1.bf16.msra.mxu0 %v5603_v52  ;;  %4297 = vmatpush1.bf16.msra.mxu1 %v5607_v53 }
 0x4b8   :  { %4267 = vmatprep.subr.bf16.mxu0 %v5609_v54  ;;  %4299 = vmatprep.subr.bf16.mxu1 %v5612_v59 }
 0x4bb   :  { %4269 = vmatpush1.bf16.msra.mxu0 %v5615_v6  ;;  %4301 = vmatpush1.bf16.msra.mxu1 %v5619_v7 }
 0x4bc   :  { %4271 = vmatprep.subr.bf16.mxu0 %v5621_v8  ;;  %4303 = vmatprep.subr.bf16.mxu1 %v5624_v14 }
 0x4bf   :  { %4273 = vmatpush1.bf16.msra.mxu0 %v5627_v18  ;;  %4305 = vmatpush1.bf16.msra.mxu1 %v5631_v19 }
 0x4c0   :  { %4307 = vmatprep.subr.bf16.mxu0 %v5536_v39  ;;  %4339 = vmatprep.subr.bf16.mxu1 %v5538_v43 }
 0x575   :  { %v1193_v11 = vpop.f32.mrb[12].mxu0  ;;  %v1264_v5 = vpop.f32.mrb[12].mxu1 }
 0x576   :  { %v1269_v9 = vadd.f32 %v1193_v11, %v5691_v46  ;;  %v1195_v30 = vpop.f32.mrb[13].mxu0  ;;  %v1266_v26 = vpop.f32.mrb[13].mxu1  ;;  %v1271_v2 = vadd.f32 %v1264_v5, %v5695_v57 }
 0x577   :  { %v1270_v15 = vadd.f32 %v1195_v30, %v5693_v56  ;;  %v1272_v27 = vadd.f32 %v1266_v26, %v5697_v60 }
 0x578   :  { %v3768_v20 = vmul.f32 -1.442695, %v1269_v9 }
 0x579   :  { %v3769_v45 = vmul.f32 -1.442695, %v1270_v15  ;;  %v3770_v1 = vmul.f32 -1.442695, %v1272_v27 }
 0x57a   :  { %5110 = vpow2.f32 %v3768_v20 }
 0x57b   :  { %5112 = vpow2.f32 %v3769_v45 }
 0x57c   :  { %5114 = vpow2.f32 %v3770_v1 }
 0x57d   :  { %5116 = vtanh.f32 %v1271_v2 }
 0x584   :  { %v5111_v41 = vpop.eup %5110 }
 0x585   :  { %v5113_v47 = vpop.eup %5112  ;;  %v1276_v31 = vadd.f32 1.0, %v5111_v41 }
 0x586   :  { %v1282_v38 = vadd.f32 1.0, %v5113_v47  ;;  %v5115_v44 = vpop.eup %5114 }
 0x587   :  { %5118 = vrcp.f32 %v1276_v31  ;;  %v5117_v16 = vpop.eup %5116  ;;  %v1289_v11 = vadd.f32 1.0, %v5115_v44 }
 0x588   :  { %5120 = vrcp.f32 %v1282_v38 }
 0x589   :  { %5122 = vrcp.f32 %v1289_v11 }
 0x591   :  { %v5119_v22 = vpop.eup %5118 }
 0x592   :  { %v5121_v3 = vpop.eup %5120  ;;  %v1296_v48 = vmul.f32 %v5119_v22, %v5117_v16 }
 0x593   :  { %v1295_v9 = vmul.f32 %v5121_v3, %v1293_v40  ;;  %v5123_v5 = vpop.eup %5122 }
 0x595   :  { %v5879_v30 = vadd.f32 %v1296_v48, %v1295_v9 }
 0x597   :  { %5124 = vtanh.f32 %v5879_v30 }
 0x5a1   :  { %v5125_v26 = vpop.eup %5124 }
 0x5a2   :  { %v1299_v15 = vmul.f32 %v5125_v26, %v5123_v5 }
 0x5a4   :  { %1300 = vst [vmem:[#allocation2 + $0x8] sm:$0x3] %v1299_v15  ;;  %1366 = vmatmul.mubr.f32.vlgmr.msra.gmra.mrb[14].mxu0 %v1299_v15  ;;  %1437 = vmatmul.mubr.f32.vlgmr.msra.gmra.mrb[14].mxu1 %v1299_v15  ;;  %v1479_v15 = vrot.slane %v5879_v30, 6 }
 0x5a5   :  { %4309 = vmatpush1.bf16.msra.mxu0 %v5540_v49  ;;  %4341 = vmatpush1.bf16.msra.mxu1 %v5543_v50 }
 0x5a6   :  { %4311 = vmatprep.subr.bf16.mxu0 %v5545_v51  ;;  %4343 = vmatprep.subr.bf16.mxu1 %v5548_v55 }
 0x5a7   :  { %1554 = vmatprep.mubr.f32.mxu0 %v5428_v0  ;;  %1625 = vmatprep.mubr.f32.mxu1 %v5428_v0 }
 0x5a9   :  { %4313 = vmatpush1.bf16.msra.mxu0 %v5551_v61  ;;  %4345 = vmatpush1.bf16.msra.mxu1 %v5555_v62 }
 0x5aa   :  { %4315 = vmatprep.subr.bf16.mxu0 %v5557_v63  ;;  %4347 = vmatprep.subr.bf16.mxu1 %v5560_v4 }
 0x5ad   :  { %4317 = vmatpush1.bf16.msra.mxu0 %v5565_v10  ;;  %4349 = vmatpush1.bf16.msra.mxu1 %v5569_v12 }
 0x5ae   :  { %4319 = vmatprep.subr.bf16.mxu0 %v5571_v13  ;;  %4351 = vmatprep.subr.bf16.mxu1 %v5574_v17 }
 0x5b1   :  { %4321 = vmatpush1.bf16.msra.mxu0 %v5578_v23  ;;  %4353 = vmatpush1.bf16.msra.mxu1 %v5583_v24 }
 0x5b2   :  { %4323 = vmatprep.subr.bf16.mxu0 %v5585_v25  ;;  %4355 = vmatprep.subr.bf16.mxu1 %v5588_v29 }
 0x5b5   :  { %4325 = vmatpush1.bf16.msra.mxu0 %v5591_v35  ;;  %4357 = vmatpush1.bf16.msra.mxu1 %v5595_v36 }
 0x5b6   :  { %4327 = vmatprep.subr.bf16.mxu0 %v5597_v37  ;;  %4359 = vmatprep.subr.bf16.mxu1 %v5600_v42 }
 0x5b9   :  { %4329 = vmatpush1.bf16.msra.mxu0 %v5603_v52  ;;  %4361 = vmatpush1.bf16.msra.mxu1 %v5607_v53 }
 0x5ba   :  { %4331 = vmatprep.subr.bf16.mxu0 %v5609_v54  ;;  %4363 = vmatprep.subr.bf16.mxu1 %v5612_v59 }
 0x5bd   :  { %4333 = vmatpush1.bf16.msra.mxu0 %v5615_v6  ;;  %4365 = vmatpush1.bf16.msra.mxu1 %v5619_v7 }
 0x5be   :  { %4335 = vmatprep.subr.bf16.mxu0 %v5621_v8  ;;  %4367 = vmatprep.subr.bf16.mxu1 %v5624_v14 }
 0x5c1   :  { %4337 = vmatpush1.bf16.msra.mxu0 %v5627_v18  ;;  %4369 = vmatpush1.bf16.msra.mxu1 %v5631_v19 }
 0x5c2   :  { %4371 = vmatprep.subr.bf16.mxu0 %v5536_v39  ;;  %4403 = vmatprep.subr.bf16.mxu1 %v5538_v43 }
 0x677   :  { %v1367_v58 = vpop.f32.mrb[14].mxu0  ;;  %v1438_v20 = vpop.f32.mrb[14].mxu1 }
 0x678   :  { %v1447_v45 = vrot.slane %v1367_v58, 6  ;;  %v1369_v27 = vpop.f32.mrb[15].mxu0  ;;  %v1440_v1 = vpop.f32.mrb[15].mxu1  ;;  %v1449_v39 = vrot.slane %v1438_v20, 6 }
 0x679   :  { %v1448_v2 = vrot.slane %v1369_v27, 6  ;;  %v1450_v44 = vrot.slane %v1440_v1, 6 }
 0x67a   :  { %v1455_v41 = vadd.f32 %v1447_v45, %v5691_v46  ;;  %v1457_v43 = vadd.f32 %v1449_v39, %v5695_v57  ;;  %v1868_v39 = vld [vmem:[#allocation6 + $0x200] sm:$0xff] }
 0x67b   :  { %v1456_v47 = vadd.f32 %v1448_v2, %v5693_v56  ;;  %v1458_v16 = vadd.f32 %v1450_v44, %v5697_v60 }
 0x67c   :  { %v3771_v31 = vmul.f32 -1.442695, %v1455_v41 }
 0x67d   :  { %v3772_v38 = vmul.f32 -1.442695, %v1456_v47  ;;  %v3773_v22 = vmul.f32 -1.442695, %v1458_v16 }
 0x67e   :  { %5126 = vpow2.f32 %v3771_v31 }
 0x67f   :  { %5128 = vpow2.f32 %v3772_v38 }
 0x680   :  { %5130 = vpow2.f32 %v3773_v22  ;;  %v1872_v22 = vld [vmem:[#allocation6 + $0x220] sm:$0xff] }
 0x681   :  { %5132 = vtanh.f32 %v1457_v43 }
 0x688   :  { %v5127_v40 = vpop.eup %5126 }
 0x689   :  { %v5129_v3 = vpop.eup %5128  ;;  %v1462_v48 = vadd.f32 1.0, %v5127_v40  ;;  %v1870_v40 = vld [vmem:[#allocation6 + $0x210] sm:$0xff] }
 0x68a   :  { %v1468_v11 = vadd.f32 1.0, %v5129_v3  ;;  %v5131_v9 = vpop.eup %5130  ;;  %v1874_v3 = vld [vmem:[#allocation6 + $0x230] sm:$0xff] }
 0x68b   :  { %5134 = vrcp.f32 %v1462_v48  ;;  %v5133_v5 = vpop.eup %5132  ;;  %v1475_v27 = vadd.f32 1.0, %v5131_v9  ;;  %v1877_v48 = vld [vmem:[#allocation6 + $0x248] sm:$0xff] }
 0x68c   :  { %5136 = vrcp.f32 %v1468_v11  ;;  %v1881_v9 = vld [vmem:[#allocation6 + $0x268] sm:$0xff] }
 0x68d   :  { %5138 = vrcp.f32 %v1475_v27  ;;  %v1876_v27 = vld [vmem:[#allocation6 + $0x240] sm:$0xff] }
 0x695   :  { %v5135_v26 = vpop.eup %5134 }
 0x696   :  { %v5137_v58 = vpop.eup %5136  ;;  %v1482_v45 = vmul.f32 %v5135_v26, %v5133_v5  ;;  %v1879_v5 = vld [vmem:[#allocation6 + $0x258] sm:$0xff] }
 0x697   :  { %v1481_v20 = vmul.f32 %v5137_v58, %v1479_v15  ;;  %v5139_v2 = vpop.eup %5138  ;;  %v1883_v26 = vld [vmem:[#allocation6 + $0x278] sm:$0xff]  ;;  %v4436_v58 = vpack.c.bf16 %v1872_v22, %v1868_v39  ;;  %v1902_v22 = vld [vmem:[#allocation6 + $0x310] sm:$0xff] }
 0x699   :  { %v5921_v1 = vadd.f32 %v1482_v45, %v1481_v20  ;;  %v4468_v45 = vpack.c.bf16 %v1874_v3, %v1870_v40  ;;  %v1880_v20 = vld [vmem:[#allocation6 + $0x260] sm:$0xff]  ;;  %v1909_v40 = vld [vmem:[#allocation6 + $0x348] sm:$0xff] }
 0x69a   :  { %v1913_v3 = vld [vmem:[#allocation6 + $0x368] sm:$0xff] }
 0x69b   :  { %5140 = vtanh.f32 %v5921_v1 }
 0x6a5   :  { %v5141_v41 = vpop.eup %5140 }
 0x6a6   :  { %v1485_v47 = vmul.f32 %v5141_v41, %v5139_v2  ;;  %v4438_v2 = vpack.c.bf16 %v1881_v9, %v1877_v48  ;;  %v4470_v41 = vpack.c.bf16 %v1883_v26, %v1879_v5  ;;  %v1911_v48 = vld [vmem:[#allocation6 + $0x358] sm:$0xff]  ;;  %v1908_v26 = vld [vmem:[#allocation6 + $0x340] sm:$0xff] }
 0x6a8   :  { %1486 = vst [vmem:[#allocation2 + $0x8] sm:$0xc] %v1485_v47  ;;  %v1488_v31 = vrot.slane %v1485_v47, 2  ;;  %v1878_v47 = vld [vmem:[#allocation6 + $0x250] sm:$0xff] }
 0x6aa   :  { %1555 = vmatmul.mubr.f32.vlgmr.msra.gmra.mrb[16].mxu0 %v1488_v31  ;;  %1626 = vmatmul.mubr.f32.vlgmr.msra.gmra.mrb[16].mxu1 %v1488_v31  ;;  %v1882_v31 = vld [vmem:[#allocation6 + $0x270] sm:$0xff] }
 0x6ab   :  { %4373 = vmatpush1.bf16.msra.mxu0 %v5540_v49  ;;  %4405 = vmatpush1.bf16.msra.mxu1 %v5543_v50  ;;  %v1869_v49 = vld [vmem:[#allocation6 + $0x208] sm:$0xff] }
 0x6ac   :  { %4375 = vmatprep.subr.bf16.mxu0 %v5545_v51  ;;  %4407 = vmatprep.subr.bf16.mxu1 %v5548_v55  ;;  %v1873_v50 = vld [vmem:[#allocation6 + $0x228] sm:$0xff]  ;;  %v1871_v51 = vld [vmem:[#allocation6 + $0x218] sm:$0xff] }
 0x6ad   :  { %1743 = vmatprep.mubr.f32.mxu0 %v5428_v0  ;;  %1814 = vmatprep.mubr.f32.mxu1 %v5428_v0  ;;  %v4434_v55 = vpack.c.bf16 %v1873_v50, %v1869_v49  ;;  %v1885_v49 = vld [vmem:[#allocation6 + $0x288] sm:$0xff] }
 0x6ae   :  { %v1889_v50 = vld [vmem:[#allocation6 + $0x2a8] sm:$0xff] }
 0x6af   :  { %4377 = vmatpush1.bf16.msra.mxu0 %v5551_v61  ;;  %4409 = vmatpush1.bf16.msra.mxu1 %v5555_v62  ;;  %v1875_v61 = vld [vmem:[#allocation6 + $0x238] sm:$0xff] }
 0x6b0   :  { %4379 = vmatprep.subr.bf16.mxu0 %v5557_v63  ;;  %4411 = vmatprep.subr.bf16.mxu1 %v5560_v4  ;;  %v4466_v62 = vpack.c.bf16 %v1875_v61, %v1871_v51  ;;  %v1887_v51 = vld [vmem:[#allocation6 + $0x298] sm:$0xff]  ;;  %v4440_v61 = vpack.c.bf16 %v1880_v20, %v1876_v27  ;;  %v1910_v27 = vld [vmem:[#allocation6 + $0x350] sm:$0xff] }
 0x6b1   :  { %v1914_v20 = vld [vmem:[#allocation6 + $0x370] sm:$0xff] }
 0x6b3   :  { %4381 = vmatpush1.bf16.msra.mxu0 %v5565_v10  ;;  %4413 = vmatpush1.bf16.msra.mxu1 %v5569_v12 }
 0x6b4   :  { %4383 = vmatprep.subr.bf16.mxu0 %v5571_v13  ;;  %4415 = vmatprep.subr.bf16.mxu1 %v5574_v17 }
 0x6b7   :  { %4385 = vmatpush1.bf16.msra.mxu0 %v5578_v23  ;;  %4417 = vmatpush1.bf16.msra.mxu1 %v5583_v24 }
 0x6b8   :  { %4387 = vmatprep.subr.bf16.mxu0 %v5585_v25  ;;  %4419 = vmatprep.subr.bf16.mxu1 %v5588_v29 }
 0x6bb   :  { %4389 = vmatpush1.bf16.msra.mxu0 %v5591_v35  ;;  %4421 = vmatpush1.bf16.msra.mxu1 %v5595_v36 }
 0x6bc   :  { %4391 = vmatprep.subr.bf16.mxu0 %v5597_v37  ;;  %4423 = vmatprep.subr.bf16.mxu1 %v5600_v42 }
 0x6bf   :  { %4393 = vmatpush1.bf16.msra.mxu0 %v5603_v52  ;;  %4425 = vmatpush1.bf16.msra.mxu1 %v5607_v53 }
 0x6c0   :  { %4395 = vmatprep.subr.bf16.mxu0 %v5609_v54  ;;  %4427 = vmatprep.subr.bf16.mxu1 %v5612_v59 }
 0x6c3   :  { %4397 = vmatpush1.bf16.msra.mxu0 %v5615_v6  ;;  %4429 = vmatpush1.bf16.msra.mxu1 %v5619_v7 }
 0x6c4   :  { %4399 = vmatprep.subr.bf16.mxu0 %v5621_v8  ;;  %4431 = vmatprep.subr.bf16.mxu1 %v5624_v14 }
 0x6c7   :  { %4401 = vmatpush1.bf16.msra.mxu0 %v5627_v18  ;;  %4433 = vmatpush1.bf16.msra.mxu1 %v5631_v19  ;;  %v1668_v18 = vrot.slane %v5921_v1, 6 }
 0x6c8   :  { %4435 = vmatprep.subr.bf16.mxu0 %v4434_v55  ;;  %4467 = vmatprep.subr.bf16.mxu1 %v4466_v62  ;;  %v1891_v55 = vld [vmem:[#allocation6 + $0x2b8] sm:$0xff]  ;;  %v4472_v62 = vpack.c.bf16 %v1882_v31, %v1878_v47 }
 0x6c9   :  { %v1923_v47 = vld [vmem:[#allocation6 + $0x3b8] sm:$0xff] }
 0x77d   :  { %v1556_v63 = vpop.f32.mrb[16].mxu0  ;;  %v1627_v4 = vpop.f32.mrb[16].mxu1 }
 0x77e   :  { %v1636_v10 = vrot.slane %v1556_v63, 4  ;;  %v1558_v12 = vpop.f32.mrb[17].mxu0  ;;  %v1629_v13 = vpop.f32.mrb[17].mxu1  ;;  %v1638_v37 = vrot.slane %v1627_v4, 4  ;;  %v1884_v63 = vld [vmem:[#allocation6 + $0x280] sm:$0xff] }
 0x77f   :  { %v1637_v17 = vrot.slane %v1558_v12, 4  ;;  %v1639_v35 = vrot.slane %v1629_v13, 4  ;;  %v1888_v4 = vld [vmem:[#allocation6 + $0x2a0] sm:$0xff]  ;;  %v4474_v12 = vpack.c.bf16 %v1891_v55, %v1887_v51  ;;  %v1886_v13 = vld [vmem:[#allocation6 + $0x290] sm:$0xff] }
 0x780   :  { %v1644_v23 = vadd.f32 %v1636_v10, %v5691_v46  ;;  %v1646_v52 = vadd.f32 %v1638_v37, %v5695_v57  ;;  %v4442_v10 = vpack.c.bf16 %v1889_v50, %v1885_v49  ;;  %v1892_v37 = vld [vmem:[#allocation6 + $0x2c0] sm:$0xff]  ;;  %v4488_v49 = vpack.c.bf16 %v1914_v20, %v1910_v27  ;;  %v2127_v27 = vld [vmem:[#allocation8 + $0x288] sm:$0xff] }
 0x781   :  { %v1645_v24 = vadd.f32 %v1637_v17, %v5693_v56  ;;  %v1647_v36 = vadd.f32 %v1639_v35, %v5697_v60  ;;  %v1890_v17 = vld [vmem:[#allocation6 + $0x2b0] sm:$0xff]  ;;  %v4444_v35 = vpack.c.bf16 %v1888_v4, %v1884_v63  ;;  %v1916_v50 = vld [vmem:[#allocation6 + $0x380] sm:$0xff]  ;;  %v1925_v4 = vld [vmem:[#allocation6 + $0x3c8] sm:$0xff] }
 0x782   :  { %v3774_v25 = vmul.f32 -1.442695, %v1644_v23  ;;  %v1893_v23 = vld [vmem:[#allocation6 + $0x2c8] sm:$0xff]  ;;  %v1920_v51 = vld [vmem:[#allocation6 + $0x3a0] sm:$0xff]  ;;  %v1922_v63 = vld [vmem:[#allocation6 + $0x3b0] sm:$0xff] }
 0x783   :  { %v3775_v29 = vmul.f32 -1.442695, %v1645_v24  ;;  %v3776_v42 = vmul.f32 -1.442695, %v1647_v36  ;;  %v1897_v24 = vld [vmem:[#allocation6 + $0x2e8] sm:$0xff]  ;;  %v4476_v36 = vpack.c.bf16 %v1890_v17, %v1886_v13  ;;  %v1931_v13 = vld [vmem:[#allocation6 + $0x3f8] sm:$0xff]  ;;  %v4460_v17 = vpack.c.bf16 %v1920_v51, %v1916_v50 }
 0x784   :  { %5142 = vpow2.f32 %v3774_v25  ;;  %v1895_v25 = vld [vmem:[#allocation6 + $0x2d8] sm:$0xff]  ;;  %v2131_v20 = vld [vmem:[#allocation8 + $0x2a8] sm:$0xff]  ;;  %v2128_v51 = vld [vmem:[#allocation8 + $0x290] sm:$0xff] }
 0x785   :  { %5144 = vpow2.f32 %v3775_v29  ;;  %v1899_v29 = vld [vmem:[#allocation6 + $0x2f8] sm:$0xff] }
 0x786   :  { %5146 = vpow2.f32 %v3776_v42  ;;  %v1896_v42 = vld [vmem:[#allocation6 + $0x2e0] sm:$0xff] }
 0x787   :  { %5148 = vtanh.f32 %v1646_v52  ;;  %v4446_v52 = vpack.c.bf16 %v1897_v24, %v1893_v23  ;;  %v1924_v24 = vld [vmem:[#allocation6 + $0x3c0] sm:$0xff] }
 0x78e   :  { %v5143_v53 = vpop.eup %5142 }
 0x78f   :  { %v5145_v54 = vpop.eup %5144  ;;  %v1651_v59 = vadd.f32 1.0, %v5143_v53  ;;  %v4478_v53 = vpack.c.bf16 %v1899_v29, %v1895_v25 }
 0x790   :  { %v1657_v6 = vadd.f32 1.0, %v5145_v54  ;;  %v5147_v7 = vpop.eup %5146  ;;  %v1894_v54 = vld [vmem:[#allocation6 + $0x2d0] sm:$0xff] }
 0x791   :  { %5150 = vrcp.f32 %v1651_v59  ;;  %v5149_v8 = vpop.eup %5148  ;;  %v1664_v38 = vadd.f32 1.0, %v5147_v7  ;;  %v1898_v59 = vld [vmem:[#allocation6 + $0x2f0] sm:$0xff]  ;;  %v1905_v7 = vld [vmem:[#allocation6 + $0x328] sm:$0xff] }
 0x792   :  { %5152 = vrcp.f32 %v1657_v6  ;;  %v1901_v6 = vld [vmem:[#allocation6 + $0x308] sm:$0xff] }
 0x793   :  { %5154 = vrcp.f32 %v1664_v38  ;;  %v1904_v38 = vld [vmem:[#allocation6 + $0x320] sm:$0xff] }
 0x79b   :  { %v5151_v14 = vpop.eup %5150 }
 0x79c   :  { %v5153_v19 = vpop.eup %5152  ;;  %v1671_v30 = vmul.f32 %v5151_v14, %v5149_v8  ;;  %v1903_v8 = vld [vmem:[#allocation6 + $0x318] sm:$0xff] }
 0x79d   :  { %v1670_v44 = vmul.f32 %v5153_v19, %v1668_v18  ;;  %v5155_v43 = vpop.eup %5154  ;;  %v1907_v14 = vld [vmem:[#allocation6 + $0x338] sm:$0xff]  ;;  %v4448_v18 = vpack.c.bf16 %v1896_v42, %v1892_v37  ;;  %v4480_v19 = vpack.c.bf16 %v1898_v59, %v1894_v54  ;;  %v1930_v37 = vld [vmem:[#allocation6 + $0x3f0] sm:$0xff]  ;;  %v2111_v54 = vld [vmem:[#allocation8 + $0x208] sm:$0xff] }
 0x79e   :  { %v4482_v39 = vpack.c.bf16 %v1907_v14, %v1903_v8  ;;  %v2115_v59 = vld [vmem:[#allocation8 + $0x228] sm:$0xff]  ;;  %v2117_v8 = vld [vmem:[#allocation8 + $0x238] sm:$0xff]  ;;  %v2110_v14 = vld [vmem:[#allocation8 + $0x200] sm:$0xff] }
 0x79f   :  { %v5961_v16 = vadd.f32 %v1671_v30, %v1670_v44  ;;  %v1900_v30 = vld [vmem:[#allocation6 + $0x300] sm:$0xff]  ;;  %v4450_v44 = vpack.c.bf16 %v1905_v7, %v1901_v6  ;;  %v2113_v6 = vld [vmem:[#allocation8 + $0x218] sm:$0xff]  ;;  %v5968_v7 = vpack.c.bf16 %v2115_v59, %v2111_v54 }
 0x7a0   :  { %v4452_v9 = vpack.c.bf16 %v1904_v38, %v1900_v30  ;;  %v2112_v38 = vld [vmem:[#allocation8 + $0x210] sm:$0xff]  ;;  %v2142_v54 = vld [vmem:[#allocation8 + $0x300] sm:$0xff] }
 0x7a1   :  { %5156 = vtanh.f32 %v5961_v16  ;;  %v2146_v59 = vld [vmem:[#allocation8 + $0x320] sm:$0xff] }
 0x7ab   :  { %v5157_v11 = vpop.eup %5156 }
 0x7ac   :  { %v1674_v15 = vmul.f32 %v5157_v11, %v5155_v43  ;;  %v1906_v43 = vld [vmem:[#allocation6 + $0x330] sm:$0xff]  ;;  %v1915_v11 = vld [vmem:[#allocation6 + $0x378] sm:$0xff] }
 0x7ad   :  { %v4484_v5 = vpack.c.bf16 %v1906_v43, %v1902_v22  ;;  %v2119_v22 = vld [vmem:[#allocation8 + $0x248] sm:$0xff] }
 0x7ae   :  { %1675 = vst [vmem:[#allocation2 + $0x8] sm:$0x30] %v1674_v15  ;;  %v1677_v1 = vrot.slane %v1674_v15, 4  ;;  %v1912_v15 = vld [vmem:[#allocation6 + $0x360] sm:$0xff]  ;;  %v2123_v43 = vld [vmem:[#allocation8 + $0x268] sm:$0xff] }
 0x7af   :  { %v4456_v31 = vpack.c.bf16 %v1912_v15, %v1908_v26  ;;  %v2120_v15 = vld [vmem:[#allocation8 + $0x250] sm:$0xff] }
 0x7b0   :  { %1744 = vmatmul.mubr.f32.vlgmr.msra.gmra.mrb[18].mxu0 %v1677_v1  ;;  %1815 = vmatmul.mubr.f32.vlgmr.msra.gmra.mrb[18].mxu1 %v1677_v1  ;;  %v1917_v1 = vld [vmem:[#allocation6 + $0x388] sm:$0xff] }
 0x7b1   :  { %4437 = vmatpush1.bf16.msra.mxu0 %v4436_v58  ;;  %4469 = vmatpush1.bf16.msra.mxu1 %v4468_v45  ;;  %v4454_v58 = vpack.c.bf16 %v1913_v3, %v1909_v40  ;;  %v4486_v45 = vpack.c.bf16 %v1915_v11, %v1911_v48  ;;  %v2121_v40 = vld [vmem:[#allocation8 + $0x258] sm:$0xff]  ;;  %v5980_v3 = vpack.c.bf16 %v2123_v43, %v2119_v22  ;;  %v2118_v11 = vld [vmem:[#allocation8 + $0x240] sm:$0xff]  ;;  %v2155_v22 = vld [vmem:[#allocation8 + $0x368] sm:$0xff] }
 0x7b2   :  { %4439 = vmatprep.subr.bf16.mxu0 %v4438_v2  ;;  %4471 = vmatprep.subr.bf16.mxu1 %v4470_v41  ;;  %v1921_v2 = vld [vmem:[#allocation6 + $0x3a8] sm:$0xff]  ;;  %v1919_v41 = vld [vmem:[#allocation6 + $0x398] sm:$0xff] }
 0x7b3   :  { %2019 = vmatprep.mubr.f32.mxu0 %v5428_v0  ;;  %2096 = vmatprep.mubr.f32.mxu1 %v5428_v0  ;;  %v4458_v55 = vpack.c.bf16 %v1921_v2, %v1917_v1  ;;  %v2125_v48 = vld [vmem:[#allocation8 + $0x278] sm:$0xff]  ;;  %v5992_v2 = vpack.c.bf16 %v2131_v20, %v2127_v27  ;;  %v2152_v27 = vld [vmem:[#allocation8 + $0x350] sm:$0xff] }
 0x7b4   :  { %v2129_v1 = vld [vmem:[#allocation8 + $0x298] sm:$0xff]  ;;  %v2156_v20 = vld [vmem:[#allocation8 + $0x370] sm:$0xff] }
 0x7b5   :  { %4441 = vmatpush1.bf16.msra.mxu0 %v4440_v61  ;;  %4473 = vmatpush1.bf16.msra.mxu1 %v4472_v62  ;;  %v4490_v61 = vpack.c.bf16 %v1923_v47, %v1919_v41  ;;  %v1918_v62 = vld [vmem:[#allocation6 + $0x390] sm:$0xff]  ;;  %v2133_v41 = vld [vmem:[#allocation8 + $0x2b8] sm:$0xff]  ;;  %v2126_v47 = vld [vmem:[#allocation8 + $0x280] sm:$0xff] }
 0x7b6   :  { %4443 = vmatprep.subr.bf16.mxu0 %v4442_v10  ;;  %4475 = vmatprep.subr.bf16.mxu1 %v4474_v12  ;;  %v1929_v10 = vld [vmem:[#allocation6 + $0x3e8] sm:$0xff]  ;;  %v1927_v12 = vld [vmem:[#allocation6 + $0x3d8] sm:$0xff]  ;;  %v4492_v23 = vpack.c.bf16 %v1922_v63, %v1918_v62 }
 0x7b7   :  { %v4462_v25 = vpack.c.bf16 %v1929_v10, %v1925_v4  ;;  %v4494_v29 = vpack.c.bf16 %v1931_v13, %v1927_v12  ;;  %v2135_v62 = vld [vmem:[#allocation8 + $0x2c8] sm:$0xff]  ;;  %v2137_v4 = vld [vmem:[#allocation8 + $0x2d8] sm:$0xff]  ;;  %v2134_v13 = vld [vmem:[#allocation8 + $0x2c0] sm:$0xff] }
 0x7b8   :  { %v2139_v63 = vld [vmem:[#allocation8 + $0x2e8] sm:$0xff]  ;;  %v2141_v12 = vld [vmem:[#allocation8 + $0x2f8] sm:$0xff] }
 0x7b9   :  { %4445 = vmatpush1.bf16.msra.mxu0 %v4444_v35  ;;  %4477 = vmatpush1.bf16.msra.mxu1 %v4476_v36  ;;  %v1928_v35 = vld [vmem:[#allocation6 + $0x3e0] sm:$0xff]  ;;  %v1926_v36 = vld [vmem:[#allocation6 + $0x3d0] sm:$0xff]  ;;  %v6004_v10 = vpack.c.bf16 %v2139_v63, %v2135_v62  ;;  %v2153_v43 = vld [vmem:[#allocation8 + $0x358] sm:$0xff] }
 0x7ba   :  { %4447 = vmatprep.subr.bf16.mxu0 %v4446_v52  ;;  %4479 = vmatprep.subr.bf16.mxu1 %v4478_v53  ;;  %v4464_v42 = vpack.c.bf16 %v1928_v35, %v1924_v24  ;;  %v4496_v52 = vpack.c.bf16 %v1930_v37, %v1926_v36  ;;  %v1865_v53 = vld [vmem:[#allocation2] sm:$0xff]  ;;  %v2143_v36 = vld [vmem:[#allocation8 + $0x308] sm:$0xff] }
 0x7bb   :  { %v2147_v37 = vld [vmem:[#allocation8 + $0x328] sm:$0xff]  ;;  %v2158_v63 = vld [vmem:[#allocation8 + $0x380] sm:$0xff] }
 0x7bd   :  { %4449 = vmatpush1.bf16.msra.mxu0 %v4448_v18  ;;  %4481 = vmatpush1.bf16.msra.mxu1 %v4480_v19  ;;  %v2114_v18 = vld [vmem:[#allocation8 + $0x220] sm:$0xff]  ;;  %v5970_v19 = vpack.c.bf16 %v2117_v8, %v2113_v6  ;;  %v6020_v8 = vpack.c.bf16 %v2146_v59, %v2142_v54 }
 0x7be   :  { %4451 = vmatprep.subr.bf16.mxu0 %v4450_v44  ;;  %4483 = vmatprep.subr.bf16.mxu1 %v4482_v39  ;;  %v5972_v30 = vpack.c.bf16 %v2114_v18, %v2110_v14  ;;  %v2116_v44 = vld [vmem:[#allocation8 + $0x230] sm:$0xff]  ;;  %v2166_v54 = vld [vmem:[#allocation8 + $0x3c0] sm:$0xff] }
 0x7bf   :  { %v5975_v39 = vpack.c.bf16 %v2116_v44, %v2112_v38  ;;  %v2144_v14 = vld [vmem:[#allocation8 + $0x310] sm:$0xff]  ;;  %v2151_v44 = vld [vmem:[#allocation8 + $0x348] sm:$0xff]  ;;  %v2170_v59 = vld [vmem:[#allocation8 + $0x3e0] sm:$0xff] }
 0x7c0   :  { %v2148_v18 = vld [vmem:[#allocation8 + $0x330] sm:$0xff] }
 0x7c1   :  { %4453 = vmatpush1.bf16.msra.mxu0 %v4452_v9  ;;  %4485 = vmatpush1.bf16.msra.mxu1 %v4484_v5  ;;  %v2122_v9 = vld [vmem:[#allocation8 + $0x260] sm:$0xff]  ;;  %v5982_v5 = vpack.c.bf16 %v2125_v48, %v2121_v40  ;;  %v6023_v38 = vpack.c.bf16 %v2148_v18, %v2144_v14  ;;  %v6028_v40 = vpack.c.bf16 %v2155_v22, %v2151_v44  ;;  %v2157_v48 = vld [vmem:[#allocation8 + $0x378] sm:$0xff]  ;;  %v2168_v44 = vld [vmem:[#allocation8 + $0x3d0] sm:$0xff] }
 0x7c2   :  { %4455 = vmatprep.subr.bf16.mxu0 %v4454_v58  ;;  %4487 = vmatprep.subr.bf16.mxu1 %v4486_v45  ;;  %v5984_v26 = vpack.c.bf16 %v2122_v9, %v2118_v11  ;;  %v2124_v58 = vld [vmem:[#allocation8 + $0x270] sm:$0xff]  ;;  %v2150_v11 = vld [vmem:[#allocation8 + $0x340] sm:$0xff]  ;;  %v6056_v18 = vpack.c.bf16 %v2170_v59, %v2166_v54 }
 0x7c3   :  { %v5987_v45 = vpack.c.bf16 %v2124_v58, %v2120_v15  ;;  %v2154_v9 = vld [vmem:[#allocation8 + $0x360] sm:$0xff]  ;;  %v6030_v15 = vpack.c.bf16 %v2157_v48, %v2153_v43  ;;  %v2172_v22 = vld [vmem:[#allocation8 + $0x3f0] sm:$0xff] }
 0x7c4   :  { %v6032_v58 = vpack.c.bf16 %v2154_v9, %v2150_v11  ;;  %v6059_v43 = vpack.c.bf16 %v2172_v22, %v2168_v44  ;;  %v1857_v22 = vrot.slane %v5961_v16, 6  ;;  %v3780_v16 = vld [vmem:[%s6451_s3 + $0x4] sm:$0xf] }
 0x7c5   :  { %4457 = vmatpush1.bf16.msra.mxu0 %v4456_v31  ;;  %4489 = vmatpush1.bf16.msra.mxu1 %v4488_v49  ;;  %v2130_v31 = vld [vmem:[#allocation8 + $0x2a0] sm:$0xff]  ;;  %v5994_v49 = vpack.c.bf16 %v2133_v41, %v2129_v1  ;;  %v2159_v1 = vld [vmem:[#allocation8 + $0x388] sm:$0xff]  ;;  %v6035_v41 = vpack.c.bf16 %v2156_v20, %v2152_v27 }
 0x7c6   :  { %4459 = vmatprep.subr.bf16.mxu0 %v4458_v55  ;;  %4491 = vmatprep.subr.bf16.mxu1 %v4490_v61  ;;  %v5996_v50 = vpack.c.bf16 %v2130_v31, %v2126_v47  ;;  %v2132_v55 = vld [vmem:[#allocation8 + $0x2b0] sm:$0xff]  ;;  %v2163_v47 = vld [vmem:[#allocation8 + $0x3a8] sm:$0xff]  ;;  %v2161_v31 = vld [vmem:[#allocation8 + $0x398] sm:$0xff] }
 0x7c7   :  { %v5999_v61 = vpack.c.bf16 %v2132_v55, %v2128_v51  ;;  %v2165_v51 = vld [vmem:[#allocation8 + $0x3b8] sm:$0xff]  ;;  %v6039_v55 = vpack.c.bf16 %v2163_v47, %v2159_v1 }
 0x7c8   :  { %v6041_v62 = vpack.c.bf16 %v2165_v51, %v2161_v31 }
 0x7c9   :  { %4461 = vmatpush1.bf16.msra.mxu0 %v4460_v17  ;;  %4493 = vmatpush1.bf16.msra.mxu1 %v4492_v23  ;;  %v2138_v17 = vld [vmem:[#allocation8 + $0x2e0] sm:$0xff]  ;;  %v6006_v23 = vpack.c.bf16 %v2141_v12, %v2137_v4  ;;  %v2160_v12 = vld [vmem:[#allocation8 + $0x390] sm:$0xff] }
 0x7ca   :  { %4463 = vmatprep.subr.bf16.mxu0 %v4462_v25  ;;  %4495 = vmatprep.subr.bf16.mxu1 %v4494_v29  ;;  %v6008_v24 = vpack.c.bf16 %v2138_v17, %v2134_v13  ;;  %v2136_v25 = vld [vmem:[#allocation8 + $0x2d0] sm:$0xff]  ;;  %v2162_v4 = vld [vmem:[#allocation8 + $0x3a0] sm:$0xff] }
 0x7cb   :  { %v2140_v29 = vld [vmem:[#allocation8 + $0x2f0] sm:$0xff]  ;;  %v6044_v13 = vpack.c.bf16 %v2162_v4, %v2158_v63 }
 0x7cc   :  { %v6011_v35 = vpack.c.bf16 %v2140_v29, %v2136_v25  ;;  %v2164_v17 = vld [vmem:[#allocation8 + $0x3b0] sm:$0xff]  ;;  %v2167_v29 = vld [vmem:[#allocation8 + $0x3c8] sm:$0xff] }
 0x7cd   :  { %4465 = vmatpush1.bf16.msra.mxu0 %v4464_v42  ;;  %4497 = vmatpush1.bf16.msra.mxu1 %v4496_v52  ;;  %v2145_v42 = vld [vmem:[#allocation8 + $0x318] sm:$0xff]  ;;  %v6016_v52 = vpack.c.bf16 %v2147_v37, %v2143_v36  ;;  %v6048_v25 = vpack.c.bf16 %v2164_v17, %v2160_v12  ;;  %v2171_v36 = vld [vmem:[#allocation8 + $0x3e8] sm:$0xff] }
 0x7ce   :  { %4499 = vmatprep.subr.bf16.mxu0 %v5968_v7  ;;  %4531 = vmatprep.subr.bf16.mxu1 %v5970_v19  ;;  %v2169_v37 = vld [vmem:[#allocation8 + $0x3d8] sm:$0xff] }
 0x7d0   :  { %2020 = vmatmul.mubr.f32.vlgmr.msra.gmra.mrb[20].mxu0 %v1865_v53  ;;  %2097 = vmatmul.mubr.f32.vlgmr.msra.gmra.mrb[20].mxu1 %v1865_v53  ;;  %v2149_v53 = vld [vmem:[#allocation8 + $0x338] sm:$0xff] }
 0x7d1   :  { %2025 = vmatprep.mubr.f32.mxu0 %v5428_v0  ;;  %2102 = vmatprep.mubr.f32.mxu1 %v5428_v0  ;;  %v6018_v6 = vpack.c.bf16 %v2149_v53, %v2145_v42  ;;  %v6052_v42 = vpack.c.bf16 %v2171_v36, %v2167_v29  ;;  %v2173_v53 = vld [vmem:[#allocation8 + $0x3f8] sm:$0xff] }
 0x7d2   :  { %4501 = vmatpush1.bf16.msra.mxu0 %v5972_v30  ;;  %4533 = vmatpush1.bf16.msra.mxu1 %v5975_v39  ;;  %v6054_v14 = vpack.c.bf16 %v2173_v53, %v2169_v37 }
 0x7d3   :  { %4503 = vmatprep.subr.bf16.mxu0 %v5980_v3  ;;  %4535 = vmatprep.subr.bf16.mxu1 %v5982_v5 }
 0x7d6   :  { %4505 = vmatpush1.bf16.msra.mxu0 %v5984_v26  ;;  %4537 = vmatpush1.bf16.msra.mxu1 %v5987_v45 }
 0x7d7   :  { %4507 = vmatprep.subr.bf16.mxu0 %v5992_v2  ;;  %4539 = vmatprep.subr.bf16.mxu1 %v5994_v49 }
 0x7da   :  { %4509 = vmatpush1.bf16.msra.mxu0 %v5996_v50  ;;  %4541 = vmatpush1.bf16.msra.mxu1 %v5999_v61 }
 0x7db   :  { %4511 = vmatprep.subr.bf16.mxu0 %v6004_v10  ;;  %4543 = vmatprep.subr.bf16.mxu1 %v6006_v23 }
 0x7de   :  { %4513 = vmatpush1.bf16.msra.mxu0 %v6008_v24  ;;  %4545 = vmatpush1.bf16.msra.mxu1 %v6011_v35 }
 0x7df   :  { %4515 = vmatprep.subr.bf16.mxu0 %v6016_v52  ;;  %4547 = vmatprep.subr.bf16.mxu1 %v6018_v6 }
 0x7e2   :  { %4517 = vmatpush1.bf16.msra.mxu0 %v6020_v8  ;;  %4549 = vmatpush1.bf16.msra.mxu1 %v6023_v38 }
 0x7e3   :  { %4519 = vmatprep.subr.bf16.mxu0 %v6028_v40  ;;  %4551 = vmatprep.subr.bf16.mxu1 %v6030_v15 }
 0x7e6   :  { %4521 = vmatpush1.bf16.msra.mxu0 %v6032_v58  ;;  %4553 = vmatpush1.bf16.msra.mxu1 %v6035_v41 }
 0x7e7   :  { %4523 = vmatprep.subr.bf16.mxu0 %v6039_v55  ;;  %4555 = vmatprep.subr.bf16.mxu1 %v6041_v62 }
 0x7ea   :  { %4525 = vmatpush1.bf16.msra.mxu0 %v6044_v13  ;;  %4557 = vmatpush1.bf16.msra.mxu1 %v6048_v25 }
 0x7eb   :  { %4527 = vmatprep.subr.bf16.mxu0 %v6052_v42  ;;  %4559 = vmatprep.subr.bf16.mxu1 %v6054_v14 }
 0x7ee   :  { %4529 = vmatpush1.bf16.msra.mxu0 %v6056_v18  ;;  %4561 = vmatpush1.bf16.msra.mxu1 %v6059_v43 }
 0x7ef   :  { %4563 = vmatprep.subr.bf16.mxu0 %v5968_v7  ;;  %4595 = vmatprep.subr.bf16.mxu1 %v5970_v19 }
 0x883   :  { %v1745_v48 = vpop.f32.mrb[18].mxu0  ;;  %v1816_v11 = vpop.f32.mrb[18].mxu1 }
 0x884   :  { %v1825_v9 = vrot.slane %v1745_v48, 2  ;;  %v1747_v27 = vpop.f32.mrb[19].mxu0  ;;  %v1818_v20 = vpop.f32.mrb[19].mxu1  ;;  %v1827_v17 = vrot.slane %v1816_v11, 2 }
 0x885   :  { %v1826_v1 = vrot.slane %v1747_v27, 2  ;;  %v1828_v4 = vrot.slane %v1818_v20, 2 }
 0x886   :  { %v1833_v47 = vadd.f32 %v1825_v9, %v5691_v46  ;;  %v1835_v36 = vadd.f32 %v1827_v17, %v5695_v57  ;;  %v6122_v17 = vrot.slane %v3780_v16, %v157_v32 }
 0x887   :  { %v1834_v31 = vadd.f32 %v1826_v1, %v5693_v56  ;;  %v1836_v12 = vadd.f32 %v1828_v4, %v5697_v60 }
 0x888   :  { %v3777_v51 = vmul.f32 -1.442695, %v1833_v47 }
 0x889   :  { %v3778_v63 = vmul.f32 -1.442695, %v1834_v31  ;;  %v3779_v29 = vmul.f32 -1.442695, %v1836_v12  ;;  %v6118_v12 = vrot.slane %v3780_v16, %v153_v28 }
 0x88a   :  { %5158 = vpow2.f32 %v3777_v51 }
 0x88b   :  { %5160 = vpow2.f32 %v3778_v63 }
 0x88c   :  { %5162 = vpow2.f32 %v3779_v29 }
 0x88d   :  { %5164 = vtanh.f32 %v1835_v36 }
 0x894   :  { %v5159_v37 = vpop.eup %5158 }
 0x895   :  { %v5161_v53 = vpop.eup %5160  ;;  %v1840_v54 = vadd.f32 1.0, %v5159_v37 }
 0x896   :  { %v1846_v59 = vadd.f32 1.0, %v5161_v53  ;;  %v5163_v46 = vpop.eup %5162 }
 0x897   :  { %5166 = vrcp.f32 %v1840_v54  ;;  %v5165_v56 = vpop.eup %5164  ;;  %v1853_v60 = vadd.f32 1.0, %v5163_v46 }
 0x898   :  { %5168 = vrcp.f32 %v1846_v59 }
 0x899   :  { %5170 = vrcp.f32 %v1853_v60 }
 0x8a1   :  { %v5167_v44 = vpop.eup %5166 }
 0x8a2   :  { %v5169_v48 = vpop.eup %5168  ;;  %v1860_v9 = vmul.f32 %v5167_v44, %v5165_v56 }
 0x8a3   :  { %v1859_v11 = vmul.f32 %v5169_v48, %v1857_v22  ;;  %v2021_v27 = vpop.f32.mrb[20].mxu0  ;;  %v6071_v20 = vpop.f32.mrb[20].mxu1  ;;  %v6141_v22 = vrot.slane %v3780_v16, %v165_v34 }
 0x8a4   :  { %v2023_v57 = vpop.f32.mrb[21].mxu0  ;;  %v6073_v1 = vpop.f32.mrb[21].mxu1  ;;  %v6133_v54 = vadd.f32 %v2021_v27, %v6118_v12  ;;  %v6150_v27 = vrot.slane %v3780_v16, %v161_v33 }
 0x8a5   :  { %v1861_v47 = vadd.f32 %v1860_v9, %v1859_v11  ;;  %v5171_v31 = vpop.eup %5170  ;;  %v6136_v59 = vadd.f32 %v2023_v57, %v6122_v17  ;;  %v6146_v11 = vadd.f32 %v6073_v1, %v6141_v22 }
 0x8a6   :  { %v6155_v34 = vadd.f32 %v6071_v20, %v6150_v27 }
 0x8a7   :  { %5172 = vtanh.f32 %v1861_v47 }
 0x8b1   :  { %v5173_v51 = vpop.eup %5172 }
 0x8b2   :  { %v1863_v63 = vmul.f32 %v5173_v51, %v5171_v31 }
 0x8b4   :  { %1864 = vst [vmem:[#allocation2 + $0x8] sm:$0xc0] %v1863_v63 }
 0x8bb   :  { %v1866_v4 = vld [vmem:[#allocation2 + $0x8] sm:$0xff] }
 0x8bc   :  { %2026 = vmatmul.mubr.f32.gmra.mrb[22].mxu0 %v1866_v4  ;;  %2103 = vmatmul.mubr.f32.gmra.mrb[22].mxu1 %v1866_v4 }
 0x8bd   :  { %2238 = vmatprep.mubr.f32.mxu0 %v5428_v0  ;;  %2309 = vmatprep.mubr.f32.mxu1 %v5428_v0 }
 0x8c0   :  { %2239 = vmatmul.mubr.f32.vlgmr.msra.gmra.mrb[24].mxu0 %v5428_v0  ;;  %2310 = vmatmul.mubr.f32.vlgmr.msra.gmra.mrb[24].mxu1 %v5428_v0 }
 0x8c1   :  { %4565 = vmatpush1.bf16.msra.mxu0 %v5972_v30  ;;  %4597 = vmatpush1.bf16.msra.mxu1 %v5975_v39 }
 0x8c2   :  { %4567 = vmatprep.subr.bf16.mxu0 %v5980_v3  ;;  %4599 = vmatprep.subr.bf16.mxu1 %v5982_v5 }
 0x8c3   :  { %2408 = vmatprep.mubr.f32.mxu0 %v5428_v0  ;;  %2479 = vmatprep.mubr.f32.mxu1 %v5428_v0 }
 0x8c5   :  { %4569 = vmatpush1.bf16.msra.mxu0 %v5984_v26  ;;  %4601 = vmatpush1.bf16.msra.mxu1 %v5987_v45 }
 0x8c6   :  { %4571 = vmatprep.subr.bf16.mxu0 %v5992_v2  ;;  %4603 = vmatprep.subr.bf16.mxu1 %v5994_v49 }
 0x8c9   :  { %4573 = vmatpush1.bf16.msra.mxu0 %v5996_v50  ;;  %4605 = vmatpush1.bf16.msra.mxu1 %v5999_v61 }
 0x8ca   :  { %4575 = vmatprep.subr.bf16.mxu0 %v6004_v10  ;;  %4607 = vmatprep.subr.bf16.mxu1 %v6006_v23 }
 0x8cd   :  { %4577 = vmatpush1.bf16.msra.mxu0 %v6008_v24  ;;  %4609 = vmatpush1.bf16.msra.mxu1 %v6011_v35 }
 0x8ce   :  { %4579 = vmatprep.subr.bf16.mxu0 %v6016_v52  ;;  %4611 = vmatprep.subr.bf16.mxu1 %v6018_v6 }
 0x8d1   :  { %4581 = vmatpush1.bf16.msra.mxu0 %v6020_v8  ;;  %4613 = vmatpush1.bf16.msra.mxu1 %v6023_v38 }
 0x8d2   :  { %4583 = vmatprep.subr.bf16.mxu0 %v6028_v40  ;;  %4615 = vmatprep.subr.bf16.mxu1 %v6030_v15 }
 0x8d5   :  { %4585 = vmatpush1.bf16.msra.mxu0 %v6032_v58  ;;  %4617 = vmatpush1.bf16.msra.mxu1 %v6035_v41 }
 0x8d6   :  { %4587 = vmatprep.subr.bf16.mxu0 %v6039_v55  ;;  %4619 = vmatprep.subr.bf16.mxu1 %v6041_v62 }
 0x8d9   :  { %4589 = vmatpush1.bf16.msra.mxu0 %v6044_v13  ;;  %4621 = vmatpush1.bf16.msra.mxu1 %v6048_v25 }
 0x8da   :  { %4591 = vmatprep.subr.bf16.mxu0 %v6052_v42  ;;  %4623 = vmatprep.subr.bf16.mxu1 %v6054_v14 }
 0x8dd   :  { %4593 = vmatpush1.bf16.msra.mxu0 %v6056_v18  ;;  %4625 = vmatpush1.bf16.msra.mxu1 %v6059_v43 }
 0x8de   :  { %4627 = vmatprep.subr.bf16.mxu0 %v5968_v7  ;;  %4659 = vmatprep.subr.bf16.mxu1 %v5970_v19 }
 0x98f   :  { %v6124_v29 = vpop.f32.mrb[22].mxu0  ;;  %v6126_v36 = vpop.f32.mrb[22].mxu1 }
 0x990   :  { %v6128_v37 = vpop.f32.mrb[23].mxu0  ;;  %v6130_v53 = vpop.f32.mrb[23].mxu1 }
 0x993   :  { %v2240_v28 = vpop.f32.mrb[24].mxu0  ;;  %v2311_v46 = vpop.f32.mrb[24].mxu1 }
 0x994   :  { %v2316_v56 = vadd.f32 %v2240_v28, %v6133_v54  ;;  %v2242_v32 = vpop.f32.mrb[25].mxu0  ;;  %v2313_v44 = vpop.f32.mrb[25].mxu1  ;;  %v2318_v31 = vadd.f32 %v2311_v46, %v6155_v34 }
 0x995   :  { %v2317_v48 = vadd.f32 %v2242_v32, %v6136_v59  ;;  %v2319_v57 = vadd.f32 %v2313_v44, %v6146_v11 }
 0x996   :  { %v3781_v9 = vmul.f32 -1.442695, %v2316_v56 }
 0x997   :  { %v3782_v60 = vmul.f32 -1.442695, %v2317_v48  ;;  %v3783_v47 = vmul.f32 -1.442695, %v2319_v57 }
 0x998   :  { %5174 = vpow2.f32 %v3781_v9 }
 0x999   :  { %5176 = vpow2.f32 %v3782_v60 }
 0x99a   :  { %5178 = vpow2.f32 %v3783_v47 }
 0x99b   :  { %5180 = vtanh.f32 %v2318_v31 }
 0x9a2   :  { %v5175_v51 = vpop.eup %5174 }
 0x9a3   :  { %v5177_v63 = vpop.eup %5176  ;;  %v2323_v4 = vadd.f32 1.0, %v5175_v51 }
 0x9a4   :  { %v2329_v1 = vadd.f32 1.0, %v5177_v63  ;;  %v5179_v21 = vpop.eup %5178 }
 0x9a5   :  { %5182 = vrcp.f32 %v2323_v4  ;;  %v5181_v33 = vpop.eup %5180  ;;  %v2336_v32 = vadd.f32 1.0, %v5179_v21 }
 0x9a6   :  { %5184 = vrcp.f32 %v2329_v1 }
 0x9a7   :  { %5186 = vrcp.f32 %v2336_v32 }
 0x9af   :  { %v5183_v16 = vpop.eup %5182 }
 0x9b0   :  { %v5185_v28 = vpop.eup %5184  ;;  %v2340_v56 = vmul.f32 %v5183_v16, %v5181_v33 }
 0x9b1   :  { %v2339_v44 = vmul.f32 0.0, %v5185_v28  ;;  %v5187_v46 = vpop.eup %5186 }
 0x9b3   :  { %v6158_v20 = vadd.f32 %v2340_v56, %v2339_v44 }
 0x9b5   :  { %5188 = vtanh.f32 %v6158_v20 }
 0x9bf   :  { %v5189_v48 = vpop.eup %5188 }
 0x9c0   :  { %v2343_v9 = vmul.f32 %v5189_v48, %v5187_v46 }
 0x9c2   :  { %2409 = vmatmul.mubr.f32.vlgmr.msra.gmra.mrb[26].mxu0 %v2343_v9  ;;  %2480 = vmatmul.mubr.f32.vlgmr.msra.gmra.mrb[26].mxu1 %v2343_v9 }
 0x9c3   :  { %4629 = vmatpush1.bf16.msra.mxu0 %v5972_v30  ;;  %4661 = vmatpush1.bf16.msra.mxu1 %v5975_v39 }
 0x9c4   :  { %4631 = vmatprep.subr.bf16.mxu0 %v5980_v3  ;;  %4663 = vmatprep.subr.bf16.mxu1 %v5982_v5 }
 0x9c5   :  { %2596 = vmatprep.mubr.f32.mxu0 %v5428_v0  ;;  %2667 = vmatprep.mubr.f32.mxu1 %v5428_v0 }
 0x9c7   :  { %4633 = vmatpush1.bf16.msra.mxu0 %v5984_v26  ;;  %4665 = vmatpush1.bf16.msra.mxu1 %v5987_v45 }
 0x9c8   :  { %4635 = vmatprep.subr.bf16.mxu0 %v5992_v2  ;;  %4667 = vmatprep.subr.bf16.mxu1 %v5994_v49 }
 0x9cb   :  { %4637 = vmatpush1.bf16.msra.mxu0 %v5996_v50  ;;  %4669 = vmatpush1.bf16.msra.mxu1 %v5999_v61 }
 0x9cc   :  { %4639 = vmatprep.subr.bf16.mxu0 %v6004_v10  ;;  %4671 = vmatprep.subr.bf16.mxu1 %v6006_v23 }
 0x9cf   :  { %4641 = vmatpush1.bf16.msra.mxu0 %v6008_v24  ;;  %4673 = vmatpush1.bf16.msra.mxu1 %v6011_v35 }
 0x9d0   :  { %4643 = vmatprep.subr.bf16.mxu0 %v6016_v52  ;;  %4675 = vmatprep.subr.bf16.mxu1 %v6018_v6 }
 0x9d3   :  { %4645 = vmatpush1.bf16.msra.mxu0 %v6020_v8  ;;  %4677 = vmatpush1.bf16.msra.mxu1 %v6023_v38 }
 0x9d4   :  { %4647 = vmatprep.subr.bf16.mxu0 %v6028_v40  ;;  %4679 = vmatprep.subr.bf16.mxu1 %v6030_v15 }
 0x9d7   :  { %4649 = vmatpush1.bf16.msra.mxu0 %v6032_v58  ;;  %4681 = vmatpush1.bf16.msra.mxu1 %v6035_v41 }
 0x9d8   :  { %4651 = vmatprep.subr.bf16.mxu0 %v6039_v55  ;;  %4683 = vmatprep.subr.bf16.mxu1 %v6041_v62 }
 0x9db   :  { %4653 = vmatpush1.bf16.msra.mxu0 %v6044_v13  ;;  %4685 = vmatpush1.bf16.msra.mxu1 %v6048_v25 }
 0x9dc   :  { %4655 = vmatprep.subr.bf16.mxu0 %v6052_v42  ;;  %4687 = vmatprep.subr.bf16.mxu1 %v6054_v14 }
 0x9df   :  { %4657 = vmatpush1.bf16.msra.mxu0 %v6056_v18  ;;  %4689 = vmatpush1.bf16.msra.mxu1 %v6059_v43 }
 0x9e0   :  { %4691 = vmatprep.subr.bf16.mxu0 %v5968_v7  ;;  %4723 = vmatprep.subr.bf16.mxu1 %v5970_v19 }
 0xa95   :  { %v2410_v60 = vpop.f32.mrb[26].mxu0  ;;  %v2481_v57 = vpop.f32.mrb[26].mxu1 }
 0xa96   :  { %v2490_v47 = vrot.slane %v2410_v60, 6  ;;  %v2412_v31 = vpop.f32.mrb[27].mxu0  ;;  %v2483_v51 = vpop.f32.mrb[27].mxu1  ;;  %v2492_v56 = vrot.slane %v2481_v57, 6 }
 0xa97   :  { %v2491_v63 = vrot.slane %v2412_v31, 6  ;;  %v2493_v16 = vrot.slane %v2483_v51, 6  ;;  %v2522_v51 = vrot.slane %v6158_v20, 6 }
 0xa98   :  { %v2498_v4 = vadd.f32 %v2490_v47, %v6133_v54  ;;  %v2500_v44 = vadd.f32 %v2492_v56, %v6155_v34 }
 0xa99   :  { %v2499_v1 = vadd.f32 %v2491_v63, %v6136_v59  ;;  %v2501_v28 = vadd.f32 %v2493_v16, %v6146_v11 }
 0xa9a   :  { %v3784_v21 = vmul.f32 -1.442695, %v2498_v4 }
 0xa9b   :  { %v3785_v33 = vmul.f32 -1.442695, %v2499_v1  ;;  %v3786_v32 = vmul.f32 -1.442695, %v2501_v28 }
 0xa9c   :  { %5190 = vpow2.f32 %v3784_v21 }
 0xa9d   :  { %5192 = vpow2.f32 %v3785_v33 }
 0xa9e   :  { %5194 = vpow2.f32 %v3786_v32 }
 0xa9f   :  { %5196 = vtanh.f32 %v2500_v44 }
 0xaa6   :  { %v5191_v46 = vpop.eup %5190 }
 0xaa7   :  { %v5193_v48 = vpop.eup %5192  ;;  %v2505_v9 = vadd.f32 1.0, %v5191_v46 }
 0xaa8   :  { %v2511_v60 = vadd.f32 1.0, %v5193_v48  ;;  %v5195_v47 = vpop.eup %5194 }
 0xaa9   :  { %5198 = vrcp.f32 %v2505_v9  ;;  %v5197_v31 = vpop.eup %5196  ;;  %v2518_v21 = vadd.f32 1.0, %v5195_v47 }
 0xaaa   :  { %5200 = vrcp.f32 %v2511_v60 }
 0xaab   :  { %5202 = vrcp.f32 %v2518_v21 }
 0xab3   :  { %v5199_v63 = vpop.eup %5198 }
 0xab4   :  { %v5201_v4 = vpop.eup %5200  ;;  %v2525_v1 = vmul.f32 %v5199_v63, %v5197_v31 }
 0xab5   :  { %v2524_v57 = vmul.f32 %v5201_v4, %v2522_v51  ;;  %v5203_v16 = vpop.eup %5202 }
 0xab7   :  { %v6200_v33 = vadd.f32 %v2525_v1, %v2524_v57 }
 0xab9   :  { %5204 = vtanh.f32 %v6200_v33 }
 0xac3   :  { %v5205_v28 = vpop.eup %5204 }
 0xac4   :  { %v2528_v56 = vmul.f32 %v5205_v28, %v5203_v16 }
 0xac6   :  { %v2530_v32 = vrot.slane %v2528_v56, 2 }
 0xac8   :  { %2597 = vmatmul.mubr.f32.vlgmr.msra.gmra.mrb[28].mxu0 %v2530_v32  ;;  %2668 = vmatmul.mubr.f32.vlgmr.msra.gmra.mrb[28].mxu1 %v2530_v32 }
 0xac9   :  { %4693 = vmatpush1.bf16.msra.mxu0 %v5972_v30  ;;  %4725 = vmatpush1.bf16.msra.mxu1 %v5975_v39 }
 0xaca   :  { %4695 = vmatprep.subr.bf16.mxu0 %v5980_v3  ;;  %4727 = vmatprep.subr.bf16.mxu1 %v5982_v5 }
 0xacb   :  { %2784 = vmatprep.mubr.f32.mxu0 %v5428_v0  ;;  %2855 = vmatprep.mubr.f32.mxu1 %v5428_v0 }
 0xacd   :  { %4697 = vmatpush1.bf16.msra.mxu0 %v5984_v26  ;;  %4729 = vmatpush1.bf16.msra.mxu1 %v5987_v45 }
 0xace   :  { %4699 = vmatprep.subr.bf16.mxu0 %v5992_v2  ;;  %4731 = vmatprep.subr.bf16.mxu1 %v5994_v49 }
 0xad1   :  { %4701 = vmatpush1.bf16.msra.mxu0 %v5996_v50  ;;  %4733 = vmatpush1.bf16.msra.mxu1 %v5999_v61 }
 0xad2   :  { %4703 = vmatprep.subr.bf16.mxu0 %v6004_v10  ;;  %4735 = vmatprep.subr.bf16.mxu1 %v6006_v23 }
 0xad5   :  { %4705 = vmatpush1.bf16.msra.mxu0 %v6008_v24  ;;  %4737 = vmatpush1.bf16.msra.mxu1 %v6011_v35 }
 0xad6   :  { %4707 = vmatprep.subr.bf16.mxu0 %v6016_v52  ;;  %4739 = vmatprep.subr.bf16.mxu1 %v6018_v6 }
 0xad9   :  { %4709 = vmatpush1.bf16.msra.mxu0 %v6020_v8  ;;  %4741 = vmatpush1.bf16.msra.mxu1 %v6023_v38 }
 0xada   :  { %4711 = vmatprep.subr.bf16.mxu0 %v6028_v40  ;;  %4743 = vmatprep.subr.bf16.mxu1 %v6030_v15 }
 0xadd   :  { %4713 = vmatpush1.bf16.msra.mxu0 %v6032_v58  ;;  %4745 = vmatpush1.bf16.msra.mxu1 %v6035_v41 }
 0xade   :  { %4715 = vmatprep.subr.bf16.mxu0 %v6039_v55  ;;  %4747 = vmatprep.subr.bf16.mxu1 %v6041_v62 }
 0xae1   :  { %4717 = vmatpush1.bf16.msra.mxu0 %v6044_v13  ;;  %4749 = vmatpush1.bf16.msra.mxu1 %v6048_v25 }
 0xae2   :  { %4719 = vmatprep.subr.bf16.mxu0 %v6052_v42  ;;  %4751 = vmatprep.subr.bf16.mxu1 %v6054_v14 }
 0xae5   :  { %4721 = vmatpush1.bf16.msra.mxu0 %v6056_v18  ;;  %4753 = vmatpush1.bf16.msra.mxu1 %v6059_v43 }
 0xae6   :  { %4755 = vmatprep.subr.bf16.mxu0 %v5968_v7  ;;  %4787 = vmatprep.subr.bf16.mxu1 %v5970_v19 }
 0xb9b   :  { %v2598_v20 = vpop.f32.mrb[28].mxu0  ;;  %v2669_v44 = vpop.f32.mrb[28].mxu1 }
 0xb9c   :  { %v2678_v46 = vrot.slane %v2598_v20, 4  ;;  %v2600_v48 = vpop.f32.mrb[29].mxu0  ;;  %v2671_v9 = vpop.f32.mrb[29].mxu1  ;;  %v2680_v21 = vrot.slane %v2669_v44, 4 }
 0xb9d   :  { %v2679_v60 = vrot.slane %v2600_v48, 4  ;;  %v2681_v4 = vrot.slane %v2671_v9, 4  ;;  %v2710_v9 = vrot.slane %v6200_v33, 6 }
 0xb9e   :  { %v2686_v47 = vadd.f32 %v2678_v46, %v6133_v54  ;;  %v2688_v16 = vadd.f32 %v2680_v21, %v6155_v34 }
 0xb9f   :  { %v2687_v31 = vadd.f32 %v2679_v60, %v6136_v59  ;;  %v2689_v1 = vadd.f32 %v2681_v4, %v6146_v11 }
 0xba0   :  { %v3787_v63 = vmul.f32 -1.442695, %v2686_v47 }
 0xba1   :  { %v3788_v51 = vmul.f32 -1.442695, %v2687_v31  ;;  %v3789_v57 = vmul.f32 -1.442695, %v2689_v1 }
 0xba2   :  { %5206 = vpow2.f32 %v3787_v63 }
 0xba3   :  { %5208 = vpow2.f32 %v3788_v51 }
 0xba4   :  { %5210 = vpow2.f32 %v3789_v57 }
 0xba5   :  { %5212 = vtanh.f32 %v2688_v16 }
 0xbac   :  { %v5207_v28 = vpop.eup %5206 }
 0xbad   :  { %v5209_v56 = vpop.eup %5208  ;;  %v2693_v32 = vadd.f32 1.0, %v5207_v28 }
 0xbae   :  { %v2699_v20 = vadd.f32 1.0, %v5209_v56  ;;  %v5211_v46 = vpop.eup %5210 }
 0xbaf   :  { %5214 = vrcp.f32 %v2693_v32  ;;  %v5213_v48 = vpop.eup %5212  ;;  %v2706_v63 = vadd.f32 1.0, %v5211_v46 }
 0xbb0   :  { %5216 = vrcp.f32 %v2699_v20 }
 0xbb1   :  { %5218 = vrcp.f32 %v2706_v63 }
 0xbb9   :  { %v5215_v60 = vpop.eup %5214 }
 0xbba   :  { %v5217_v47 = vpop.eup %5216  ;;  %v2713_v31 = vmul.f32 %v5215_v60, %v5213_v48 }
 0xbbb   :  { %v2712_v44 = vmul.f32 %v5217_v47, %v2710_v9  ;;  %v5219_v4 = vpop.eup %5218 }
 0xbbd   :  { %v6242_v51 = vadd.f32 %v2713_v31, %v2712_v44 }
 0xbbf   :  { %5220 = vtanh.f32 %v6242_v51 }
 0xbc9   :  { %v5221_v1 = vpop.eup %5220 }
 0xbca   :  { %v2716_v21 = vmul.f32 %v5221_v1, %v5219_v4 }
 0xbcc   :  { %v2718_v57 = vrot.slane %v2716_v21, 4 }
 0xbce   :  { %2785 = vmatmul.mubr.f32.vlgmr.msra.gmra.mrb[30].mxu0 %v2718_v57  ;;  %2856 = vmatmul.mubr.f32.vlgmr.msra.gmra.mrb[30].mxu1 %v2718_v57 }
 0xbcf   :  { %4757 = vmatpush1.bf16.msra.mxu0 %v5972_v30  ;;  %4789 = vmatpush1.bf16.msra.mxu1 %v5975_v39 }
 0xbd0   :  { %4759 = vmatprep.subr.bf16.mxu0 %v5980_v3  ;;  %4791 = vmatprep.subr.bf16.mxu1 %v5982_v5 }
 0xbd1   :  { %2972 = vmatprep.mubr.f32.mxu0 %v5428_v0  ;;  %3043 = vmatprep.mubr.f32.mxu1 %v5428_v0 }
 0xbd3   :  { %4761 = vmatpush1.bf16.msra.mxu0 %v5984_v26  ;;  %4793 = vmatpush1.bf16.msra.mxu1 %v5987_v45 }
 0xbd4   :  { %4763 = vmatprep.subr.bf16.mxu0 %v5992_v2  ;;  %4795 = vmatprep.subr.bf16.mxu1 %v5994_v49 }
 0xbd7   :  { %4765 = vmatpush1.bf16.msra.mxu0 %v5996_v50  ;;  %4797 = vmatpush1.bf16.msra.mxu1 %v5999_v61 }
 0xbd8   :  { %4767 = vmatprep.subr.bf16.mxu0 %v6004_v10  ;;  %4799 = vmatprep.subr.bf16.mxu1 %v6006_v23 }
 0xbdb   :  { %4769 = vmatpush1.bf16.msra.mxu0 %v6008_v24  ;;  %4801 = vmatpush1.bf16.msra.mxu1 %v6011_v35 }
 0xbdc   :  { %4771 = vmatprep.subr.bf16.mxu0 %v6016_v52  ;;  %4803 = vmatprep.subr.bf16.mxu1 %v6018_v6 }
 0xbdf   :  { %4773 = vmatpush1.bf16.msra.mxu0 %v6020_v8  ;;  %4805 = vmatpush1.bf16.msra.mxu1 %v6023_v38 }
 0xbe0   :  { %4775 = vmatprep.subr.bf16.mxu0 %v6028_v40  ;;  %4807 = vmatprep.subr.bf16.mxu1 %v6030_v15 }
 0xbe3   :  { %4777 = vmatpush1.bf16.msra.mxu0 %v6032_v58  ;;  %4809 = vmatpush1.bf16.msra.mxu1 %v6035_v41 }
 0xbe4   :  { %4779 = vmatprep.subr.bf16.mxu0 %v6039_v55  ;;  %4811 = vmatprep.subr.bf16.mxu1 %v6041_v62 }
 0xbe7   :  { %4781 = vmatpush1.bf16.msra.mxu0 %v6044_v13  ;;  %4813 = vmatpush1.bf16.msra.mxu1 %v6048_v25 }
 0xbe8   :  { %4783 = vmatprep.subr.bf16.mxu0 %v6052_v42  ;;  %4815 = vmatprep.subr.bf16.mxu1 %v6054_v14 }
 0xbeb   :  { %4785 = vmatpush1.bf16.msra.mxu0 %v6056_v18  ;;  %4817 = vmatpush1.bf16.msra.mxu1 %v6059_v43 }
 0xbec   :  { %4819 = vmatprep.subr.bf16.mxu0 %v5968_v7  ;;  %4851 = vmatprep.subr.bf16.mxu1 %v5970_v19 }
 0xca1   :  { %v2786_v33 = vpop.f32.mrb[30].mxu0  ;;  %v2857_v16 = vpop.f32.mrb[30].mxu1 }
 0xca2   :  { %v2866_v28 = vrot.slane %v2786_v33, 2  ;;  %v2788_v56 = vpop.f32.mrb[31].mxu0  ;;  %v2859_v32 = vpop.f32.mrb[31].mxu1  ;;  %v2868_v63 = vrot.slane %v2857_v16, 2 }
 0xca3   :  { %v2867_v20 = vrot.slane %v2788_v56, 2  ;;  %v2869_v47 = vrot.slane %v2859_v32, 2  ;;  %v2898_v56 = vrot.slane %v6242_v51, 6  ;;  %v6323_v51 = vadd.f32 %v6124_v29, %v6118_v12 }
 0xca4   :  { %v2874_v46 = vadd.f32 %v2866_v28, %v6133_v54  ;;  %v2876_v4 = vadd.f32 %v2868_v63, %v6155_v34 }
 0xca5   :  { %v2875_v48 = vadd.f32 %v2867_v20, %v6136_v59  ;;  %v2877_v31 = vadd.f32 %v2869_v47, %v6146_v11  ;;  %v6327_v47 = vadd.f32 %v6128_v37, %v6122_v17  ;;  %v6338_v17 = vadd.f32 %v6126_v36, %v6150_v27 }
 0xca6   :  { %v3790_v60 = vmul.f32 -1.442695, %v2874_v46 }
 0xca7   :  { %v3791_v9 = vmul.f32 -1.442695, %v2875_v48  ;;  %v3792_v44 = vmul.f32 -1.442695, %v2877_v31 }
 0xca8   :  { %5222 = vpow2.f32 %v3790_v60 }
 0xca9   :  { %5224 = vpow2.f32 %v3791_v9 }
 0xcaa   :  { %5226 = vpow2.f32 %v3792_v44 }
 0xcab   :  { %5228 = vtanh.f32 %v2876_v4 }
 0xcb2   :  { %v5223_v1 = vpop.eup %5222 }
 0xcb3   :  { %v5225_v21 = vpop.eup %5224  ;;  %v2881_v57 = vadd.f32 1.0, %v5223_v1 }
 0xcb4   :  { %v2887_v33 = vadd.f32 1.0, %v5225_v21  ;;  %v5227_v54 = vpop.eup %5226 }
 0xcb5   :  { %5230 = vrcp.f32 %v2881_v57  ;;  %v5229_v59 = vpop.eup %5228  ;;  %v2894_v11 = vadd.f32 1.0, %v5227_v54  ;;  %v6333_v54 = vadd.f32 %v6130_v53, %v6141_v22 }
 0xcb6   :  { %5232 = vrcp.f32 %v2887_v33 }
 0xcb7   :  { %5234 = vrcp.f32 %v2894_v11 }
 0xcbf   :  { %v5231_v28 = vpop.eup %5230 }
 0xcc0   :  { %v5233_v32 = vpop.eup %5232  ;;  %v2901_v20 = vmul.f32 %v5231_v28, %v5229_v59 }
 0xcc1   :  { %v2900_v16 = vmul.f32 %v5233_v32, %v2898_v56  ;;  %v5235_v34 = vpop.eup %5234 }
 0xcc3   :  { %v6284_v46 = vadd.f32 %v2901_v20, %v2900_v16 }
 0xcc5   :  { %5236 = vtanh.f32 %v6284_v46  ;;  %v3074_v11 = vrot.slane %v6284_v46, 6 }
 0xccf   :  { %v5237_v48 = vpop.eup %5236 }
 0xcd0   :  { %v2904_v60 = vmul.f32 %v5237_v48, %v5235_v34 }
 0xcd2   :  { %v2906_v9 = vrot.slane %v2904_v60, 6 }
 0xcd4   :  { %2973 = vmatmul.mubr.f32.vlgmr.msra.gmra.mrb[32].mxu0 %v2906_v9  ;;  %3044 = vmatmul.mubr.f32.vlgmr.msra.gmra.mrb[32].mxu1 %v2906_v9 }
 0xcd5   :  { %4821 = vmatpush1.bf16.msra.mxu0 %v5972_v30  ;;  %4853 = vmatpush1.bf16.msra.mxu1 %v5975_v39 }
 0xcd6   :  { %4823 = vmatprep.subr.bf16.mxu0 %v5980_v3  ;;  %4855 = vmatprep.subr.bf16.mxu1 %v5982_v5 }
 0xcd7   :  { %3145 = vmatprep.mubr.f32.mxu0 %v5428_v0  ;;  %3216 = vmatprep.mubr.f32.mxu1 %v5428_v0 }
 0xcd9   :  { %4825 = vmatpush1.bf16.msra.mxu0 %v5984_v26  ;;  %4857 = vmatpush1.bf16.msra.mxu1 %v5987_v45 }
 0xcda   :  { %4827 = vmatprep.subr.bf16.mxu0 %v5992_v2  ;;  %4859 = vmatprep.subr.bf16.mxu1 %v5994_v49 }
 0xcdd   :  { %4829 = vmatpush1.bf16.msra.mxu0 %v5996_v50  ;;  %4861 = vmatpush1.bf16.msra.mxu1 %v5999_v61 }
 0xcde   :  { %4831 = vmatprep.subr.bf16.mxu0 %v6004_v10  ;;  %4863 = vmatprep.subr.bf16.mxu1 %v6006_v23 }
 0xce1   :  { %4833 = vmatpush1.bf16.msra.mxu0 %v6008_v24  ;;  %4865 = vmatpush1.bf16.msra.mxu1 %v6011_v35 }
 0xce2   :  { %4835 = vmatprep.subr.bf16.mxu0 %v6016_v52  ;;  %4867 = vmatprep.subr.bf16.mxu1 %v6018_v6 }
 0xce5   :  { %4837 = vmatpush1.bf16.msra.mxu0 %v6020_v8  ;;  %4869 = vmatpush1.bf16.msra.mxu1 %v6023_v38 }
 0xce6   :  { %4839 = vmatprep.subr.bf16.mxu0 %v6028_v40  ;;  %4871 = vmatprep.subr.bf16.mxu1 %v6030_v15 }
 0xce9   :  { %4841 = vmatpush1.bf16.msra.mxu0 %v6032_v58  ;;  %4873 = vmatpush1.bf16.msra.mxu1 %v6035_v41 }
 0xcea   :  { %4843 = vmatprep.subr.bf16.mxu0 %v6039_v55  ;;  %4875 = vmatprep.subr.bf16.mxu1 %v6041_v62 }
 0xced   :  { %4845 = vmatpush1.bf16.msra.mxu0 %v6044_v13  ;;  %4877 = vmatpush1.bf16.msra.mxu1 %v6048_v25 }
 0xcee   :  { %4847 = vmatprep.subr.bf16.mxu0 %v6052_v42  ;;  %4879 = vmatprep.subr.bf16.mxu1 %v6054_v14 }
 0xcf1   :  { %4849 = vmatpush1.bf16.msra.mxu0 %v6056_v18  ;;  %4881 = vmatpush1.bf16.msra.mxu1 %v6059_v43 }
 0xcf2   :  { %4883 = vmatprep.subr.bf16.mxu0 %v5968_v7  ;;  %4915 = vmatprep.subr.bf16.mxu1 %v5970_v19 }
 0xda7   :  { %v2974_v31 = vpop.f32.mrb[32].mxu0  ;;  %v3045_v63 = vpop.f32.mrb[32].mxu1 }
 0xda8   :  { %v3050_v44 = vadd.f32 %v2974_v31, %v6323_v51  ;;  %v2976_v4 = vpop.f32.mrb[33].mxu0  ;;  %v3047_v1 = vpop.f32.mrb[33].mxu1  ;;  %v3052_v37 = vadd.f32 %v3045_v63, %v6338_v17 }
 0xda9   :  { %v3051_v21 = vadd.f32 %v2976_v4, %v6327_v47  ;;  %v3053_v12 = vadd.f32 %v3047_v1, %v6333_v54 }
 0xdaa   :  { %v3793_v57 = vmul.f32 -1.442695, %v3050_v44 }
 0xdab   :  { %v3794_v33 = vmul.f32 -1.442695, %v3051_v21  ;;  %v3795_v29 = vmul.f32 -1.442695, %v3053_v12 }
 0xdac   :  { %5238 = vpow2.f32 %v3793_v57 }
 0xdad   :  { %5240 = vpow2.f32 %v3794_v33 }
 0xdae   :  { %5242 = vpow2.f32 %v3795_v29 }
 0xdaf   :  { %5244 = vtanh.f32 %v3052_v37 }
 0xdb6   :  { %v5239_v59 = vpop.eup %5238 }
 0xdb7   :  { %v5241_v28 = vpop.eup %5240  ;;  %v3057_v56 = vadd.f32 1.0, %v5239_v59 }
 0xdb8   :  { %v3063_v32 = vadd.f32 1.0, %v5241_v28  ;;  %v5243_v53 = vpop.eup %5242 }
 0xdb9   :  { %5246 = vrcp.f32 %v3057_v56  ;;  %v5245_v22 = vpop.eup %5244  ;;  %v3070_v36 = vadd.f32 1.0, %v5243_v53 }
 0xdba   :  { %5248 = vrcp.f32 %v3063_v32 }
 0xdbb   :  { %5250 = vrcp.f32 %v3070_v36 }
 0xdc3   :  { %v5247_v20 = vpop.eup %5246 }
 0xdc4   :  { %v5249_v16 = vpop.eup %5248  ;;  %v3077_v34 = vmul.f32 %v5247_v20, %v5245_v22 }
 0xdc5   :  { %v3076_v27 = vmul.f32 %v5249_v16, %v3074_v11  ;;  %v5251_v60 = vpop.eup %5250 }
 0xdc7   :  { %v6342_v48 = vadd.f32 %v3077_v34, %v3076_v27 }
 0xdc9   :  { %5252 = vtanh.f32 %v6342_v48  ;;  %v3259_v34 = vrot.slane %v6342_v48, 6 }
 0xdd3   :  { %v5253_v9 = vpop.eup %5252 }
 0xdd4   :  { %v3080_v31 = vmul.f32 %v5253_v9, %v5251_v60 }
 0xdd6   :  { %3146 = vmatmul.mubr.f32.vlgmr.msra.gmra.mrb[34].mxu0 %v3080_v31  ;;  %3217 = vmatmul.mubr.f32.vlgmr.msra.gmra.mrb[34].mxu1 %v3080_v31 }
 0xdd7   :  { %4885 = vmatpush1.bf16.msra.mxu0 %v5972_v30  ;;  %4917 = vmatpush1.bf16.msra.mxu1 %v5975_v39 }
 0xdd8   :  { %4887 = vmatprep.subr.bf16.mxu0 %v5980_v3  ;;  %4919 = vmatprep.subr.bf16.mxu1 %v5982_v5 }
 0xdd9   :  { %3333 = vmatprep.mubr.f32.mxu0 %v5428_v0  ;;  %3404 = vmatprep.mubr.f32.mxu1 %v5428_v0 }
 0xddb   :  { %4889 = vmatpush1.bf16.msra.mxu0 %v5984_v26  ;;  %4921 = vmatpush1.bf16.msra.mxu1 %v5987_v45 }
 0xddc   :  { %4891 = vmatprep.subr.bf16.mxu0 %v5992_v2  ;;  %4923 = vmatprep.subr.bf16.mxu1 %v5994_v49 }
 0xddf   :  { %4893 = vmatpush1.bf16.msra.mxu0 %v5996_v50  ;;  %4925 = vmatpush1.bf16.msra.mxu1 %v5999_v61 }
 0xde0   :  { %4895 = vmatprep.subr.bf16.mxu0 %v6004_v10  ;;  %4927 = vmatprep.subr.bf16.mxu1 %v6006_v23 }
 0xde3   :  { %4897 = vmatpush1.bf16.msra.mxu0 %v6008_v24  ;;  %4929 = vmatpush1.bf16.msra.mxu1 %v6011_v35 }
 0xde4   :  { %4899 = vmatprep.subr.bf16.mxu0 %v6016_v52  ;;  %4931 = vmatprep.subr.bf16.mxu1 %v6018_v6 }
 0xde7   :  { %4901 = vmatpush1.bf16.msra.mxu0 %v6020_v8  ;;  %4933 = vmatpush1.bf16.msra.mxu1 %v6023_v38 }
 0xde8   :  { %4903 = vmatprep.subr.bf16.mxu0 %v6028_v40  ;;  %4935 = vmatprep.subr.bf16.mxu1 %v6030_v15 }
 0xdeb   :  { %4905 = vmatpush1.bf16.msra.mxu0 %v6032_v58  ;;  %4937 = vmatpush1.bf16.msra.mxu1 %v6035_v41 }
 0xdec   :  { %4907 = vmatprep.subr.bf16.mxu0 %v6039_v55  ;;  %4939 = vmatprep.subr.bf16.mxu1 %v6041_v62 }
 0xdef   :  { %4909 = vmatpush1.bf16.msra.mxu0 %v6044_v13  ;;  %4941 = vmatpush1.bf16.msra.mxu1 %v6048_v25 }
 0xdf0   :  { %4911 = vmatprep.subr.bf16.mxu0 %v6052_v42  ;;  %4943 = vmatprep.subr.bf16.mxu1 %v6054_v14 }
 0xdf3   :  { %4913 = vmatpush1.bf16.msra.mxu0 %v6056_v18  ;;  %4945 = vmatpush1.bf16.msra.mxu1 %v6059_v43 }
 0xdf4   :  { %4947 = vmatprep.subr.bf16.mxu0 %v5968_v7  ;;  %4979 = vmatprep.subr.bf16.mxu1 %v5970_v19 }
 0xea9   :  { %v3147_v46 = vpop.f32.mrb[34].mxu0  ;;  %v3218_v63 = vpop.f32.mrb[34].mxu1 }
 0xeaa   :  { %v3227_v44 = vrot.slane %v3147_v46, 6  ;;  %v3149_v4 = vpop.f32.mrb[35].mxu0  ;;  %v3220_v1 = vpop.f32.mrb[35].mxu1  ;;  %v3229_v7 = vrot.slane %v3218_v63, 6 }
 0xeab   :  { %v3228_v21 = vrot.slane %v3149_v4, 6  ;;  %v3230_v37 = vrot.slane %v3220_v1, 6 }
 0xeac   :  { %v3235_v57 = vadd.f32 %v3227_v44, %v6323_v51  ;;  %v3237_v19 = vadd.f32 %v3229_v7, %v6338_v17  ;;  %v3646_v7 = vld [vmem:[#allocation9 + $0x20] sm:$0xff] }
 0xead   :  { %v3236_v33 = vadd.f32 %v3228_v21, %v6327_v47  ;;  %v3238_v59 = vadd.f32 %v3230_v37, %v6333_v54  ;;  %v3642_v21 = vld [vmem:[#allocation9] sm:$0xff]  ;;  %v3645_v37 = vld [vmem:[#allocation9 + $0x18] sm:$0xff] }
 0xeae   :  { %v3796_v12 = vmul.f32 -1.442695, %v3235_v57  ;;  %v3643_v57 = vld [vmem:[#allocation9 + $0x8] sm:$0xff] }
 0xeaf   :  { %v3797_v29 = vmul.f32 -1.442695, %v3236_v33  ;;  %v3798_v28 = vmul.f32 -1.442695, %v3238_v59  ;;  %v5011_v33 = vpack.c.bf16 %v3643_v57, %v3642_v21 }
 0xeb0   :  { %5254 = vpow2.f32 %v3796_v12  ;;  %v5429_v12 = vmov 0.0|0.0  }
 0xeb1   :  { %5256 = vpow2.f32 %v3797_v29  ;;  %v3644_v29 = vld [vmem:[#allocation9 + $0x10] sm:$0xff] }
 0xeb2   :  { %5258 = vpow2.f32 %v3798_v28  ;;  %v5014_v59 = vpack.c.bf16 %v3645_v37, %v3644_v29  ;;  %v3647_v28 = vld [vmem:[#allocation9 + $0x28] sm:$0xff] }
 0xeb3   :  { %5260 = vtanh.f32 %v3237_v19  ;;  %v5017_v19 = vpack.c.bf16 %v3647_v28, %v3646_v7 }
 0xeba   :  { %v5255_v56 = vpop.eup %5254 }
 0xebb   :  { %v5257_v32 = vpop.eup %5256  ;;  %v3242_v53 = vadd.f32 1.0, %v5255_v56  ;;  %v3648_v56 = vld [vmem:[#allocation9 + $0x30] sm:$0xff] }
 0xebc   :  { %v3248_v22 = vadd.f32 1.0, %v5257_v32  ;;  %v5259_v20 = vpop.eup %5258  ;;  %v3649_v32 = vld [vmem:[#allocation9 + $0x38] sm:$0xff] }
 0xebd   :  { %5262 = vrcp.f32 %v3242_v53  ;;  %v5261_v11 = vpop.eup %5260  ;;  %v3255_v60 = vadd.f32 1.0, %v5259_v20  ;;  %v5020_v53 = vpack.c.bf16 %v3649_v32, %v3648_v56  ;;  %v3651_v20 = vld [vmem:[#allocation9 + $0x48] sm:$0xff] }
 0xebe   :  { %5264 = vrcp.f32 %v3248_v22  ;;  %v3650_v22 = vld [vmem:[#allocation9 + $0x40] sm:$0xff] }
 0xebf   :  { %5266 = vrcp.f32 %v3255_v60  ;;  %v3655_v60 = vld [vmem:[#allocation9 + $0x68] sm:$0xff] }
 0xec7   :  { %v5263_v16 = vpop.eup %5262 }
 0xec8   :  { %v5265_v36 = vpop.eup %5264  ;;  %v3262_v27 = vmul.f32 %v5263_v16, %v5261_v11  ;;  %v5023_v11 = vpack.c.bf16 %v3651_v20, %v3650_v22  ;;  %v3652_v16 = vld [vmem:[#allocation9 + $0x50] sm:$0xff] }
 0xec9   :  { %v3261_v9 = vmul.f32 %v5265_v36, %v3259_v34  ;;  %v5267_v46 = vpop.eup %5266  ;;  %v3653_v34 = vld [vmem:[#allocation9 + $0x58] sm:$0xff] }
 0xeca   :  { %v5026_v36 = vpack.c.bf16 %v3653_v34, %v3652_v16 }
 0xecb   :  { %v6384_v31 = vadd.f32 %v3262_v27, %v3261_v9  ;;  %v3654_v27 = vld [vmem:[#allocation9 + $0x60] sm:$0xff] }
 0xecc   :  { %v5029_v9 = vpack.c.bf16 %v3655_v60, %v3654_v27 }
 0xecd   :  { %5268 = vtanh.f32 %v6384_v31 }
 0xed7   :  { %v5269_v63 = vpop.eup %5268 }
 0xed8   :  { %v3265_v44 = vmul.f32 %v5269_v63, %v5267_v46  ;;  %v3657_v46 = vld [vmem:[#allocation9 + $0x78] sm:$0xff] }
 0xeda   :  { %v3267_v4 = vrot.slane %v3265_v44, 2 }
 0xedc   :  { %3334 = vmatmul.mubr.f32.vlgmr.msra.gmra.mrb[36].mxu0 %v3267_v4  ;;  %3405 = vmatmul.mubr.f32.vlgmr.msra.gmra.mrb[36].mxu1 %v3267_v4 }
 0xedd   :  { %4949 = vmatpush1.bf16.msra.mxu0 %v5972_v30  ;;  %4981 = vmatpush1.bf16.msra.mxu1 %v5975_v39 }
 0xede   :  { %4951 = vmatprep.subr.bf16.mxu0 %v5980_v3  ;;  %4983 = vmatprep.subr.bf16.mxu1 %v5982_v5 }
 0xedf   :  { %3521 = vmatprep.mubr.f32.mxu0 %v5428_v0  ;;  %3592 = vmatprep.mubr.f32.mxu1 %v5428_v0 }
 0xee1   :  { %4953 = vmatpush1.bf16.msra.mxu0 %v5984_v26  ;;  %4985 = vmatpush1.bf16.msra.mxu1 %v5987_v45 }
 0xee2   :  { %4955 = vmatprep.subr.bf16.mxu0 %v5992_v2  ;;  %4987 = vmatprep.subr.bf16.mxu1 %v5994_v49 }
 0xee5   :  { %4957 = vmatpush1.bf16.msra.mxu0 %v5996_v50  ;;  %4989 = vmatpush1.bf16.msra.mxu1 %v5999_v61 }
 0xee6   :  { %4959 = vmatprep.subr.bf16.mxu0 %v6004_v10  ;;  %4991 = vmatprep.subr.bf16.mxu1 %v6006_v23 }
 0xee9   :  { %4961 = vmatpush1.bf16.msra.mxu0 %v6008_v24  ;;  %4993 = vmatpush1.bf16.msra.mxu1 %v6011_v35 }
 0xeea   :  { %4963 = vmatprep.subr.bf16.mxu0 %v6016_v52  ;;  %4995 = vmatprep.subr.bf16.mxu1 %v6018_v6 }
 0xeed   :  { %4965 = vmatpush1.bf16.msra.mxu0 %v6020_v8  ;;  %4997 = vmatpush1.bf16.msra.mxu1 %v6023_v38 }
 0xeee   :  { %4967 = vmatprep.subr.bf16.mxu0 %v6028_v40  ;;  %4999 = vmatprep.subr.bf16.mxu1 %v6030_v15 }
 0xef1   :  { %4969 = vmatpush1.bf16.msra.mxu0 %v6032_v58  ;;  %5001 = vmatpush1.bf16.msra.mxu1 %v6035_v41 }
 0xef2   :  { %4971 = vmatprep.subr.bf16.mxu0 %v6039_v55  ;;  %5003 = vmatprep.subr.bf16.mxu1 %v6041_v62  ;;  %v3447_v55 = vrot.slane %v6384_v31, 6  ;;  %v3656_v31 = vld [vmem:[#allocation9 + $0x70] sm:$0xff] }
 0xef3   :  { %v5032_v63 = vpack.c.bf16 %v3657_v46, %v3656_v31 }
 0xef5   :  { %4973 = vmatpush1.bf16.msra.mxu0 %v6044_v13  ;;  %5005 = vmatpush1.bf16.msra.mxu1 %v6048_v25 }
 0xef6   :  { %4975 = vmatprep.subr.bf16.mxu0 %v6052_v42  ;;  %5007 = vmatprep.subr.bf16.mxu1 %v6054_v14 }
 0xef9   :  { %4977 = vmatpush1.bf16.msra.mxu0 %v6056_v18  ;;  %5009 = vmatpush1.bf16.msra.mxu1 %v6059_v43 }
 0xefa   :  { %5010 = vmatprep.subr.bf16.mxu0 %v5429_v12 }
 0xfaf   :  { %v3335_v30 = vpop.f32.mrb[36].mxu0  ;;  %v3406_v39 = vpop.f32.mrb[36].mxu1 }
 0xfb0   :  { %v3415_v3 = vrot.slane %v3335_v30, 4  ;;  %v3337_v5 = vpop.f32.mrb[37].mxu0  ;;  %v3408_v26 = vpop.f32.mrb[37].mxu1  ;;  %v3417_v24 = vrot.slane %v3406_v39, 4 }
 0xfb1   :  { %v3416_v45 = vrot.slane %v3337_v5, 4  ;;  %v3418_v10 = vrot.slane %v3408_v26, 4 }
 0xfb2   :  { %v3423_v2 = vadd.f32 %v3415_v3, %v6323_v51  ;;  %v3425_v52 = vadd.f32 %v3417_v24, %v6338_v17 }
 0xfb3   :  { %v3424_v49 = vadd.f32 %v3416_v45, %v6327_v47  ;;  %v3426_v23 = vadd.f32 %v3418_v10, %v6333_v54 }
 0xfb4   :  { %v3799_v50 = vmul.f32 -1.442695, %v3423_v2 }
 0xfb5   :  { %v3800_v61 = vmul.f32 -1.442695, %v3424_v49  ;;  %v3801_v35 = vmul.f32 -1.442695, %v3426_v23 }
 0xfb6   :  { %5270 = vpow2.f32 %v3799_v50 }
 0xfb7   :  { %5272 = vpow2.f32 %v3800_v61 }
 0xfb8   :  { %5274 = vpow2.f32 %v3801_v35 }
 0xfb9   :  { %5276 = vtanh.f32 %v3425_v52 }
 0xfc0   :  { %v5271_v6 = vpop.eup %5270 }
 0xfc1   :  { %v5273_v8 = vpop.eup %5272  ;;  %v3430_v38 = vadd.f32 1.0, %v5271_v6 }
 0xfc2   :  { %v3436_v40 = vadd.f32 1.0, %v5273_v8  ;;  %v5275_v15 = vpop.eup %5274 }
 0xfc3   :  { %5278 = vrcp.f32 %v3430_v38  ;;  %v5277_v58 = vpop.eup %5276  ;;  %v3443_v25 = vadd.f32 1.0, %v5275_v15 }
 0xfc4   :  { %5280 = vrcp.f32 %v3436_v40 }
 0xfc5   :  { %5282 = vrcp.f32 %v3443_v25  ;;  %v3805_v25 = vld [vmem:[%s6453_s5] ss:$0 sm:$0xff] }
 0xfcd   :  { %v5279_v41 = vpop.eup %5278 }
 0xfce   :  { %v5281_v62 = vpop.eup %5280  ;;  %v3450_v13 = vmul.f32 %v5279_v41, %v5277_v58 }
 0xfcf   :  { %v3449_v42 = vmul.f32 %v5281_v62, %v3447_v55  ;;  %v5283_v18 = vpop.eup %5282 }
 0xfd1   :  { %v6424_v14 = vadd.f32 %v3450_v13, %v3449_v42 }
 0xfd3   :  { %5284 = vtanh.f32 %v6424_v14  ;;  %v3635_v38 = vrot.slane %v6424_v14, 6 }
 0xfdd   :  { %v5285_v43 = vpop.eup %5284 }
 0xfde   :  { %v3453_v48 = vmul.f32 %v5285_v43, %v5283_v18 }
 0xfe0   :  { %v3455_v1 = vrot.slane %v3453_v48, 4 }
 0xfe2   :  { %3522 = vmatmul.mubr.f32.vlgmr.msra.gmra.mrb[38].mxu0 %v3455_v1  ;;  %3593 = vmatmul.mubr.f32.vlgmr.msra.gmra.mrb[38].mxu1 %v3455_v1 }
 0xfe3   :  { %5012 = vmatpush3.bf16.msra.mxu0 %v5011_v33  ;;  %3855 = vmatprep.mubr.msk.f32.mxu0 %vm5430_vm0, %v5428_v0 }
 0xfe4   :  { %5013 = vmatprep.subr.bf16.mxu0 %v5429_v12 }
 0xfe7   :  { %5015 = vmatpush3.bf16.msra.mxu0 %v5014_v59 }
 0xfe8   :  { %5016 = vmatprep.subr.bf16.mxu0 %v5429_v12 }
 0xfeb   :  { %5018 = vmatpush3.bf16.msra.mxu0 %v5017_v19 }
 0xfec   :  { %5019 = vmatprep.subr.bf16.mxu0 %v5429_v12 }
 0xfef   :  { %5021 = vmatpush3.bf16.msra.mxu0 %v5020_v53 }
 0xff0   :  { %5022 = vmatprep.subr.bf16.mxu0 %v5429_v12 }
 0xff3   :  { %5024 = vmatpush3.bf16.msra.mxu0 %v5023_v11 }
 0xff4   :  { %5025 = vmatprep.subr.bf16.mxu0 %v5429_v12 }
 0xff7   :  { %5027 = vmatpush3.bf16.msra.mxu0 %v5026_v36 }
 0xff8   :  { %5028 = vmatprep.subr.bf16.mxu0 %v5429_v12 }
 0xffb   :  { %5030 = vmatpush3.bf16.msra.mxu0 %v5029_v9 }
 0xffc   :  { %5031 = vmatprep.subr.bf16.mxu0 %v5429_v12 }
 0xfff   :  { %5033 = vmatpush3.bf16.msra.mxu0 %v5032_v63 }
0x10b5   :  { %v3523_v44 = vpop.f32.mrb[38].mxu0  ;;  %v3594_v4 = vpop.f32.mrb[38].mxu1 }
0x10b6   :  { %v3603_v0 = vrot.slane %v3523_v44, 2  ;;  %v3525_v30 = vpop.f32.mrb[39].mxu0  ;;  %v3596_v39 = vpop.f32.mrb[39].mxu1  ;;  %v3605_v61 = vrot.slane %v3594_v4, 2 }
0x10b7   :  { %v3604_v3 = vrot.slane %v3525_v30, 2  ;;  %v3606_v49 = vrot.slane %v3596_v39, 2 }
0x10b8   :  { %v3611_v5 = vadd.f32 %v3603_v0, %v6323_v51  ;;  %v3613_v23 = vadd.f32 %v3605_v61, %v6338_v17 }
0x10b9   :  { %v3612_v26 = vadd.f32 %v3604_v3, %v6327_v47  ;;  %v3614_v50 = vadd.f32 %v3606_v49, %v6333_v54 }
0x10ba   :  { %v3802_v45 = vmul.f32 -1.442695, %v3611_v5 }
0x10bb   :  { %v3803_v2 = vmul.f32 -1.442695, %v3612_v26  ;;  %v3804_v10 = vmul.f32 -1.442695, %v3614_v50 }
0x10bc   :  { %5286 = vpow2.f32 %v3802_v45 }
0x10bd   :  { %5288 = vpow2.f32 %v3803_v2 }
0x10be   :  { %5290 = vpow2.f32 %v3804_v10 }
0x10bf   :  { %5292 = vtanh.f32 %v3613_v23 }
0x10c6   :  { %v5287_v24 = vpop.eup %5286 }
0x10c7   :  { %v5289_v35 = vpop.eup %5288  ;;  %v3618_v52 = vadd.f32 1.0, %v5287_v24 }
0x10c8   :  { %v3624_v6 = vadd.f32 1.0, %v5289_v35  ;;  %v5291_v51 = vpop.eup %5290 }
0x10c9   :  { %5294 = vrcp.f32 %v3618_v52  ;;  %v5293_v47 = vpop.eup %5292  ;;  %v3631_v54 = vadd.f32 1.0, %v5291_v51 }
0x10ca   :  { %5296 = vrcp.f32 %v3624_v6 }
0x10cb   :  { %5298 = vrcp.f32 %v3631_v54 }
0x10d3   :  { %v5295_v8 = vpop.eup %5294 }
0x10d4   :  { %v5297_v40 = vpop.eup %5296  ;;  %v3638_v15 = vmul.f32 %v5295_v8, %v5293_v47 }
0x10d5   :  { %v3637_v58 = vmul.f32 %v5297_v40, %v3635_v38  ;;  %v5299_v17 = vpop.eup %5298 }
0x10d7   :  { %v3639_v41 = vadd.f32 %v3638_v15, %v3637_v58 }
0x10d9   :  { %5300 = vtanh.f32 %v3639_v41 }
0x10e3   :  { %v5301_v55 = vpop.eup %5300 }
0x10e4   :  { %v3641_v62 = vmul.f32 %v5301_v55, %v5299_v17 }
0x10e6   :  { %v3666_v13 = vrot.slane %v3641_v62, 6 }
0x10e8   :  { %3856 = vmatmul.mubr.f32.vlgmr.msra.gmra.mrb[40].mxu0 %v3666_v13 }
0x11bb   :  { %v3734_v42 = vpop.f32.mrb[40].mxu0 }
0x11bc   :  { %v3735_v14 = vadd.f32 %v3805_v25, %v3734_v42  ;;  %v3857_v18 = vpop.f32.mrb[41].mxu0 }
0x11be   :  { %3738 = vst [vmem:[#allocation11] sm:$0x3] %v3735_v14 }
0x11bf   :  { %5401 = shalt.err (!%p5398_p8)
}
0x11c0   :  { %s5402_s30 = scalar_lea.hbm %s6454_s6, 32 }
0x11c1   :  { %p5403_p9 = scmp.ne.s32.totalorder %s6454_s6, %s5402_s30  ;;  %p5406_p10 = scmp.lt.u32.totalorder %s5402_s30, %s6454_s6 }
0x11c3   :  { %p5408_p11 = pnand %p5406_p10, %p5403_p9 }
0x11c5   :  { %5411 = shalt.err (!%p5408_p11)
}
0x11c6   :  { %3748 = dma.vmem_to_hbm [thread:$0]  %s3746_s26, 32, %s6454_s6, [#allocation5]  }
0x11c7   :  { %5418 = dma.done.wait [#allocation5], 32  }
0x11c8   :  { %5419 = vsyncadd [#allocation5], 4294967264 }
0x11c9   :  { %3752 = vsyncpa [#allocation4], 1 }
0x11ca   :  { %3753 = vsyncpa [#allocation7], 1 }
0x11cb   :  { %3754 = vsyncpa [#allocation10], 1 }
0x11cc   :  { %3755 = vsyncpa [#allocation5], 1 }

</bundles_post_ra>
